<compile_context>
chip_gen: v5e
topology: v5e:2x2
jax: 0.10.0
libtpu: 0.0.40
codegen_flags: <defaults>
</compile_context>

<pallas_src>
import jax
import jax.numpy as jnp
from jax import lax
from jax.experimental import pallas as pl
from jax.experimental.pallas import tpu as pltpu

N_DYN = 10          # dynamic_layers
N_RWD = 5           # reward_layers

CHANNELS = 256      # module default; reward head hardcodes 256 = C*H*W with H=W=1
ORDER = 2
ACTION_SIZE = 4
A_PAD = 8           # action rows padded to a full sublane group
BATCH = 2
TILE_B = 256        # batch tile when B is large (multiple of 128 also OK on v5e)


def _nomad_kernel(act_ref, x_ref,                 # int action ids, hidden rows (bf16)
                  w0x_ref, w0a_ref, b0_ref,       # layer-0 (folded hidden part + action part)
                  wdyn_ref, bdyn_ref,             # dynamic layers 1..9 (stacked, ReLU)
                  whead_ref, bhead_ref,           # dynamic_head (no activation)
                  wrwd_ref, brwd_ref,             # reward layers 0..3 (stacked, ReLU)
                  wrout_ref, brout_ref,           # reward layer 4 (no activation)
                  reward_ref, hidden_ref):
    f32 = jnp.float32
    bf16 = jnp.bfloat16
    tb = x_ref.shape[0]
    a_pad = w0a_ref.shape[0]

    # One-hot action built in-kernel (replaces wrapper one_hot + channel concat).
    lanes = lax.broadcasted_iota(jnp.int32, (tb, a_pad), 1)
    onehot = jnp.where(lanes == act_ref[...], 1.0, 0.0).astype(bf16)

    # Dynamic layer 0: folded hidden matmul + small action matmul, ReLU.
    acc = jnp.dot(x_ref[...], w0x_ref[...], preferred_element_type=f32)
    acc = acc + jnp.dot(onehot, w0a_ref[...], preferred_element_type=f32)
    h = jnp.maximum(acc + b0_ref[...], 0.0).astype(bf16)

    # Dynamic layers 1..9 (static unroll; bf16 activations, f32 accumulation).
    for i in range(N_DYN - 1):
        acc = jnp.dot(h, wdyn_ref[i], preferred_element_type=f32) + bdyn_ref[i]
        h = jnp.maximum(acc, 0.0).astype(bf16)

    # dynamic_head: no activation -> new hidden state (f32 out).
    hidden_ref[...] = (
        jnp.dot(h, whead_ref[...], preferred_element_type=f32) + bhead_ref[...])

    # Reward head on flatten(intermediate); flatten(h) == h since H = W = 1.
    r = h
    for i in range(N_RWD - 1):
        acc = jnp.dot(r, wrwd_ref[i], preferred_element_type=f32) + brwd_ref[i]
        r = jnp.maximum(acc, 0.0).astype(bf16)

    # Final 256 -> 1 projection as VPU multiply + lane reduction (no N=1 MXU pass).
    reward_ref[...] = (
        jnp.sum(r.astype(f32) * wrout_ref[...], axis=-1, keepdims=True)
        + brout_ref[...])


def init_params(key, channels=CHANNELS, order=ORDER, action_size=ACTION_SIZE):
    """Deterministic synthetic parameters.

    Weights are stored pre-transposed as (Cin, Cout) and in bf16 (bandwidth);
    biases stay f32.  w0 is split into its hidden part (for the evolving path),
    its pre-folded hidden part (non-evolving: encode() duplicates the last
    hidden `order` times), and its one-hot-action part (padded to A_PAD rows).
    """
    bf16 = jnp.bfloat16
    ks = jax.random.split(key, 6)
    s = 0.09  # ~He init for fan-in 256 so activations stay O(1)

    d_hid = channels * order
    w0_hid_f = jax.random.normal(ks[0], (d_hid, channels), jnp.float32) * s
    w0_act_f = jax.random.normal(ks[1], (action_size, channels), jnp.float32) * s
    w0_act_f = jnp.pad(w0_act_f, ((0, A_PAD - action_size), (0, 0)))
    # Fold the duplicated-hidden slices of the non-evolving encode() once.
    w0_eff_f = sum(w0_hid_f[o * channels:(o + 1) * channels] for o in range(order))

    params = dict(
        w0_hid=w0_hid_f.astype(bf16),
        w0_eff=w0_eff_f.astype(bf16),
        w0_act=w0_act_f.astype(bf16),
        b0=jnp.full((1, channels), 0.01, jnp.float32),
        wdyn=(jax.random.normal(ks[2], (N_DYN - 1, channels, channels),
                                jnp.float32) * s).astype(bf16),
        bdyn=jnp.full((N_DYN - 1, 1, channels), 0.01, jnp.float32),
        whead=(jax.random.normal(ks[3], (channels, channels),
                                 jnp.float32) * s).astype(bf16),
        bhead=jnp.full((1, channels), 0.01, jnp.float32),
        wrwd=(jax.random.normal(ks[4], (N_RWD - 1, channels, channels),
                                jnp.float32) * s).astype(bf16),
        brwd=jnp.full((N_RWD - 1, 1, channels), 0.01, jnp.float32),
        wrout=jax.random.normal(ks[5], (1, channels), jnp.float32) * 0.01,
        brout=jnp.zeros((1, 1), jnp.float32),
    )
    return params


def _pad_rows(a, n):
    if a.shape[0] == n:
        return a
    pads = ((0, n - a.shape[0]),) + ((0, 0),) * (a.ndim - 1)
    return jnp.pad(a, pads)


def nomad_forward(params, hiddens, action, *, channels=CHANNELS, evolving=False):
    """hiddens: list of (B, channels, 1, 1) float32 arrays; action: (B,) int."""
    bf16 = jnp.bfloat16
    B = hiddens[-1].shape[0]

    if evolving:
        # clone()/detach() are no-ops in a pure functional forward.
        x = jnp.concatenate([h.reshape(B, -1) for h in hiddens], axis=1).astype(bf16)
        w0x = params["w0_hid"]
    else:
        # encode() duplicates the last hidden `order` times -> use folded weight.
        x = hiddens[-1].reshape(B, -1).astype(bf16)
        w0x = params["w0_eff"]

    # Pad batch rows to full sublanes; tile at 256 rows when B is large so the
    # batch grid axis can be split across TensorCores (v7x) / pipelined.
    if B <= TILE_B:
        b_pad = max(8, ((B + 7) // 8) * 8)
        tb = b_pad
    else:
        b_pad = ((B + TILE_B - 1) // TILE_B) * TILE_B
        tb = TILE_B
    nb = b_pad // tb

    x = _pad_rows(x, b_pad)
    act = _pad_rows(jnp.asarray(action).astype(jnp.int32).reshape(B, 1), b_pad)

    d_x = x.shape[1]
    C = channels

    def full(shape):
        return pl.BlockSpec(shape, lambda i, _s=shape: (0,) * len(_s))

    def row(shape):
        return pl.BlockSpec(shape, lambda i, _s=shape: (i,) + (0,) * (len(_s) - 1))

    reward_p, hidden_p = pl.pallas_call(
        _nomad_kernel,
        grid=(nb,),
        out_shape=(jax.ShapeDtypeStruct((b_pad, 1), jnp.float32),
                   jax.ShapeDtypeStruct((b_pad, C), jnp.float32)),
        in_specs=[
            row((tb, 1)),                    # action ids
            row((tb, d_x)),                  # hidden rows (bf16)
            full((d_x, C)),                  # w0 hidden part (folded or full)
            full((A_PAD, C)),                # w0 action part
            full((1, C)),                    # b0
            full((N_DYN - 1, C, C)),         # wdyn
            full((N_DYN - 1, 1, C)),         # bdyn
            full((C, C)),                    # whead
            full((1, C)),                    # bhead
            full((N_RWD - 1, C, C)),         # wrwd
            full((N_RWD - 1, 1, C)),         # brwd
            full((1, C)),                    # wrout (row vector)
            full((1, 1)),                    # brout
        ],
        out_specs=(row((tb, 1)), row((tb, C))),
        compiler_params=pltpu.CompilerParams(
            dimension_semantics=("parallel",)),  # batch tiles are independent
    )(act, x, w0x, params["w0_act"], params["b0"],
      params["wdyn"], params["bdyn"], params["whead"], params["bhead"],
      params["wrwd"], params["brwd"], params["wrout"], params["brout"])

    reward = reward_p[:B]
    new_hidden = hidden_p[:B].reshape(B, channels, 1, 1)  # back to NCHW
    return reward, new_hidden


def _reference_forward(params, hiddens, action, evolving=False):
    """Pure-JAX reference following the original module's structure (concat of
    hiddens + one-hot action, unfolded w0), mimicking the kernel's bf16
    weight/activation quantization."""
    f32, bf16 = jnp.float32, jnp.bfloat16
    B = hiddens[-1].shape[0]
    if evolving:
        hid = jnp.concatenate([h.reshape(B, -1) for h in hiddens], axis=1)
    else:
        last = hiddens[-1].reshape(B, -1)
        hid = jnp.concatenate([last] * ORDER, axis=1)
    onehot = jax.nn.one_hot(jnp.asarray(action).astype(jnp.int32),
                            params["w0_act"].shape[0], dtype=f32)
    x = jnp.concatenate([hid, onehot], axis=1).astype(bf16).astype(f32)
    w0_full = jnp.concatenate([params["w0_hid"], params["w0_act"]],
                              axis=0).astype(f32)

    def layer(v, w, b):
        return jnp.maximum(v @ w + b, 0.0).astype(bf16).astype(f32)

    h = layer(x, w0_full, params["b0"])
    for i in range(N_DYN - 1):
        h = layer(h, params["wdyn"][i].astype(f32), params["bdyn"][i])
    new_hidden = (h @ params["whead"].astype(f32)
                  + params["bhead"]).reshape(B, CHANNELS, 1, 1)
    r = h
    for i in range(N_RWD - 1):
        r = layer(r, params["wrwd"][i].astype(f32), params["brwd"][i])
    reward = r @ params["wrout"].astype(f32).T + params["brout"]
    return reward, new_hidden


if __name__ == "__main__":
    key = jax.random.PRNGKey(0)
    k_param, k_hid, k_act = jax.random.split(key, 3)

    params = init_params(k_param)

    # list of `order` hidden tensors, NCHW with H = W = 1
    hiddens = [
        jax.random.normal(jax.random.fold_in(k_hid, i),
                          (BATCH, CHANNELS, 1, 1), jnp.float32)
        for i in range(ORDER)
    ]
    action = jax.random.randint(k_act, (BATCH,), 0, ACTION_SIZE, dtype=jnp.int32)

    # bf16 weights/activations through 15 chained matmuls -> relaxed tolerances.
    for evolving in (False, True):
        reward, new_hidden = nomad_forward(params, hiddens, action, evolving=evolving)
        jax.block_until_ready((reward, new_hidden))

        ref_reward, ref_hidden = _reference_forward(params, hiddens, action,
                                                    evolving=evolving)
        assert reward.shape == (BATCH, 1)
        assert new_hidden.shape == (BATCH, CHANNELS, 1, 1)
        assert jnp.allclose(reward, ref_reward, atol=5e-2, rtol=5e-2)
        assert jnp.allclose(new_hidden, ref_hidden, atol=5e-2, rtol=5e-2)

    # TODO(synk): for B >~ 1024 per call, move the stacked wdyn/wrwd onto an
    # "arbitrary" layer grid axis so each layer's weight DMA overlaps the
    # previous layer's matmul; neutral at small B so omitted here.
    print("KERNEL_OK")
</pallas_src>

<mosaic_0001>
module attributes {stable_mosaic.version = 11 : i64} {
  func.func @_nomad_kernel(%arg0: i32, %arg1: memref<8x1xi32, #tpu.memory_space<vmem>>, %arg2: memref<8x256xbf16, #tpu.memory_space<vmem>>, %arg3: memref<256x256xbf16, #tpu.memory_space<vmem>>, %arg4: memref<8x256xbf16, #tpu.memory_space<vmem>>, %arg5: memref<1x256xf32, #tpu.memory_space<vmem>>, %arg6: memref<9x256x256xbf16, #tpu.memory_space<vmem>>, %arg7: memref<9x1x256xf32, #tpu.memory_space<vmem>>, %arg8: memref<256x256xbf16, #tpu.memory_space<vmem>>, %arg9: memref<1x256xf32, #tpu.memory_space<vmem>>, %arg10: memref<4x256x256xbf16, #tpu.memory_space<vmem>>, %arg11: memref<4x1x256xf32, #tpu.memory_space<vmem>>, %arg12: memref<1x256xf32, #tpu.memory_space<vmem>>, %arg13: memref<1x1xf32, #tpu.memory_space<vmem>>, %arg14: memref<8x1xf32, #tpu.memory_space<vmem>>, %arg15: memref<8x256xf32, #tpu.memory_space<vmem>>) attributes {dimension_semantics = [#tpu.dimension_semantics<parallel>], iteration_bounds = array<i64: 1>, scalar_prefetch = 0 : i64, scratch_operands = 0 : i64, tpu.core_type = #tpu.core_type<tc>, window_params = [{transform_indices = @transform_0, window_bounds = array<i64: 8, 1>}, {transform_indices = @transform_1, window_bounds = array<i64: 8, 256>}, {pipeline_mode = #tpu.pipeline_mode<synchronous>, transform_indices = @transform_2, window_bounds = array<i64: 256, 256>}, {pipeline_mode = #tpu.pipeline_mode<synchronous>, transform_indices = @transform_3, window_bounds = array<i64: 8, 256>}, {pipeline_mode = #tpu.pipeline_mode<synchronous>, transform_indices = @transform_4, window_bounds = array<i64: 1, 256>}, {pipeline_mode = #tpu.pipeline_mode<synchronous>, transform_indices = @transform_5, window_bounds = array<i64: 9, 256, 256>}, {pipeline_mode = #tpu.pipeline_mode<synchronous>, transform_indices = @transform_6, window_bounds = array<i64: 9, 1, 256>}, {pipeline_mode = #tpu.pipeline_mode<synchronous>, transform_indices = @transform_7, window_bounds = array<i64: 256, 256>}, {pipeline_mode = #tpu.pipeline_mode<synchronous>, transform_indices = @transform_8, window_bounds = array<i64: 1, 256>}, {pipeline_mode = #tpu.pipeline_mode<synchronous>, transform_indices = @transform_9, window_bounds = array<i64: 4, 256, 256>}, {pipeline_mode = #tpu.pipeline_mode<synchronous>, transform_indices = @transform_10, window_bounds = array<i64: 4, 1, 256>}, {pipeline_mode = #tpu.pipeline_mode<synchronous>, transform_indices = @transform_11, window_bounds = array<i64: 1, 256>}, {pipeline_mode = #tpu.pipeline_mode<synchronous>, transform_indices = @transform_12, window_bounds = array<i64: 1, 1>}, {transform_indices = @transform_13, window_bounds = array<i64: 8, 1>}, {transform_indices = @transform_14, window_bounds = array<i64: 8, 256>}]} {
    %0 = tpu.iota {dimensions = array<i32: 1>} : vector<8x8xi32>
    %c0 = arith.constant 0 : index
    %c0_0 = arith.constant 0 : index
    %1 = vector.load %arg1[%c0, %c0_0] : memref<8x1xi32, #tpu.memory_space<vmem>>, vector<8x1xi32>
    %2 = vector.broadcast %1 : vector<8x1xi32> to vector<8x8xi32>
    %3 = arith.cmpi eq, %0, %2 : vector<8x8xi32>
    %cst = arith.constant 1.000000e+00 : f32
    %cst_1 = arith.constant 0.000000e+00 : f32
    %4 = vector.broadcast %cst : f32 to vector<8x8xf32>
    %5 = vector.broadcast %cst_1 : f32 to vector<8x8xf32>
    %6 = arith.select %3, %4, %5 : vector<8x8xi1>, vector<8x8xf32>
    %7 = arith.truncf %6 : vector<8x8xf32> to vector<8x8xbf16>
    %c0_2 = arith.constant 0 : index
    %c0_3 = arith.constant 0 : index
    %8 = vector.load %arg2[%c0_2, %c0_3] : memref<8x256xbf16, #tpu.memory_space<vmem>>, vector<8x256xbf16>
    %c0_4 = arith.constant 0 : index
    %c0_5 = arith.constant 0 : index
    %9 = vector.load %arg3[%c0_4, %c0_5] : memref<256x256xbf16, #tpu.memory_space<vmem>>, vector<256x256xbf16>
    %cst_6 = arith.constant dense<0.000000e+00> : vector<8x256xf32>
    %10 = tpu.matmul %8, %9, %cst_6 {dimension_numbers = #tpu.dot_dimension_numbers<[1], [0], [0], [1], [0, 0, 1, 1], [], []>} : vector<8x256xbf16>, vector<256x256xbf16>, vector<8x256xf32> -> vector<8x256xf32>
    %c0_7 = arith.constant 0 : index
    %c0_8 = arith.constant 0 : index
    %11 = vector.load %arg4[%c0_7, %c0_8] : memref<8x256xbf16, #tpu.memory_space<vmem>>, vector<8x256xbf16>
    %cst_9 = arith.constant dense<0.000000e+00> : vector<8x256xf32>
    %12 = tpu.matmul %7, %11, %cst_9 {dimension_numbers = #tpu.dot_dimension_numbers<[1], [0], [0], [1], [0, 0, 1, 1], [], []>} : vector<8x8xbf16>, vector<8x256xbf16>, vector<8x256xf32> -> vector<8x256xf32>
    %13 = arith.addf %10, %12 : vector<8x256xf32>
    %c0_10 = arith.constant 0 : index
    %c0_11 = arith.constant 0 : index
    %14 = vector.load %arg5[%c0_10, %c0_11] : memref<1x256xf32, #tpu.memory_space<vmem>>, vector<1x256xf32>
    %15 = vector.broadcast %14 : vector<1x256xf32> to vector<8x256xf32>
    %16 = arith.addf %13, %15 : vector<8x256xf32>
    %cst_12 = arith.constant 0.000000e+00 : f32
    %17 = vector.broadcast %cst_12 : f32 to vector<8x256xf32>
    %18 = arith.maximumf %16, %17 : vector<8x256xf32>
    %19 = arith.truncf %18 : vector<8x256xf32> to vector<8x256xbf16>
    %c0_13 = arith.constant 0 : index
    %c0_14 = arith.constant 0 : index
    %c0_15 = arith.constant 0 : index
    %20 = vector.load %arg6[%c0_13, %c0_14, %c0_15] : memref<9x256x256xbf16, #tpu.memory_space<vmem>>, vector<1x256x256xbf16>
    %21 = vector.shape_cast %20 : vector<1x256x256xbf16> to vector<256x256xbf16>
    %cst_16 = arith.constant dense<0.000000e+00> : vector<8x256xf32>
    %22 = tpu.matmul %19, %21, %cst_16 {dimension_numbers = #tpu.dot_dimension_numbers<[1], [0], [0], [1], [0, 0, 1, 1], [], []>} : vector<8x256xbf16>, vector<256x256xbf16>, vector<8x256xf32> -> vector<8x256xf32>
    %c0_17 = arith.constant 0 : index
    %c0_18 = arith.constant 0 : index
    %c0_19 = arith.constant 0 : index
    %23 = vector.load %arg7[%c0_17, %c0_18, %c0_19] : memref<9x1x256xf32, #tpu.memory_space<vmem>>, vector<1x1x256xf32>
    %24 = vector.shape_cast %23 : vector<1x1x256xf32> to vector<1x256xf32>
    %25 = vector.broadcast %24 : vector<1x256xf32> to vector<8x256xf32>
    %26 = arith.addf %22, %25 : vector<8x256xf32>
    %cst_20 = arith.constant 0.000000e+00 : f32
    %27 = vector.broadcast %cst_20 : f32 to vector<8x256xf32>
    %28 = arith.maximumf %26, %27 : vector<8x256xf32>
    %29 = arith.truncf %28 : vector<8x256xf32> to vector<8x256xbf16>
    %c1 = arith.constant 1 : index
    %c0_21 = arith.constant 0 : index
    %c0_22 = arith.constant 0 : index
    %30 = vector.load %arg6[%c1, %c0_21, %c0_22] : memref<9x256x256xbf16, #tpu.memory_space<vmem>>, vector<1x256x256xbf16>
    %31 = vector.shape_cast %30 : vector<1x256x256xbf16> to vector<256x256xbf16>
    %cst_23 = arith.constant dense<0.000000e+00> : vector<8x256xf32>
    %32 = tpu.matmul %29, %31, %cst_23 {dimension_numbers = #tpu.dot_dimension_numbers<[1], [0], [0], [1], [0, 0, 1, 1], [], []>} : vector<8x256xbf16>, vector<256x256xbf16>, vector<8x256xf32> -> vector<8x256xf32>
    %c1_24 = arith.constant 1 : index
    %c0_25 = arith.constant 0 : index
    %c0_26 = arith.constant 0 : index
    %33 = vector.load %arg7[%c1_24, %c0_25, %c0_26] : memref<9x1x256xf32, #tpu.memory_space<vmem>>, vector<1x1x256xf32>
    %34 = vector.shape_cast %33 : vector<1x1x256xf32> to vector<1x256xf32>
    %35 = vector.broadcast %34 : vector<1x256xf32> to vector<8x256xf32>
    %36 = arith.addf %32, %35 : vector<8x256xf32>
    %cst_27 = arith.constant 0.000000e+00 : f32
    %37 = vector.broadcast %cst_27 : f32 to vector<8x256xf32>
    %38 = arith.maximumf %36, %37 : vector<8x256xf32>
    %39 = arith.truncf %38 : vector<8x256xf32> to vector<8x256xbf16>
    %c2 = arith.constant 2 : index
    %c0_28 = arith.constant 0 : index
    %c0_29 = arith.constant 0 : index
    %40 = vector.load %arg6[%c2, %c0_28, %c0_29] : memref<9x256x256xbf16, #tpu.memory_space<vmem>>, vector<1x256x256xbf16>
    %41 = vector.shape_cast %40 : vector<1x256x256xbf16> to vector<256x256xbf16>
    %cst_30 = arith.constant dense<0.000000e+00> : vector<8x256xf32>
    %42 = tpu.matmul %39, %41, %cst_30 {dimension_numbers = #tpu.dot_dimension_numbers<[1], [0], [0], [1], [0, 0, 1, 1], [], []>} : vector<8x256xbf16>, vector<256x256xbf16>, vector<8x256xf32> -> vector<8x256xf32>
    %c2_31 = arith.constant 2 : index
    %c0_32 = arith.constant 0 : index
    %c0_33 = arith.constant 0 : index
    %43 = vector.load %arg7[%c2_31, %c0_32, %c0_33] : memref<9x1x256xf32, #tpu.memory_space<vmem>>, vector<1x1x256xf32>
    %44 = vector.shape_cast %43 : vector<1x1x256xf32> to vector<1x256xf32>
    %45 = vector.broadcast %44 : vector<1x256xf32> to vector<8x256xf32>
    %46 = arith.addf %42, %45 : vector<8x256xf32>
    %cst_34 = arith.constant 0.000000e+00 : f32
    %47 = vector.broadcast %cst_34 : f32 to vector<8x256xf32>
    %48 = arith.maximumf %46, %47 : vector<8x256xf32>
    %49 = arith.truncf %48 : vector<8x256xf32> to vector<8x256xbf16>
    %c3 = arith.constant 3 : index
    %c0_35 = arith.constant 0 : index
    %c0_36 = arith.constant 0 : index
    %50 = vector.load %arg6[%c3, %c0_35, %c0_36] : memref<9x256x256xbf16, #tpu.memory_space<vmem>>, vector<1x256x256xbf16>
    %51 = vector.shape_cast %50 : vector<1x256x256xbf16> to vector<256x256xbf16>
    %cst_37 = arith.constant dense<0.000000e+00> : vector<8x256xf32>
    %52 = tpu.matmul %49, %51, %cst_37 {dimension_numbers = #tpu.dot_dimension_numbers<[1], [0], [0], [1], [0, 0, 1, 1], [], []>} : vector<8x256xbf16>, vector<256x256xbf16>, vector<8x256xf32> -> vector<8x256xf32>
    %c3_38 = arith.constant 3 : index
    %c0_39 = arith.constant 0 : index
    %c0_40 = arith.constant 0 : index
    %53 = vector.load %arg7[%c3_38, %c0_39, %c0_40] : memref<9x1x256xf32, #tpu.memory_space<vmem>>, vector<1x1x256xf32>
    %54 = vector.shape_cast %53 : vector<1x1x256xf32> to vector<1x256xf32>
    %55 = vector.broadcast %54 : vector<1x256xf32> to vector<8x256xf32>
    %56 = arith.addf %52, %55 : vector<8x256xf32>
    %cst_41 = arith.constant 0.000000e+00 : f32
    %57 = vector.broadcast %cst_41 : f32 to vector<8x256xf32>
    %58 = arith.maximumf %56, %57 : vector<8x256xf32>
    %59 = arith.truncf %58 : vector<8x256xf32> to vector<8x256xbf16>
    %c4 = arith.constant 4 : index
    %c0_42 = arith.constant 0 : index
    %c0_43 = arith.constant 0 : index
    %60 = vector.load %arg6[%c4, %c0_42, %c0_43] : memref<9x256x256xbf16, #tpu.memory_space<vmem>>, vector<1x256x256xbf16>
    %61 = vector.shape_cast %60 : vector<1x256x256xbf16> to vector<256x256xbf16>
    %cst_44 = arith.constant dense<0.000000e+00> : vector<8x256xf32>
    %62 = tpu.matmul %59, %61, %cst_44 {dimension_numbers = #tpu.dot_dimension_numbers<[1], [0], [0], [1], [0, 0, 1, 1], [], []>} : vector<8x256xbf16>, vector<256x256xbf16>, vector<8x256xf32> -> vector<8x256xf32>
    %c4_45 = arith.constant 4 : index
    %c0_46 = arith.constant 0 : index
    %c0_47 = arith.constant 0 : index
    %63 = vector.load %arg7[%c4_45, %c0_46, %c0_47] : memref<9x1x256xf32, #tpu.memory_space<vmem>>, vector<1x1x256xf32>
    %64 = vector.shape_cast %63 : vector<1x1x256xf32> to vector<1x256xf32>
    %65 = vector.broadcast %64 : vector<1x256xf32> to vector<8x256xf32>
    %66 = arith.addf %62, %65 : vector<8x256xf32>
    %cst_48 = arith.constant 0.000000e+00 : f32
    %67 = vector.broadcast %cst_48 : f32 to vector<8x256xf32>
    %68 = arith.maximumf %66, %67 : vector<8x256xf32>
    %69 = arith.truncf %68 : vector<8x256xf32> to vector<8x256xbf16>
    %c5 = arith.constant 5 : index
    %c0_49 = arith.constant 0 : index
    %c0_50 = arith.constant 0 : index
    %70 = vector.load %arg6[%c5, %c0_49, %c0_50] : memref<9x256x256xbf16, #tpu.memory_space<vmem>>, vector<1x256x256xbf16>
    %71 = vector.shape_cast %70 : vector<1x256x256xbf16> to vector<256x256xbf16>
    %cst_51 = arith.constant dense<0.000000e+00> : vector<8x256xf32>
    %72 = tpu.matmul %69, %71, %cst_51 {dimension_numbers = #tpu.dot_dimension_numbers<[1], [0], [0], [1], [0, 0, 1, 1], [], []>} : vector<8x256xbf16>, vector<256x256xbf16>, vector<8x256xf32> -> vector<8x256xf32>
    %c5_52 = arith.constant 5 : index
    %c0_53 = arith.constant 0 : index
    %c0_54 = arith.constant 0 : index
    %73 = vector.load %arg7[%c5_52, %c0_53, %c0_54] : memref<9x1x256xf32, #tpu.memory_space<vmem>>, vector<1x1x256xf32>
    %74 = vector.shape_cast %73 : vector<1x1x256xf32> to vector<1x256xf32>
    %75 = vector.broadcast %74 : vector<1x256xf32> to vector<8x256xf32>
    %76 = arith.addf %72, %75 : vector<8x256xf32>
    %cst_55 = arith.constant 0.000000e+00 : f32
    %77 = vector.broadcast %cst_55 : f32 to vector<8x256xf32>
    %78 = arith.maximumf %76, %77 : vector<8x256xf32>
    %79 = arith.truncf %78 : vector<8x256xf32> to vector<8x256xbf16>
    %c6 = arith.constant 6 : index
    %c0_56 = arith.constant 0 : index
    %c0_57 = arith.constant 0 : index
    %80 = vector.load %arg6[%c6, %c0_56, %c0_57] : memref<9x256x256xbf16, #tpu.memory_space<vmem>>, vector<1x256x256xbf16>
    %81 = vector.shape_cast %80 : vector<1x256x256xbf16> to vector<256x256xbf16>
    %cst_58 = arith.constant dense<0.000000e+00> : vector<8x256xf32>
    %82 = tpu.matmul %79, %81, %cst_58 {dimension_numbers = #tpu.dot_dimension_numbers<[1], [0], [0], [1], [0, 0, 1, 1], [], []>} : vector<8x256xbf16>, vector<256x256xbf16>, vector<8x256xf32> -> vector<8x256xf32>
    %c6_59 = arith.constant 6 : index
    %c0_60 = arith.constant 0 : index
    %c0_61 = arith.constant 0 : index
    %83 = vector.load %arg7[%c6_59, %c0_60, %c0_61] : memref<9x1x256xf32, #tpu.memory_space<vmem>>, vector<1x1x256xf32>
    %84 = vector.shape_cast %83 : vector<1x1x256xf32> to vector<1x256xf32>
    %85 = vector.broadcast %84 : vector<1x256xf32> to vector<8x256xf32>
    %86 = arith.addf %82, %85 : vector<8x256xf32>
    %cst_62 = arith.constant 0.000000e+00 : f32
    %87 = vector.broadcast %cst_62 : f32 to vector<8x256xf32>
    %88 = arith.maximumf %86, %87 : vector<8x256xf32>
    %89 = arith.truncf %88 : vector<8x256xf32> to vector<8x256xbf16>
    %c7 = arith.constant 7 : index
    %c0_63 = arith.constant 0 : index
    %c0_64 = arith.constant 0 : index
    %90 = vector.load %arg6[%c7, %c0_63, %c0_64] : memref<9x256x256xbf16, #tpu.memory_space<vmem>>, vector<1x256x256xbf16>
    %91 = vector.shape_cast %90 : vector<1x256x256xbf16> to vector<256x256xbf16>
    %cst_65 = arith.constant dense<0.000000e+00> : vector<8x256xf32>
    %92 = tpu.matmul %89, %91, %cst_65 {dimension_numbers = #tpu.dot_dimension_numbers<[1], [0], [0], [1], [0, 0, 1, 1], [], []>} : vector<8x256xbf16>, vector<256x256xbf16>, vector<8x256xf32> -> vector<8x256xf32>
    %c7_66 = arith.constant 7 : index
    %c0_67 = arith.constant 0 : index
    %c0_68 = arith.constant 0 : index
    %93 = vector.load %arg7[%c7_66, %c0_67, %c0_68] : memref<9x1x256xf32, #tpu.memory_space<vmem>>, vector<1x1x256xf32>
    %94 = vector.shape_cast %93 : vector<1x1x256xf32> to vector<1x256xf32>
    %95 = vector.broadcast %94 : vector<1x256xf32> to vector<8x256xf32>
    %96 = arith.addf %92, %95 : vector<8x256xf32>
    %cst_69 = arith.constant 0.000000e+00 : f32
    %97 = vector.broadcast %cst_69 : f32 to vector<8x256xf32>
    %98 = arith.maximumf %96, %97 : vector<8x256xf32>
    %99 = arith.truncf %98 : vector<8x256xf32> to vector<8x256xbf16>
    %c8 = arith.constant 8 : index
    %c0_70 = arith.constant 0 : index
    %c0_71 = arith.constant 0 : index
    %100 = vector.load %arg6[%c8, %c0_70, %c0_71] : memref<9x256x256xbf16, #tpu.memory_space<vmem>>, vector<1x256x256xbf16>
    %101 = vector.shape_cast %100 : vector<1x256x256xbf16> to vector<256x256xbf16>
    %cst_72 = arith.constant dense<0.000000e+00> : vector<8x256xf32>
    %102 = tpu.matmul %99, %101, %cst_72 {dimension_numbers = #tpu.dot_dimension_numbers<[1], [0], [0], [1], [0, 0, 1, 1], [], []>} : vector<8x256xbf16>, vector<256x256xbf16>, vector<8x256xf32> -> vector<8x256xf32>
    %c8_73 = arith.constant 8 : index
    %c0_74 = arith.constant 0 : index
    %c0_75 = arith.constant 0 : index
    %103 = vector.load %arg7[%c8_73, %c0_74, %c0_75] : memref<9x1x256xf32, #tpu.memory_space<vmem>>, vector<1x1x256xf32>
    %104 = vector.shape_cast %103 : vector<1x1x256xf32> to vector<1x256xf32>
    %105 = vector.broadcast %104 : vector<1x256xf32> to vector<8x256xf32>
    %106 = arith.addf %102, %105 : vector<8x256xf32>
    %cst_76 = arith.constant 0.000000e+00 : f32
    %107 = vector.broadcast %cst_76 : f32 to vector<8x256xf32>
    %108 = arith.maximumf %106, %107 : vector<8x256xf32>
    %109 = arith.truncf %108 : vector<8x256xf32> to vector<8x256xbf16>
    %c0_77 = arith.constant 0 : index
    %c0_78 = arith.constant 0 : index
    %110 = vector.load %arg8[%c0_77, %c0_78] : memref<256x256xbf16, #tpu.memory_space<vmem>>, vector<256x256xbf16>
    %cst_79 = arith.constant dense<0.000000e+00> : vector<8x256xf32>
    %111 = tpu.matmul %109, %110, %cst_79 {dimension_numbers = #tpu.dot_dimension_numbers<[1], [0], [0], [1], [0, 0, 1, 1], [], []>} : vector<8x256xbf16>, vector<256x256xbf16>, vector<8x256xf32> -> vector<8x256xf32>
    %c0_80 = arith.constant 0 : index
    %c0_81 = arith.constant 0 : index
    %112 = vector.load %arg9[%c0_80, %c0_81] : memref<1x256xf32, #tpu.memory_space<vmem>>, vector<1x256xf32>
    %113 = vector.broadcast %112 : vector<1x256xf32> to vector<8x256xf32>
    %114 = arith.addf %111, %113 : vector<8x256xf32>
    %c0_82 = arith.constant 0 : index
    %c0_83 = arith.constant 0 : index
    %115 = vector.load %arg15[%c0_82, %c0_83] : memref<8x256xf32, #tpu.memory_space<vmem>>, vector<8x256xf32>
    tpu.vector_store %arg15[%c0_82, %c0_83], %114 {strides = array<i32>} : memref<8x256xf32, #tpu.memory_space<vmem>>, vector<8x256xf32>,
    %c0_84 = arith.constant 0 : index
    %c0_85 = arith.constant 0 : index
    %c0_86 = arith.constant 0 : index
    %116 = vector.load %arg10[%c0_84, %c0_85, %c0_86] : memref<4x256x256xbf16, #tpu.memory_space<vmem>>, vector<1x256x256xbf16>
    %117 = vector.shape_cast %116 : vector<1x256x256xbf16> to vector<256x256xbf16>
    %cst_87 = arith.constant dense<0.000000e+00> : vector<8x256xf32>
    %118 = tpu.matmul %109, %117, %cst_87 {dimension_numbers = #tpu.dot_dimension_numbers<[1], [0], [0], [1], [0, 0, 1, 1], [], []>} : vector<8x256xbf16>, vector<256x256xbf16>, vector<8x256xf32> -> vector<8x256xf32>
    %c0_88 = arith.constant 0 : index
    %c0_89 = arith.constant 0 : index
    %c0_90 = arith.constant 0 : index
    %119 = vector.load %arg11[%c0_88, %c0_89, %c0_90] : memref<4x1x256xf32, #tpu.memory_space<vmem>>, vector<1x1x256xf32>
    %120 = vector.shape_cast %119 : vector<1x1x256xf32> to vector<1x256xf32>
    %121 = vector.broadcast %120 : vector<1x256xf32> to vector<8x256xf32>
    %122 = arith.addf %118, %121 : vector<8x256xf32>
    %cst_91 = arith.constant 0.000000e+00 : f32
    %123 = vector.broadcast %cst_91 : f32 to vector<8x256xf32>
    %124 = arith.maximumf %122, %123 : vector<8x256xf32>
    %125 = arith.truncf %124 : vector<8x256xf32> to vector<8x256xbf16>
    %c1_92 = arith.constant 1 : index
    %c0_93 = arith.constant 0 : index
    %c0_94 = arith.constant 0 : index
    %126 = vector.load %arg10[%c1_92, %c0_93, %c0_94] : memref<4x256x256xbf16, #tpu.memory_space<vmem>>, vector<1x256x256xbf16>
    %127 = vector.shape_cast %126 : vector<1x256x256xbf16> to vector<256x256xbf16>
    %cst_95 = arith.constant dense<0.000000e+00> : vector<8x256xf32>
    %128 = tpu.matmul %125, %127, %cst_95 {dimension_numbers = #tpu.dot_dimension_numbers<[1], [0], [0], [1], [0, 0, 1, 1], [], []>} : vector<8x256xbf16>, vector<256x256xbf16>, vector<8x256xf32> -> vector<8x256xf32>
    %c1_96 = arith.constant 1 : index
    %c0_97 = arith.constant 0 : index
    %c0_98 = arith.constant 0 : index
    %129 = vector.load %arg11[%c1_96, %c0_97, %c0_98] : memref<4x1x256xf32, #tpu.memory_space<vmem>>, vector<1x1x256xf32>
    %130 = vector.shape_cast %129 : vector<1x1x256xf32> to vector<1x256xf32>
    %131 = vector.broadcast %130 : vector<1x256xf32> to vector<8x256xf32>
    %132 = arith.addf %128, %131 : vector<8x256xf32>
    %cst_99 = arith.constant 0.000000e+00 : f32
    %133 = vector.broadcast %cst_99 : f32 to vector<8x256xf32>
    %134 = arith.maximumf %132, %133 : vector<8x256xf32>
    %135 = arith.truncf %134 : vector<8x256xf32> to vector<8x256xbf16>
    %c2_100 = arith.constant 2 : index
    %c0_101 = arith.constant 0 : index
    %c0_102 = arith.constant 0 : index
    %136 = vector.load %arg10[%c2_100, %c0_101, %c0_102] : memref<4x256x256xbf16, #tpu.memory_space<vmem>>, vector<1x256x256xbf16>
    %137 = vector.shape_cast %136 : vector<1x256x256xbf16> to vector<256x256xbf16>
    %cst_103 = arith.constant dense<0.000000e+00> : vector<8x256xf32>
    %138 = tpu.matmul %135, %137, %cst_103 {dimension_numbers = #tpu.dot_dimension_numbers<[1], [0], [0], [1], [0, 0, 1, 1], [], []>} : vector<8x256xbf16>, vector<256x256xbf16>, vector<8x256xf32> -> vector<8x256xf32>
    %c2_104 = arith.constant 2 : index
    %c0_105 = arith.constant 0 : index
    %c0_106 = arith.constant 0 : index
    %139 = vector.load %arg11[%c2_104, %c0_105, %c0_106] : memref<4x1x256xf32, #tpu.memory_space<vmem>>, vector<1x1x256xf32>
    %140 = vector.shape_cast %139 : vector<1x1x256xf32> to vector<1x256xf32>
    %141 = vector.broadcast %140 : vector<1x256xf32> to vector<8x256xf32>
    %142 = arith.addf %138, %141 : vector<8x256xf32>
    %cst_107 = arith.constant 0.000000e+00 : f32
    %143 = vector.broadcast %cst_107 : f32 to vector<8x256xf32>
    %144 = arith.maximumf %142, %143 : vector<8x256xf32>
    %145 = arith.truncf %144 : vector<8x256xf32> to vector<8x256xbf16>
    %c3_108 = arith.constant 3 : index
    %c0_109 = arith.constant 0 : index
    %c0_110 = arith.constant 0 : index
    %146 = vector.load %arg10[%c3_108, %c0_109, %c0_110] : memref<4x256x256xbf16, #tpu.memory_space<vmem>>, vector<1x256x256xbf16>
    %147 = vector.shape_cast %146 : vector<1x256x256xbf16> to vector<256x256xbf16>
    %cst_111 = arith.constant dense<0.000000e+00> : vector<8x256xf32>
    %148 = tpu.matmul %145, %147, %cst_111 {dimension_numbers = #tpu.dot_dimension_numbers<[1], [0], [0], [1], [0, 0, 1, 1], [], []>} : vector<8x256xbf16>, vector<256x256xbf16>, vector<8x256xf32> -> vector<8x256xf32>
    %c3_112 = arith.constant 3 : index
    %c0_113 = arith.constant 0 : index
    %c0_114 = arith.constant 0 : index
    %149 = vector.load %arg11[%c3_112, %c0_113, %c0_114] : memref<4x1x256xf32, #tpu.memory_space<vmem>>, vector<1x1x256xf32>
    %150 = vector.shape_cast %149 : vector<1x1x256xf32> to vector<1x256xf32>
    %151 = vector.broadcast %150 : vector<1x256xf32> to vector<8x256xf32>
    %152 = arith.addf %148, %151 : vector<8x256xf32>
    %cst_115 = arith.constant 0.000000e+00 : f32
    %153 = vector.broadcast %cst_115 : f32 to vector<8x256xf32>
    %154 = arith.maximumf %152, %153 : vector<8x256xf32>
    %155 = arith.truncf %154 : vector<8x256xf32> to vector<8x256xbf16>
    %156 = arith.extf %155 : vector<8x256xbf16> to vector<8x256xf32>
    %c0_116 = arith.constant 0 : index
    %c0_117 = arith.constant 0 : index
    %157 = vector.load %arg12[%c0_116, %c0_117] : memref<1x256xf32, #tpu.memory_space<vmem>>, vector<1x256xf32>
    %158 = vector.broadcast %157 : vector<1x256xf32> to vector<8x256xf32>
    %159 = arith.mulf %156, %158 : vector<8x256xf32>
    %cst_118 = arith.constant dense<0.000000e+00> : vector<8xf32>
    %160 = vector.multi_reduction <add>, %159, %cst_118 [1] : vector<8x256xf32> to vector<8xf32>
    %161 = vector.shape_cast %160 : vector<8xf32> to vector<8x1xf32>
    %c0_119 = arith.constant 0 : index
    %c0_120 = arith.constant 0 : index
    %162 = vector.load %arg13[%c0_119, %c0_120] : memref<1x1xf32, #tpu.memory_space<vmem>>, vector<1x1xf32>
    %163 = vector.broadcast %162 : vector<1x1xf32> to vector<8x1xf32>
    %164 = arith.addf %161, %163 : vector<8x1xf32>
    %c0_121 = arith.constant 0 : index
    %c0_122 = arith.constant 0 : index
    %165 = vector.load %arg14[%c0_121, %c0_122] : memref<8x1xf32, #tpu.memory_space<vmem>>, vector<8x1xf32>
    tpu.vector_store %arg14[%c0_121, %c0_122], %164 {strides = array<i32>} : memref<8x1xf32, #tpu.memory_space<vmem>>, vector<8x1xf32>,
    return
  }
  func.func @transform_0(%arg0: i32) -> (i32, i32) {
    %c0_i32 = arith.constant 0 : i32
    %c0_i32_0 = arith.constant 0 : i32
    return %arg0, %c0_i32 : i32, i32
  }
  func.func @transform_1(%arg0: i32) -> (i32, i32) {
    %c0_i32 = arith.constant 0 : i32
    %c0_i32_0 = arith.constant 0 : i32
    return %arg0, %c0_i32 : i32, i32
  }
  func.func @transform_2(%arg0: i32) -> (i32, i32) {
    %c0_i32 = arith.constant 0 : i32
    %c0_i32_0 = arith.constant 0 : i32
    %c0_i32_1 = arith.constant 0 : i32
    return %c0_i32, %c0_i32_0 : i32, i32
  }
  func.func @transform_3(%arg0: i32) -> (i32, i32) {
    %c0_i32 = arith.constant 0 : i32
    %c0_i32_0 = arith.constant 0 : i32
    %c0_i32_1 = arith.constant 0 : i32
    return %c0_i32, %c0_i32_0 : i32, i32
  }
  func.func @transform_4(%arg0: i32) -> (i32, i32) {
    %c0_i32 = arith.constant 0 : i32
    %c0_i32_0 = arith.constant 0 : i32
    %c0_i32_1 = arith.constant 0 : i32
    return %c0_i32, %c0_i32_0 : i32, i32
  }
  func.func @transform_5(%arg0: i32) -> (i32, i32, i32) {
    %c0_i32 = arith.constant 0 : i32
    %c0_i32_0 = arith.constant 0 : i32
    %c0_i32_1 = arith.constant 0 : i32
    %c0_i32_2 = arith.constant 0 : i32
    return %c0_i32, %c0_i32_0, %c0_i32_1 : i32, i32, i32
  }
  func.func @transform_6(%arg0: i32) -> (i32, i32, i32) {
    %c0_i32 = arith.constant 0 : i32
    %c0_i32_0 = arith.constant 0 : i32
    %c0_i32_1 = arith.constant 0 : i32
    %c0_i32_2 = arith.constant 0 : i32
    return %c0_i32, %c0_i32_0, %c0_i32_1 : i32, i32, i32
  }
  func.func @transform_7(%arg0: i32) -> (i32, i32) {
    %c0_i32 = arith.constant 0 : i32
    %c0_i32_0 = arith.constant 0 : i32
    %c0_i32_1 = arith.constant 0 : i32
    return %c0_i32, %c0_i32_0 : i32, i32
  }
  func.func @transform_8(%arg0: i32) -> (i32, i32) {
    %c0_i32 = arith.constant 0 : i32
    %c0_i32_0 = arith.constant 0 : i32
    %c0_i32_1 = arith.constant 0 : i32
    return %c0_i32, %c0_i32_0 : i32, i32
  }
  func.func @transform_9(%arg0: i32) -> (i32, i32, i32) {
    %c0_i32 = arith.constant 0 : i32
    %c0_i32_0 = arith.constant 0 : i32
    %c0_i32_1 = arith.constant 0 : i32
    %c0_i32_2 = arith.constant 0 : i32
    return %c0_i32, %c0_i32_0, %c0_i32_1 : i32, i32, i32
  }
  func.func @transform_10(%arg0: i32) -> (i32, i32, i32) {
    %c0_i32 = arith.constant 0 : i32
    %c0_i32_0 = arith.constant 0 : i32
    %c0_i32_1 = arith.constant 0 : i32
    %c0_i32_2 = arith.constant 0 : i32
    return %c0_i32, %c0_i32_0, %c0_i32_1 : i32, i32, i32
  }
  func.func @transform_11(%arg0: i32) -> (i32, i32) {
    %c0_i32 = arith.constant 0 : i32
    %c0_i32_0 = arith.constant 0 : i32
    %c0_i32_1 = arith.constant 0 : i32
    return %c0_i32, %c0_i32_0 : i32, i32
  }
  func.func @transform_12(%arg0: i32) -> (i32, i32) {
    %c0_i32 = arith.constant 0 : i32
    %c0_i32_0 = arith.constant 0 : i32
    %c0_i32_1 = arith.constant 0 : i32
    return %c0_i32, %c0_i32_0 : i32, i32
  }
  func.func @transform_13(%arg0: i32) -> (i32, i32) {
    %c0_i32 = arith.constant 0 : i32
    %c0_i32_0 = arith.constant 0 : i32
    return %arg0, %c0_i32 : i32, i32
  }
  func.func @transform_14(%arg0: i32) -> (i32, i32) {
    %c0_i32 = arith.constant 0 : i32
    %c0_i32_0 = arith.constant 0 : i32
    return %arg0, %c0_i32 : i32, i32
  }
}

</mosaic_0001>

<bundles_post_ra>
// kernel: tpu_custom_call.1
= control target key start
LH: loop header
LB: loop body
LE: loop exit
PB: predicated region body
PF: predicated region fallthrough
CT: control target
= control target key end

     0   :  { %s7042_s0 = inlined_call_operand.vmem [shape: s32[8,1], index: 0, kind: input, shape index: {}]   ;;  %s7043_s1 = inlined_call_operand.hbm [shape: bf16[8,256], index: 1, kind: input, shape index: {}]   ;;  %s7044_s2 = inlined_call_operand.hbm [shape: bf16[256,256], index: 2, kind: input, shape index: {}]   ;;  %s7045_s3 = inlined_call_operand.hbm [shape: bf16[8,256], index: 3, kind: input, shape index: {}]   ;;  %s7046_s4 = inlined_call_operand.hbm [shape: f32[1,256], index: 4, kind: input, shape index: {}]   ;;  %s7047_s5 = inlined_call_operand.hbm [shape: bf16[9,256,256], index: 5, kind: input, shape index: {}]   ;;  %s7048_s6 = inlined_call_operand.hbm [shape: f32[9,1,256], index: 6, kind: input, shape index: {}]   ;;  %s7049_s7 = inlined_call_operand.hbm [shape: bf16[256,256], index: 7, kind: input, shape index: {}]   ;;  %s7050_s8 = inlined_call_operand.hbm [shape: f32[1,256], index: 8, kind: input, shape index: {}]   ;;  %s7051_s9 = inlined_call_operand.hbm [shape: bf16[4,256,256], index: 9, kind: input, shape index: {}]   ;;  %s7052_s10 = inlined_call_operand.hbm [shape: f32[4,1,256], index: 10, kind: input, shape index: {}]   ;;  %s7053_s11 = inlined_call_operand.hbm [shape: f32[1,256], index: 11, kind: input, shape index: {}]   ;;  %s7054_s12 = inlined_call_operand.<no memory space> [shape: f32[1,1], index: 12, kind: input, shape index: {}]   ;;  %s7055_s13 = inlined_call_operand.vmem [shape: f32[8,1], index: 13, kind: output, shape index: {0}]   ;;  %s7056_s14 = inlined_call_operand.hbm [shape: f32[8,256], index: 14, kind: output, shape index: {1}]  }
   0x1   :  { %v20_v0 = vstv %s7054_s12 }
   0x2   :  { %21 = vst [vmem:[#allocation2] sm:$0x1] %v20_v0 }
   0x3   :  { %22 = vsyncpa [#allocation4], 0 }
   0x4   :  { %23 = vsyncpa [#allocation7], 0 }
   0x5   :  { %24 = vsyncpa [#allocation10], 0 }
   0x6   :  { %25 = vsyncpa [#allocation13], 0 }
   0x7   :  { %26 = vsyncpa [#allocation16], 0 }
   0x8   :  { %27 = vsyncpa [#allocation19], 0  ;;  %s46_s17 = sshll.u32 %s7044_s2, 4  ;;  %s47_s17 = int_to_ptr.hbm [resolvable:$true] %s46_s17 }
   0x9   :  { %28 = vsyncpa [#allocation5], 0  ;;  %s6872_s18 = smov [#allocation6]   ;;  %s71_s12 = sshll.u32 %s7046_s4, 4  ;;  %s72_s12 = int_to_ptr.hbm [resolvable:$true] %s71_s12 }
   0xa   :  { %s48_s19 = sshll.u32 %s6872_s18, 4  ;;  %s6873_s22 = smov 128   ;;  %s49_s19 = int_to_ptr.vmem [resolvable:$true] %s48_s19 }
   0xb   :  { %s6874_s23 = smov 8   ;;  %s6875_s24 = smov [#allocation9]  }
   0xc   :  { %54 = dma.hbm_to_vmem [thread:$0]  %s47_s17, 4096, %s49_s19, [#allocation7], %s6873_s22, %s6873_s22, %s6874_s23  }
   0xd   :  { %s73_s25 = sshll.u32 %s6875_s24, 4  ;;  %s94_s27 = sshll.u32 %s7048_s6, 4  ;;  %s74_s25 = int_to_ptr.vmem [resolvable:$true] %s73_s25  ;;  %s95_s27 = int_to_ptr.hbm [resolvable:$true] %s94_s27 }
   0xe   :  { %76 = dma.hbm_to_vmem [thread:$0]  %s72_s12, 32, %s74_s25, [#allocation10]  }
   0xf   :  { %s6876_s28 = smov [#allocation12]   ;;  %s121_s15 = sshll.u32 %s7050_s8, 4  ;;  %s122_s15 = int_to_ptr.hbm [resolvable:$true] %s121_s15 }
  0x10   :  { %s96_s29 = sshll.u32 %s6876_s28, 4  ;;  %s6877_s16 = smov 32   ;;  %s97_s29 = int_to_ptr.vmem [resolvable:$true] %s96_s29 }
  0x11   :  { %s6878_s18 = smov 2   ;;  %s6879_s17 = smov [#allocation15]  }
  0x12   :  { %102 = dma.hbm_to_vmem [thread:$0]  %s95_s27, 288, %s97_s29, [#allocation13], %s6877_s16, %s6877_s16, %s6878_s18  }
  0x13   :  { %s123_s19 = sshll.u32 %s6879_s17, 4  ;;  %s144_s6 = sshll.u32 %s7052_s10, 4  ;;  %s124_s19 = int_to_ptr.vmem [resolvable:$true] %s123_s19  ;;  %s145_s6 = int_to_ptr.hbm [resolvable:$true] %s144_s6 }
  0x14   :  { %126 = dma.hbm_to_vmem [thread:$0]  %s122_s15, 32, %s124_s19, [#allocation16]  }
  0x15   :  { %s36_s25 = sshll.u32 %s7043_s1, 4  ;;  %s6880_s26 = smov [#allocation18]   ;;  %s37_s25 = int_to_ptr.hbm [resolvable:$true] %s36_s25 }
  0x16   :  { %s146_s2 = sshll.u32 %s6880_s26, 4  ;;  %s6881_s8 = smov [#allocation3]   ;;  %s147_s2 = int_to_ptr.vmem [resolvable:$true] %s146_s2 }
  0x17   :  { %152 = dma.hbm_to_vmem [thread:$0]  %s145_s6, 128, %s147_s2, [#allocation19], %s6877_s16, %s6877_s16, %s6878_s18  }
  0x18   :  { %s38_s27 = sshll.u32 %s6881_s8, 4  ;;  %s60_s4 = sshll.u32 %s7045_s3, 4  ;;  %s39_s27 = int_to_ptr.vmem [resolvable:$true] %s38_s27  ;;  %s61_s4 = int_to_ptr.hbm [resolvable:$true] %s60_s4 }
  0x19   :  { %41 = dma.hbm_to_vmem [thread:$0]  %s37_s25, 128, %s39_s27, [#allocation4]  }
  0x1a   :  { %s81_s15 = sshll.u32 %s7047_s5, 4  ;;  %s6882_s17 = smov [#allocation8]   ;;  %s82_s15 = int_to_ptr.hbm [resolvable:$true] %s81_s15 }
  0x1b   :  { %s62_s1 = sshll.u32 %s6882_s17, 4  ;;  %s6883_s19 = smov [#allocation11]   ;;  %s63_s1 = int_to_ptr.vmem [resolvable:$true] %s62_s1 }
  0x1c   :  { %65 = dma.hbm_to_vmem [thread:$0]  %s61_s4, 128, %s63_s1, [#allocation7]  }
  0x1d   :  { %s83_s16 = sshll.u32 %s6883_s19, 4  ;;  %s107_s21 = sshll.u32 %s7049_s7, 4  ;;  %s84_s16 = int_to_ptr.vmem [resolvable:$true] %s83_s16  ;;  %s108_s21 = int_to_ptr.hbm [resolvable:$true] %s107_s21 }
  0x1e   :  { %89 = dma.hbm_to_vmem [thread:$0]  %s82_s15, 36864, %s84_s16, [#allocation10], %s6873_s22, %s6873_s22, %s6874_s23  }
  0x1f   :  { %s131_s5 = sshll.u32 %s7051_s9, 4  ;;  %s6884_s12 = smov [#allocation14]   ;;  %s132_s5 = int_to_ptr.hbm [resolvable:$true] %s131_s5 }
  0x20   :  { %s109_s24 = sshll.u32 %s6884_s12, 4  ;;  %s6885_s25 = smov [#allocation17]   ;;  %s110_s24 = int_to_ptr.vmem [resolvable:$true] %s109_s24 }
  0x21   :  { %115 = dma.hbm_to_vmem [thread:$0]  %s108_s21, 4096, %s110_s24, [#allocation13], %s6873_s22, %s6873_s22, %s6874_s23  }
  0x22   :  { %s133_s7 = sshll.u32 %s6885_s25, 4  ;;  %s158_s8 = sshll.u32 %s7053_s11, 4  ;;  %s134_s7 = int_to_ptr.vmem [resolvable:$true] %s133_s7  ;;  %s159_s8 = int_to_ptr.hbm [resolvable:$true] %s158_s8 }
  0x23   :  { %139 = dma.hbm_to_vmem [thread:$0]  %s132_s5, 16384, %s134_s7, [#allocation16], %s6873_s22, %s6873_s22, %s6874_s23  }
  0x24   :  { %s6886_s9 = smov [#allocation20]  }
  0x25   :  { %s160_s27 = sshll.u32 %s6886_s9, 4  ;;  %s161_s27 = int_to_ptr.vmem [resolvable:$true] %s160_s27 }
  0x26   :  { %163 = dma.hbm_to_vmem [thread:$0]  %s159_s8, 32, %s161_s27, [#allocation19]  }
  0x27   :  { %6858 = dma.done.wait [#allocation4], 128  }
  0x28   :  { %6859 = vsyncadd [#allocation4], 4294967168 }
  0x29   :  { %6860 = dma.done.wait [#allocation7], 4224  }
  0x2a   :  { %6861 = vsyncadd [#allocation7], 4294963072 }
  0x2b   :  { %6862 = dma.done.wait [#allocation10], 36896  }
  0x2c   :  { %6863 = vsyncadd [#allocation10], 4294930400 }
  0x2d   :  { %6864 = dma.done.wait [#allocation13], 4384  }
  0x2e   :  { %6865 = vsyncadd [#allocation13], 4294962912 }
  0x2f   :  { %6866 = dma.done.wait [#allocation16], 16416  }
  0x30   :  { %6867 = vsyncadd [#allocation16], 4294950880 }
  0x31   :  { %6868 = dma.done.wait [#allocation19], 160  }
  0x32   :  { %6869 = vsyncadd [#allocation19], 4294967136  ;;  %v6887_v1 = vmov 0   ;;  %v213_v2 = vld [vmem:[%s7042_s0] sm:$0xff]  ;;  %v4208_v3 = vld [vmem:[#allocation6 + $0x70] sm:$0xf] }
  0x33   :  { %6568 = vset.pattern.permute.xlu0 %v6887_v1  ;;  %v6085_v4 = vld [vmem:[#allocation6 + $0x74] sm:$0xf0]  ;;  %v4272_v6 = vld [vmem:[#allocation6 + $0xf0] sm:$0xf]  ;;  %v4200_v8 = vld [vmem:[#allocation6 + $0x60] sm:$0xf] }
  0x34   :  { %215 = vperm.xlu0 %6568, %v213_v2   ;;  %v4209_v5 = vor.u32 %v6085_v4, %v4208_v3  ;;  %v6101_v7 = vld [vmem:[#allocation6 + $0xf4] sm:$0xf0]  ;;  %v6083_v10 = vld [vmem:[#allocation6 + $0x64] sm:$0xf0]  ;;  %v4264_v11 = vld [vmem:[#allocation6 + $0xe0] sm:$0xf] }
  0x35   :  { %v4273_v9 = vor.u32 %v6101_v7, %v4272_v6  ;;  %v6099_v12 = vld [vmem:[#allocation6 + $0xe4] sm:$0xf0]  ;;  %v4201_v13 = vor.u32 %v6083_v10, %v4200_v8  ;;  %v4192_v15 = vld [vmem:[#allocation6 + $0x50] sm:$0xf]  ;;  %v6081_v16 = vld [vmem:[#allocation6 + $0x54] sm:$0xf0] }
  0x36   :  { %463 = vmatpush.bf16.msra.mxu2 %v4209_v5  ;;  %v4265_v14 = vor.u32 %v6099_v12, %v4264_v11  ;;  %v4256_v17 = vld [vmem:[#allocation6 + $0xd0] sm:$0xf]  ;;  %v6097_v18 = vld [vmem:[#allocation6 + $0xd4] sm:$0xf0]  ;;  %v4193_v19 = vor.u32 %v6081_v16, %v4192_v15  ;;  %v4184_v20 = vld [vmem:[#allocation6 + $0x40] sm:$0xf] }
  0x37   :  { %476 = vmatpush.bf16.msra.mxu3 %v4273_v9  ;;  %v6079_v21 = vld [vmem:[#allocation6 + $0x44] sm:$0xf0]  ;;  %v253_v22 = vld [vmem:[#allocation8] sm:$0xff]  ;;  %vm263_vm0 = vcmask 1043456   ;;  %v4257_v23 = vor.u32 %v6097_v18, %v4256_v17  ;;  %v6084_v28 = vld [vmem:[#allocation6 + $0x74] sm:$0xf] }
  0x38   :  { %v4248_v24 = vld [vmem:[#allocation6 + $0xc0] sm:$0xf]  ;;  %v6095_v25 = vld [vmem:[#allocation6 + $0xc4] sm:$0xf0]  ;;  %v255_v26 = vunpack.c.l.b16 %v253_v22  ;;  %v256_v27 = vunpack.c.h.b16 %v253_v22  ;;  %v4210_v29 = vld [vmem:[#allocation6 + $0x78] sm:$0xf0]  ;;  %v4185_v37 = vor.u32 %v6079_v21, %v4184_v20 }
  0x39   :  { %v6100_v30 = vld [vmem:[#allocation6 + $0xf4] sm:$0xf]  ;;  %v4274_v31 = vld [vmem:[#allocation6 + $0xf8] sm:$0xf0]  ;;  %v4176_v32 = vld [vmem:[#allocation6 + $0x30] sm:$0xf]  ;;  %v4213_v35 = vor.u32 %v6084_v28, %v4210_v29  ;;  %v4249_v41 = vor.u32 %v6095_v25, %v4248_v24 }
  0x3a   :  { %464 = vmatpush.bf16.msra.mxu2 %v4201_v13  ;;  %v257_v33 = vpack.c.b16 %v255_v26, %v255_v26  ;;  %v258_v34 = vpack.c.b16 %v256_v27, %v256_v27  ;;  %v4277_v36 = vor.u32 %v6100_v30, %v4274_v31  ;;  %v6077_v38 = vld [vmem:[#allocation6 + $0x34] sm:$0xf0]  ;;  %v6082_v39 = vld [vmem:[#allocation6 + $0x64] sm:$0xf]  ;;  %v4202_v40 = vld [vmem:[#allocation6 + $0x68] sm:$0xf0] }
  0x3b   :  { %477 = vmatpush.bf16.msra.mxu3 %v4265_v14  ;;  %v6098_v44 = vld [vmem:[#allocation6 + $0xe4] sm:$0xf]  ;;  %v4266_v45 = vld [vmem:[#allocation6 + $0xe8] sm:$0xf0]  ;;  %v4240_v46 = vld [vmem:[#allocation6 + $0xb0] sm:$0xf]  ;;  %v4205_v48 = vor.u32 %v6082_v39, %v4202_v40  ;;  %v4177_v51 = vor.u32 %v6077_v38, %v4176_v32 }
  0x3c   :  { %v265_v42 = vsel %vm263_vm0, %v257_v33, 0  ;;  %v268_v43 = vsel %vm263_vm0, %v258_v34, 0  ;;  %v6093_v47 = vld [vmem:[#allocation6 + $0xb4] sm:$0xf0]  ;;  %v4269_v49 = vor.u32 %v6098_v44, %v4266_v45  ;;  %v6080_v50 = vld [vmem:[#allocation6 + $0x54] sm:$0xf] }
  0x3d   :  { %277 = vmatpush.bf16.msra.mxu0 %v265_v42  ;;  %290 = vmatpush.bf16.msra.mxu1 %v268_v43  ;;  %v4194_v52 = vld [vmem:[#allocation6 + $0x58] sm:$0xf0]  ;;  %v6096_v53 = vld [vmem:[#allocation6 + $0xd4] sm:$0xf]  ;;  %v4241_v55 = vor.u32 %v6093_v47, %v4240_v46  ;;  %v4168_v56 = vld [vmem:[#allocation6 + $0x20] sm:$0xf] }
  0x3e   :  { %465 = vmatpush.bf16.msra.mxu2 %v4193_v19  ;;  %v4258_v54 = vld [vmem:[#allocation6 + $0xd8] sm:$0xf0]  ;;  %v6075_v57 = vld [vmem:[#allocation6 + $0x24] sm:$0xf0]  ;;  %v4232_v58 = vld [vmem:[#allocation6 + $0xa0] sm:$0xf]  ;;  %v4197_v60 = vor.u32 %v6080_v50, %v4194_v52 }
  0x3f   :  { %478 = vmatpush.bf16.msra.mxu3 %v4257_v23  ;;  %v6091_v59 = vld [vmem:[#allocation6 + $0xa4] sm:$0xf0]  ;;  %v4261_v61 = vor.u32 %v6096_v53, %v4258_v54  ;;  %v4169_v62 = vor.u32 %v6075_v57, %v4168_v56  ;;  %v4160_v0 = vld [vmem:[#allocation6 + $0x10] sm:$0xf]  ;;  %v6073_v1 = vld [vmem:[#allocation6 + $0x14] sm:$0xf0]  ;;  %v211_v53 = vlaneseq }
  0x40   :  { %v4233_v63 = vor.u32 %v6091_v59, %v4232_v58  ;;  %v4224_v2 = vld [vmem:[#allocation6 + $0x90] sm:$0xf]  ;;  %v6089_v3 = vld [vmem:[#allocation6 + $0x94] sm:$0xf0]  ;;  %v4161_v4 = vor.u32 %v6073_v1, %v4160_v0  ;;  %v4152_v7 = vld [vmem:[#allocation6] sm:$0xf] }
  0x41   :  { %489 = vmatpush.bf16.msrb.mxu0 %v4213_v35  ;;  %502 = vmatpush.bf16.msrb.mxu1 %v4277_v36  ;;  %v220_v5 = vld [vmem:[#allocation3] sm:$0xff]  ;;  %v4225_v6 = vor.u32 %v6089_v3, %v4224_v2  ;;  %v6071_v8 = vld [vmem:[#allocation6 + $0x4] sm:$0xf0]  ;;  %v4216_v9 = vld [vmem:[#allocation6 + $0x80] sm:$0xf]  ;;  %vm259_vm2 = vcmask 64512  }
  0x42   :  { %466 = vmatpush.bf16.msra.mxu2 %v4185_v37  ;;  %v6087_v10 = vld [vmem:[#allocation6 + $0x84] sm:$0xf0]  ;;  %v297_v11 = vunpack.c.l.b16 %v220_v5  ;;  %v4153_v12 = vor.u32 %v6071_v8, %v4152_v7  ;;  %v298_v15 = vunpack.c.h.b16 %v220_v5  ;;  %v6078_v17 = vld [vmem:[#allocation6 + $0x44] sm:$0xf]  ;;  %v4186_v18 = vld [vmem:[#allocation6 + $0x48] sm:$0xf0] }
  0x43   :  { %479 = vmatpush.bf16.msra.mxu3 %v4249_v41  ;;  %v4217_v13 = vor.u32 %v6087_v10, %v4216_v9  ;;  %v6094_v19 = vld [vmem:[#allocation6 + $0xc4] sm:$0xf]  ;;  %v4189_v20 = vor.u32 %v6078_v17, %v4186_v18  ;;  %v4250_v21 = vld [vmem:[#allocation6 + $0xc8] sm:$0xf0]  ;;  %v6076_v23 = vld [vmem:[#allocation6 + $0x34] sm:$0xf] }
  0x44   :  { %v7018_v14 = vpack.c.b16 %v297_v11, %v297_v11  ;;  %v7021_v16 = vpack.c.b16 %v298_v15, %v298_v15  ;;  %v4253_v22 = vor.u32 %v6094_v19, %v4250_v21  ;;  %v4178_v24 = vld [vmem:[#allocation6 + $0x38] sm:$0xf0]  ;;  %v6092_v26 = vld [vmem:[#allocation6 + $0xb4] sm:$0xf]  ;;  %v6074_v29 = vld [vmem:[#allocation6 + $0x24] sm:$0xf] }
  0x45   :  { %490 = vmatpush.bf16.msrb.mxu0 %v4205_v48  ;;  %503 = vmatpush.bf16.msrb.mxu1 %v4269_v49  ;;  %v4181_v25 = vor.u32 %v6076_v23, %v4178_v24  ;;  %v4242_v27 = vld [vmem:[#allocation6 + $0xb8] sm:$0xf0]  ;;  %v4170_v30 = vld [vmem:[#allocation6 + $0x28] sm:$0xf0]  ;;  %v6090_v31 = vld [vmem:[#allocation6 + $0xa4] sm:$0xf] }
  0x46   :  { %467 = vmatpush.bf16.msra.mxu2 %v4177_v51  ;;  %v4245_v28 = vor.u32 %v6092_v26, %v4242_v27  ;;  %v4173_v32 = vor.u32 %v6074_v29, %v4170_v30  ;;  %v4234_v33 = vld [vmem:[#allocation6 + $0xa8] sm:$0xf0]  ;;  %v6072_v35 = vld [vmem:[#allocation6 + $0x14] sm:$0xf]  ;;  %v4162_v36 = vld [vmem:[#allocation6 + $0x18] sm:$0xf0] }
  0x47   :  { %480 = vmatpush.bf16.msra.mxu3 %v4241_v55  ;;  %v4237_v34 = vor.u32 %v6090_v31, %v4234_v33  ;;  %v6088_v37 = vld [vmem:[#allocation6 + $0x94] sm:$0xf]  ;;  %v4226_v38 = vld [vmem:[#allocation6 + $0x98] sm:$0xf0]  ;;  %v4165_v39 = vor.u32 %v6072_v35, %v4162_v36  ;;  %v6070_v41 = vld [vmem:[#allocation6 + $0x4] sm:$0xf] }
  0x48   :  { %v4229_v40 = vor.u32 %v6088_v37, %v4226_v38  ;;  %v4154_v42 = vld [vmem:[#allocation6 + $0x8] sm:$0xf0]  ;;  %v6086_v43 = vld [vmem:[#allocation6 + $0x84] sm:$0xf]  ;;  %v4336_v47 = vld [vmem:[#allocation11 + $0x70] sm:$0xf] }
  0x49   :  { %491 = vmatpush.bf16.msrb.mxu0 %v4197_v60  ;;  %504 = vmatpush.bf16.msrb.mxu1 %v4261_v61  ;;  %v4218_v44 = vld [vmem:[#allocation6 + $0x88] sm:$0xf0]  ;;  %v4157_v45 = vor.u32 %v6070_v41, %v4154_v42  ;;  %v6117_v48 = vld [vmem:[#allocation11 + $0x74] sm:$0xf0]  ;;  %v6115_v51 = vld [vmem:[#allocation11 + $0x64] sm:$0xf0] }
  0x4a   :  { %468 = vmatpush.bf16.msra.mxu2 %v4169_v62  ;;  %v4221_v46 = vor.u32 %v6086_v43, %v4218_v44  ;;  %v4337_v49 = vor.u32 %v6117_v48, %v4336_v47  ;;  %v4328_v50 = vld [vmem:[#allocation11 + $0x60] sm:$0xf]  ;;  %v4320_v54 = vld [vmem:[#allocation11 + $0x50] sm:$0xf]  ;;  %v6113_v55 = vld [vmem:[#allocation11 + $0x54] sm:$0xf0] }
  0x4b   :  { %481 = vmatpush.bf16.msra.mxu3 %v4233_v63  ;;  %v4329_v52 = vor.u32 %v6115_v51, %v4328_v50  ;;  %v4400_v56 = vld [vmem:[#allocation11 + $0xf0] sm:$0xf]  ;;  %v6133_v57 = vld [vmem:[#allocation11 + $0xf4] sm:$0xf0]  ;;  %v4321_v58 = vor.u32 %v6113_v55, %v4320_v54  ;;  %v212_v60 = vand.u32 127, %v211_v53  ;;  %v6888_v7 = vmov 0.0  }
  0x4c   :  { %v4401_v59 = vor.u32 %v6133_v57, %v4400_v56  ;;  %v4312_v61 = vld [vmem:[#allocation11 + $0x40] sm:$0xf]  ;;  %v6111_v62 = vld [vmem:[#allocation11 + $0x44] sm:$0xf0]  ;;  %v6116_v63 = vld [vmem:[#allocation11 + $0x74] sm:$0xf] }
  0x4d   :  { %492 = vmatpush.bf16.msrb.mxu0 %v4189_v20  ;;  %505 = vmatpush.bf16.msrb.mxu1 %v4253_v22  ;;  %v4338_v0 = vld [vmem:[#allocation11 + $0x78] sm:$0xf0]  ;;  %v6132_v1 = vld [vmem:[#allocation11 + $0xf4] sm:$0xf]  ;;  %v4304_v5 = vld [vmem:[#allocation11 + $0x30] sm:$0xf] }
  0x4e   :  { %469 = vmatpush.bf16.msra.mxu2 %v4161_v4  ;;  %v4402_v2 = vld [vmem:[#allocation11 + $0xf8] sm:$0xf0]  ;;  %v4313_v4 = vor.u32 %v6111_v62, %v4312_v61  ;;  %v4341_v9 = vor.u32 %v6116_v63, %v4338_v0  ;;  %v6112_v18 = vld [vmem:[#allocation11 + $0x54] sm:$0xf]  ;;  %v6110_v21 = vld [vmem:[#allocation11 + $0x44] sm:$0xf] }
  0x4f   :  { %482 = vmatpush.bf16.msra.mxu3 %v4225_v6  ;;  %v6109_v6 = vld [vmem:[#allocation11 + $0x34] sm:$0xf0]  ;;  %v4405_v10 = vor.u32 %v6132_v1, %v4402_v2  ;;  %v4322_v19 = vld [vmem:[#allocation11 + $0x58] sm:$0xf0]  ;;  %v4314_v22 = vld [vmem:[#allocation11 + $0x48] sm:$0xf0] }
  0x50   :  { %v4305_v15 = vor.u32 %v6109_v6, %v4304_v5  ;;  %v4325_v20 = vor.u32 %v6112_v18, %v4322_v19  ;;  %v4317_v23 = vor.u32 %v6110_v21, %v4314_v22  ;;  %v6108_v24 = vld [vmem:[#allocation11 + $0x34] sm:$0xf]  ;;  %v4296_v27 = vld [vmem:[#allocation11 + $0x20] sm:$0xf]  ;;  %v6131_v31 = vld [vmem:[#allocation11 + $0xe4] sm:$0xf0] }
  0x51   :  { %493 = vmatpush.bf16.msrb.mxu0 %v4181_v25  ;;  %506 = vmatpush.bf16.msrb.mxu1 %v4245_v28  ;;  %v4306_v25 = vld [vmem:[#allocation11 + $0x38] sm:$0xf0]  ;;  %v6107_v28 = vld [vmem:[#allocation11 + $0x24] sm:$0xf0]  ;;  %v4392_v29 = vld [vmem:[#allocation11 + $0xe0] sm:$0xf] }
  0x52   :  { %470 = vmatpush.bf16.msra.mxu2 %v4153_v12  ;;  %v6114_v12 = vld [vmem:[#allocation11 + $0x64] sm:$0xf]  ;;  %v4309_v26 = vor.u32 %v6108_v24, %v4306_v25  ;;  %v4297_v30 = vor.u32 %v6107_v28, %v4296_v27  ;;  %v4298_v33 = vld [vmem:[#allocation11 + $0x28] sm:$0xf0]  ;;  %v6129_v43 = vld [vmem:[#allocation11 + $0xd4] sm:$0xf0] }
  0x53   :  { %483 = vmatpush.bf16.msra.mxu3 %v4217_v13  ;;  %v4330_v13 = vld [vmem:[#allocation11 + $0x68] sm:$0xf0]  ;;  %v6130_v36 = vld [vmem:[#allocation11 + $0xe4] sm:$0xf]  ;;  %v6104_v44 = vld [vmem:[#allocation11 + $0x14] sm:$0xf] }
  0x54   :  { %v4333_v17 = vor.u32 %v6114_v12, %v4330_v13  ;;  %v4394_v37 = vld [vmem:[#allocation11 + $0xe8] sm:$0xf0]  ;;  %v6128_v47 = vld [vmem:[#allocation11 + $0xd4] sm:$0xf]  ;;  %v4280_v51 = vld [vmem:[#allocation11] sm:$0xf] }
  0x55   :  { %471 = vmatmul.bf16.vlgmr.msra.gmra.mxu2 %v7018_v14  ;;  %494 = vmatpush.bf16.msrb.mxu0 %v4173_v32  ;;  %v6106_v32 = vld [vmem:[#allocation11 + $0x24] sm:$0xf]  ;;  %v4376_v53 = vld [vmem:[#allocation11 + $0xc0] sm:$0xf]  ;;  %v6127_v55 = vld [vmem:[#allocation11 + $0xc4] sm:$0xf0] }
  0x56   :  { %484 = vmatmul.bf16.vlgmr.msra.gmra.mxu3 %v7021_v16  ;;  %507 = vmatpush.bf16.msrb.mxu1 %v4237_v34  ;;  %v4393_v34 = vor.u32 %v6131_v31, %v4392_v29  ;;  %v4301_v35 = vor.u32 %v6106_v32, %v4298_v33  ;;  %v6102_v56 = vld [vmem:[#allocation11 + $0x4] sm:$0xf]  ;;  %v4282_v57 = vld [vmem:[#allocation11 + $0x8] sm:$0xf0]  ;;  %v4368_v0 = vld [vmem:[#allocation11 + $0xb0] sm:$0xf] }
  0x57   :  { %725 = vmatpush.bf16.msrb.mxu2 %v4337_v49  ;;  %738 = vmatpush.bf16.msrb.mxu3 %v4401_v59  ;;  %v4386_v49 = vld [vmem:[#allocation11 + $0xd8] sm:$0xf0]  ;;  %v4285_v59 = vor.u32 %v6102_v56, %v4282_v57  ;;  %v4378_v61 = vld [vmem:[#allocation11 + $0xc8] sm:$0xf0]  ;;  %v6125_v1 = vld [vmem:[#allocation11 + $0xb4] sm:$0xf0] }
  0x58   :  { %v4389_v50 = vor.u32 %v6128_v47, %v4386_v49  ;;  %v6124_v2 = vld [vmem:[#allocation11 + $0xb4] sm:$0xf]  ;;  %v4352_v13 = vld [vmem:[#allocation11 + $0x90] sm:$0xf]  ;;  %v4354_v19 = vld [vmem:[#allocation11 + $0x98] sm:$0xf0] }
  0x59   :  { %495 = vmatpush.bf16.msrb.mxu0 %v4165_v39  ;;  %v4397_v39 = vor.u32 %v6130_v36, %v4394_v37  ;;  %v4344_v21 = vld [vmem:[#allocation11 + $0x80] sm:$0xf]  ;;  %v6119_v22 = vld [vmem:[#allocation11 + $0x84] sm:$0xf0]  ;;  %v4346_v25 = vld [vmem:[#allocation11 + $0x88] sm:$0xf0] }
  0x5a   :  { %508 = vmatpush.bf16.msrb.mxu1 %v4229_v40  ;;  %v4384_v40 = vld [vmem:[#allocation11 + $0xd0] sm:$0xf]  ;;  %v4345_v24 = vor.u32 %v6119_v22, %v4344_v21  ;;  %v6165_v28 = vld [vmem:[#allocation11 + $0x1f4] sm:$0xf0]  ;;  %v6164_v29 = vld [vmem:[#allocation11 + $0x1f4] sm:$0xf] }
  0x5b   :  { %726 = vmatpush.bf16.msrb.mxu2 %v4329_v52  ;;  %739 = vmatpush.bf16.msrb.mxu3 %v4393_v34  ;;  %v6103_v52 = vld [vmem:[#allocation11 + $0x4] sm:$0xf0]  ;;  %v4528_v27 = vld [vmem:[#allocation11 + $0x1f0] sm:$0xf]  ;;  %v4530_v32 = vld [vmem:[#allocation11 + $0x1f8] sm:$0xf0] }
  0x5c   :  { %v4281_v54 = vor.u32 %v6103_v52, %v4280_v51  ;;  %v4529_v31 = vor.u32 %v6165_v28, %v4528_v27  ;;  %v4520_v33 = vld [vmem:[#allocation11 + $0x1e0] sm:$0xf]  ;;  %v6163_v34 = vld [vmem:[#allocation11 + $0x1e4] sm:$0xf0]  ;;  %v6162_v36 = vld [vmem:[#allocation11 + $0x1e4] sm:$0xf] }
  0x5d   :  { %496 = vmatpush.bf16.msrb.mxu0 %v4157_v45  ;;  %v4385_v45 = vor.u32 %v6129_v43, %v4384_v40  ;;  %v4522_v37 = vld [vmem:[#allocation11 + $0x1e8] sm:$0xf0]  ;;  %v6148_v40 = vld [vmem:[#allocation11 + $0x174] sm:$0xf]  ;;  %v6145_v21 = vld [vmem:[#allocation11 + $0x154] sm:$0xf0] }
  0x5e   :  { %509 = vmatpush.bf16.msrb.mxu1 %v4221_v46  ;;  %v4290_v46 = vld [vmem:[#allocation11 + $0x18] sm:$0xf0]  ;;  %v4525_v43 = vor.u32 %v6162_v36, %v4522_v37  ;;  %v6144_v22 = vld [vmem:[#allocation11 + $0x154] sm:$0xf]  ;;  %v6157_v27 = vld [vmem:[#allocation11 + $0x1b4] sm:$0xf0] }
  0x5f   :  { %727 = vmatpush.bf16.msrb.mxu2 %v4321_v58  ;;  %v4293_v48 = vor.u32 %v6104_v44, %v4290_v46  ;;  %740 = vmatpush.bf16.msrb.mxu3 %v4385_v45  ;;  %v4377_v58 = vor.u32 %v6127_v55, %v4376_v53  ;;  %v6156_v28 = vld [vmem:[#allocation11 + $0x1b4] sm:$0xf]  ;;  %v4442_v36 = vld [vmem:[#allocation11 + $0x148] sm:$0xf0]  ;;  %v4488_v37 = vld [vmem:[#allocation11 + $0x1a0] sm:$0xf] }
  0x60   :  { %s6889_s0 = smov [#allocation21]   ;;  %s4131_s4 = sshll.u32 %s7056_s14, 4  ;;  %vm4120_vm3 = vcmask 7168   ;;  %s4132_s4 = int_to_ptr.hbm [resolvable:$true] %s4131_s4 }
  0x61   :  { %s4129_s23 = sshll.u32 %s6889_s0, 4  ;;  %s4130_s23 = int_to_ptr.vmem [resolvable:$true] %s4129_s23 }
  0x63   :  { %728 = vmatpush.bf16.msrb.mxu2 %v4313_v4  ;;  %741 = vmatpush.bf16.msrb.mxu3 %v4377_v58  ;;  %v4370_v4 = vld [vmem:[#allocation11 + $0xb8] sm:$0xf0] }
  0x64   :  { %v4373_v6 = vor.u32 %v6124_v2, %v4370_v4  ;;  %v6160_v2 = vld [vmem:[#allocation11 + $0x1d4] sm:$0xf]  ;;  %v4514_v4 = vld [vmem:[#allocation11 + $0x1d8] sm:$0xf0] }
  0x67   :  { %729 = vmatpush.bf16.msrb.mxu2 %v4305_v15  ;;  %v6121_v15 = vld [vmem:[#allocation11 + $0x94] sm:$0xf0] }
  0x68   :  { %v4353_v18 = vor.u32 %v6121_v15, %v4352_v13  ;;  %v6159_v13 = vld [vmem:[#allocation11 + $0x1c4] sm:$0xf0]  ;;  %v6158_v15 = vld [vmem:[#allocation11 + $0x1c4] sm:$0xf] }
  0x6b   :  { %730 = vmatpush.bf16.msrb.mxu2 %v4297_v30  ;;  %v515_v30 = vld [vmem:[#allocation9] sm:$0x3] }
  0x6c   :  { %v517_v49 = vperm.slane %v515_v30, 0 }
  0xa6   :  { %v216_v3 = vpop.permute.xlu0 %215 }
  0xa7   :  { %vm217_vm1 = vcmp.eq.s32.totalorder %v212_v60, %v216_v3  ;;  %v6126_v60 = vld [vmem:[#allocation11 + $0xc4] sm:$0xf]  ;;  %v4369_v3 = vor.u32 %v6125_v1, %v4368_v0  ;;  %v6161_v1 = vld [vmem:[#allocation11 + $0x1d4] sm:$0xf0] }
  0xa8   :  { %v218_v8 = vsel %vm217_vm1, 1.0, %v6888_v7  ;;  %v4381_v62 = vor.u32 %v6126_v60, %v4378_v61  ;;  %v4360_v7 = vld [vmem:[#allocation11 + $0xa0] sm:$0xf] }
  0xa9   :  { %v219_v11 = vpack.c.bf16 %v218_v8, %v218_v8  ;;  %742 = vmatpush.bf16.msrb.mxu3 %v4369_v3  ;;  %v6123_v8 = vld [vmem:[#allocation11 + $0xa4] sm:$0xf0] }
  0xab   :  { %4148 = vmatmul.msk.bf16.vlgmr.msra.gmra.mxu0 %vm259_vm2, %v219_v11  ;;  %4149 = vmatmul.msk.bf16.vlgmr.msra.gmra.mxu1 %vm259_vm2, %v219_v11  ;;  %v4362_v11 = vld [vmem:[#allocation11 + $0xa8] sm:$0xf0] }
  0xac   :  { %751 = vmatpush.bf16.msra.mxu0 %v4341_v9  ;;  %764 = vmatpush.bf16.msra.mxu1 %v4405_v10  ;;  %v6122_v9 = vld [vmem:[#allocation11 + $0xa4] sm:$0xf]  ;;  %v4361_v10 = vor.u32 %v6123_v8, %v4360_v7  ;;  %v6147_v7 = vld [vmem:[#allocation11 + $0x164] sm:$0xf0] }
  0xad   :  { %v4365_v12 = vor.u32 %v6122_v9, %v4362_v11  ;;  %v6146_v8 = vld [vmem:[#allocation11 + $0x164] sm:$0xf] }
  0xae   :  { %743 = vmatpush.bf16.msrb.mxu3 %v4361_v10  ;;  %v4458_v10 = vld [vmem:[#allocation11 + $0x168] sm:$0xf0] }
  0xaf   :  { %v4461_v11 = vor.u32 %v6146_v8, %v4458_v10  ;;  %v4408_v8 = vld [vmem:[#allocation11 + $0x100] sm:$0xf]  ;;  %v6134_v10 = vld [vmem:[#allocation11 + $0x104] sm:$0xf] }
  0xb0   :  { %752 = vmatpush.bf16.msra.mxu0 %v4333_v17  ;;  %765 = vmatpush.bf16.msra.mxu1 %v4397_v39  ;;  %v6120_v17 = vld [vmem:[#allocation11 + $0x94] sm:$0xf]  ;;  %v4464_v39 = vld [vmem:[#allocation11 + $0x170] sm:$0xf] }
  0xb2   :  { %744 = vmatpush.bf16.msrb.mxu3 %v4353_v18  ;;  %v4506_v18 = vld [vmem:[#allocation11 + $0x1c8] sm:$0xf0] }
  0xb4   :  { %753 = vmatpush.bf16.msra.mxu0 %v4325_v20  ;;  %766 = vmatpush.bf16.msra.mxu1 %v4389_v50  ;;  %v4357_v20 = vor.u32 %v6120_v17, %v4354_v19  ;;  %v4509_v19 = vor.u32 %v6158_v15, %v4506_v18  ;;  %v4656_v15 = vld [vmem:[#allocation11 + $0x2f0] sm:$0xf]  ;;  %v6196_v18 = vld [vmem:[#allocation11 + $0x2f4] sm:$0xf] }
  0xb6   :  { %745 = vmatpush.bf16.msrb.mxu3 %v4345_v24  ;;  %v4450_v24 = vld [vmem:[#allocation11 + $0x158] sm:$0xf0] }
  0xb8   :  { %754 = vmatpush.bf16.msra.mxu0 %v4317_v23  ;;  %767 = vmatpush.bf16.msra.mxu1 %v4381_v62  ;;  %v6118_v23 = vld [vmem:[#allocation11 + $0x84] sm:$0xf] }
  0xba   :  { %994 = vmatpush.bf16.msra.mxu3 %v4529_v31 }
  0xbb   :  { %497 = vmatmul.bf16.vlgmr.msrb.gmra.mxu0 %v7018_v14  ;;  %510 = vmatmul.bf16.vlgmr.msrb.gmra.mxu1 %v7021_v16  ;;  %v4288_v14 = vld [vmem:[#allocation11 + $0x10] sm:$0xf]  ;;  %v6105_v16 = vld [vmem:[#allocation11 + $0x14] sm:$0xf0] }
  0xbc   :  { %755 = vmatpush.bf16.msra.mxu0 %v4309_v26  ;;  %v4289_v42 = vor.u32 %v6105_v16, %v4288_v14  ;;  %768 = vmatpush.bf16.msra.mxu1 %v4373_v6  ;;  %v4349_v26 = vor.u32 %v6118_v23, %v4346_v25  ;;  %v4521_v14 = vor.u32 %v6163_v34, %v4520_v33  ;;  %v6149_v16 = vld [vmem:[#allocation11 + $0x174] sm:$0xf0]  ;;  %v4456_v6 = vld [vmem:[#allocation11 + $0x160] sm:$0xf]  ;;  %v6143_v33 = vld [vmem:[#allocation11 + $0x144] sm:$0xf0] }
  0xbd   :  { %v4465_v44 = vor.u32 %v6149_v16, %v4464_v39  ;;  %v4457_v9 = vor.u32 %v6147_v7, %v4456_v6  ;;  %v4453_v25 = vor.u32 %v6144_v22, %v4450_v24  ;;  %v6142_v34 = vld [vmem:[#allocation11 + $0x144] sm:$0xf]  ;;  %v6155_v39 = vld [vmem:[#allocation11 + $0x1a4] sm:$0xf0]  ;;  %v4418_v6 = vld [vmem:[#allocation11 + $0x118] sm:$0xf0] }
  0xbe   :  { %731 = vmatpush.bf16.msrb.mxu2 %v4289_v42  ;;  %v4466_v42 = vld [vmem:[#allocation11 + $0x178] sm:$0xf0]  ;;  %995 = vmatpush.bf16.msra.mxu3 %v4521_v14  ;;  %v4445_v14 = vor.u32 %v6142_v34, %v4442_v36  ;;  %v4489_v16 = vor.u32 %v6155_v39, %v4488_v37  ;;  %v6195_v22 = vld [vmem:[#allocation11 + $0x2e4] sm:$0xf0]  ;;  %v6193_v36 = vld [vmem:[#allocation11 + $0x2d4] sm:$0xf0] }
  0xbf   :  { %v4469_v45 = vor.u32 %v6148_v40, %v4466_v42  ;;  %v6154_v40 = vld [vmem:[#allocation11 + $0x1a4] sm:$0xf]  ;;  %v4490_v42 = vld [vmem:[#allocation11 + $0x1a8] sm:$0xf0]  ;;  %v6192_v37 = vld [vmem:[#allocation11 + $0x2d4] sm:$0xf] }
  0xc0   :  { %756 = vmatpush.bf16.msra.mxu0 %v4301_v35  ;;  %769 = vmatpush.bf16.msra.mxu1 %v4365_v12  ;;  %v4533_v35 = vor.u32 %v6164_v29, %v4530_v32  ;;  %v4504_v12 = vld [vmem:[#allocation11 + $0x1c0] sm:$0xf]  ;;  %v4642_v39 = vld [vmem:[#allocation11 + $0x2d8] sm:$0xf0] }
  0xc1   :  { %v4505_v17 = vor.u32 %v6159_v13, %v4504_v12  ;;  %v4440_v32 = vld [vmem:[#allocation11 + $0x140] sm:$0xf]  ;;  %v4410_v12 = vld [vmem:[#allocation11 + $0x108] sm:$0xf0] }
  0xc2   :  { %732 = vmatpush.bf16.msrb.mxu2 %v4281_v54  ;;  %v4413_v13 = vor.u32 %v6134_v10, %v4410_v12  ;;  %v6189_v12 = vld [vmem:[#allocation11 + $0x2b4] sm:$0xf0] }
  0xc4   :  { %757 = vmatpush.bf16.msra.mxu0 %v4293_v48  ;;  %770 = vmatpush.bf16.msra.mxu1 %v4357_v20  ;;  %v4448_v20 = vld [vmem:[#allocation11 + $0x150] sm:$0xf] }
  0xc5   :  { %v4449_v23 = vor.u32 %v6145_v21, %v4448_v20  ;;  %v4658_v20 = vld [vmem:[#allocation11 + $0x2f8] sm:$0xf0]  ;;  %v4648_v21 = vld [vmem:[#allocation11 + $0x2e0] sm:$0xf] }
  0xc6   :  { %981 = vmatpush.bf16.msra.mxu2 %v4465_v44  ;;  %v4432_v44 = vld [vmem:[#allocation11 + $0x130] sm:$0xf]  ;;  %v4661_v24 = vor.u32 %v6196_v18, %v4658_v20  ;;  %v6175_v20 = vld [vmem:[#allocation11 + $0x244] sm:$0xf0] }
  0xc8   :  { %758 = vmatpush.bf16.msra.mxu0 %v4285_v59  ;;  %771 = vmatpush.bf16.msra.mxu1 %v4349_v26  ;;  %v518_v59 = vperm.slane %v515_v30, 1  ;;  %v4496_v26 = vld [vmem:[#allocation11 + $0x1b0] sm:$0xf]  ;;  %v4498_v30 = vld [vmem:[#allocation11 + $0x1b8] sm:$0xf0] }
  0xc9   :  { %v4497_v29 = vor.u32 %v6157_v27, %v4496_v26  ;;  %v4501_v31 = vor.u32 %v6156_v28, %v4498_v30  ;;  %v4650_v26 = vld [vmem:[#allocation11 + $0x2e8] sm:$0xf0]  ;;  %v4592_v27 = vld [vmem:[#allocation11 + $0x270] sm:$0xf]  ;;  %v4649_v28 = vor.u32 %v6195_v22, %v4648_v21  ;;  %v6180_v30 = vld [vmem:[#allocation11 + $0x274] sm:$0xf] }
  0xca   :  { %982 = vmatpush.bf16.msra.mxu2 %v4457_v9  ;;  %v6135_v9 = vld [vmem:[#allocation11 + $0x104] sm:$0xf0]  ;;  %v6174_v21 = vld [vmem:[#allocation11 + $0x244] sm:$0xf] }
  0xcc   :  { %1020 = vmatpush.bf16.msrb.mxu1 %v4533_v35  ;;  %1007 = vmatpush.bf16.msrb.mxu0 %v4469_v45  ;;  %v4441_v35 = vor.u32 %v6143_v33, %v4440_v32  ;;  %v6141_v45 = vld [vmem:[#allocation11 + $0x134] sm:$0xf0] }
  0xce   :  { %983 = vmatpush.bf16.msra.mxu2 %v4449_v23 }
  0xd0   :  { %1021 = vmatpush.bf16.msrb.mxu1 %v4525_v43  ;;  %1008 = vmatpush.bf16.msrb.mxu0 %v4461_v11  ;;  %v4493_v43 = vor.u32 %v6154_v40, %v4490_v42  ;;  %v4409_v11 = vor.u32 %v6135_v9, %v4408_v8  ;;  %v6178_v42 = vld [vmem:[#allocation11 + $0x264] sm:$0xf] }
  0xd2   :  { %984 = vmatpush.bf16.msra.mxu2 %v4441_v35  ;;  %v4640_v35 = vld [vmem:[#allocation11 + $0x2d0] sm:$0xf] }
  0xd4   :  { %1009 = vmatpush.bf16.msrb.mxu0 %v4453_v25  ;;  %v6194_v25 = vld [vmem:[#allocation11 + $0x2e4] sm:$0xf] }
  0xd5   :  { %v4653_v32 = vor.u32 %v6194_v25, %v4650_v26  ;;  %v6187_v25 = vld [vmem:[#allocation11 + $0x2a4] sm:$0xf0] }
  0xd8   :  { %v7026_v38 = vpop.f32.mrf.mxu2  ;;  %1010 = vmatpush.bf16.msrb.mxu0 %v4445_v14  ;;  %v4584_v14 = vld [vmem:[#allocation11 + $0x260] sm:$0xf] }
  0xd9   :  { %v7028_v41 = vpop.f32.mrf.mxu3 }
  0xe0   :  { %v474_v63 = vpop.f32.mrf.mxu2 }
  0xe1   :  { %v487_v5 = vpop.f32.mrf.mxu3 }
  0xe2   :  { %v4517_v5 = vor.u32 %v6160_v2, %v4514_v4  ;;  %v4416_v2 = vld [vmem:[#allocation11 + $0x110] sm:$0xf]  ;;  %v6136_v4 = vld [vmem:[#allocation11 + $0x114] sm:$0xf] }
  0xe3   :  { %v4421_v7 = vor.u32 %v6136_v4, %v4418_v6 }
  0xe4   :  { %1022 = vmatpush.bf16.msrb.mxu1 %v4517_v5 }
  0xe8   :  { %1023 = vmatpush.bf16.msrb.mxu1 %v4509_v19 }
  0xec   :  { %1024 = vmatpush.bf16.msrb.mxu1 %v4501_v31  ;;  %v4594_v31 = vld [vmem:[#allocation11 + $0x278] sm:$0xf0] }
  0xed   :  { %v4597_v34 = vor.u32 %v6180_v30, %v4594_v31  ;;  %v4560_v31 = vld [vmem:[#allocation11 + $0x230] sm:$0xf] }
  0xf0   :  { %1025 = vmatpush.bf16.msrb.mxu1 %v4493_v43  ;;  %v4586_v43 = vld [vmem:[#allocation11 + $0x268] sm:$0xf0] }
 0x128   :  { %v279_v46 = vpop.f32.mrf.mxu0  ;;  %v292_v47 = vpop.f32.mrf.mxu1 }
 0x129   :  { %v473_v48 = vadd.f32 %v7026_v38, %v279_v46  ;;  %v6140_v46 = vld [vmem:[#allocation11 + $0x134] sm:$0xf] }
 0x12b   :  { %v486_v50 = vadd.f32 %v7028_v41, %v473_v48  ;;  %v4512_v41 = vld [vmem:[#allocation11 + $0x1d0] sm:$0xf]  ;;  %v4434_v48 = vld [vmem:[#allocation11 + $0x138] sm:$0xf0] }
 0x12c   :  { %v4513_v3 = vor.u32 %v6161_v1, %v4512_v41  ;;  %v4474_v41 = vld [vmem:[#allocation11 + $0x188] sm:$0xf0] }
 0x12d   :  { %v521_v51 = vadd.f32 %v517_v49, %v486_v50  ;;  %v4437_v49 = vor.u32 %v6140_v46, %v4434_v48  ;;  %v4480_v50 = vld [vmem:[#allocation11 + $0x190] sm:$0xf]  ;;  %v4632_v46 = vld [vmem:[#allocation11 + $0x2c0] sm:$0xf] }
 0x12e   :  { %996 = vmatpush.bf16.msra.mxu3 %v4513_v3  ;;  %v6137_v3 = vld [vmem:[#allocation11 + $0x114] sm:$0xf0] }
 0x12f   :  { %v523_v52 = vmax.f32 %v521_v51, 0.0  ;;  %v6153_v51 = vld [vmem:[#allocation11 + $0x194] sm:$0xf0]  ;;  %1011 = vmatpush.bf16.msrb.mxu0 %v4437_v49  ;;  %v4417_v5 = vor.u32 %v6137_v3, %v4416_v2  ;;  %v4645_v49 = vor.u32 %v6192_v37, %v4642_v39  ;;  %v4608_v37 = vld [vmem:[#allocation11 + $0x290] sm:$0xf] }
 0x130   :  { %v281_v53 = vpop.f32.mrf.mxu0  ;;  %v294_v54 = vpop.f32.mrf.mxu1  ;;  %v6185_v39 = vld [vmem:[#allocation11 + $0x294] sm:$0xf0] }
 0x131   :  { %v525_v55 = vpack.c.bf16 %v523_v52, %v523_v52  ;;  %v6152_v52 = vld [vmem:[#allocation11 + $0x194] sm:$0xf]  ;;  %v4481_v53 = vor.u32 %v6153_v51, %v4480_v50  ;;  %v4482_v54 = vld [vmem:[#allocation11 + $0x198] sm:$0xf0]  ;;  %v4576_v50 = vld [vmem:[#allocation11 + $0x250] sm:$0xf] }
 0x132   :  { %997 = vmatpush.bf16.msra.mxu3 %v4505_v17  ;;  %v6197_v17 = vld [vmem:[#allocation11 + $0x2f4] sm:$0xf0] }
 0x133   :  { %733 = vmatmul.bf16.vlgmr.msrb.gmra.mxu2 %v525_v55  ;;  %759 = vmatmul.bf16.vlgmr.msra.gmra.mxu0 %v525_v55  ;;  %v4485_v55 = vor.u32 %v6152_v52, %v4482_v54  ;;  %v4657_v19 = vor.u32 %v6197_v17, %v4656_v15  ;;  %v6177_v51 = vld [vmem:[#allocation11 + $0x254] sm:$0xf0]  ;;  %v6176_v52 = vld [vmem:[#allocation11 + $0x254] sm:$0xf]  ;;  %v4634_v54 = vld [vmem:[#allocation11 + $0x2c8] sm:$0xf0] }
 0x134   :  { %v4626_v17 = vld [vmem:[#allocation11 + $0x2b8] sm:$0xf0] }
 0x135   :  { %1026 = vmatpush.bf16.msrb.mxu1 %v4485_v55  ;;  %v4578_v55 = vld [vmem:[#allocation11 + $0x258] sm:$0xf0] }
 0x136   :  { %998 = vmatpush.bf16.msra.mxu3 %v4497_v29  ;;  %v6181_v29 = vld [vmem:[#allocation11 + $0x274] sm:$0xf0] }
 0x137   :  { %v4593_v33 = vor.u32 %v6181_v29, %v4592_v27  ;;  %v4618_v29 = vld [vmem:[#allocation11 + $0x2a8] sm:$0xf0] }
 0x138   :  { %v498_v56 = vpop.f32.mrf.mxu0  ;;  %v511_v57 = vpop.f32.mrf.mxu1 }
 0x139   :  { %v499_v58 = vadd.f32 %v498_v56, %v292_v47  ;;  %v4433_v47 = vor.u32 %v6141_v45, %v4432_v44  ;;  %v4424_v56 = vld [vmem:[#allocation11 + $0x120] sm:$0xf]  ;;  %v4641_v44 = vor.u32 %v6193_v36, %v4640_v35  ;;  %v4589_v45 = vor.u32 %v6178_v42, %v4586_v43  ;;  %v4562_v35 = vld [vmem:[#allocation11 + $0x238] sm:$0xf0] }
 0x13a   :  { %999 = vmatpush.bf16.msra.mxu3 %v4489_v16  ;;  %v6179_v16 = vld [vmem:[#allocation11 + $0x264] sm:$0xf0]  ;;  %v4552_v43 = vld [vmem:[#allocation11 + $0x220] sm:$0xf] }
 0x13b   :  { %v512_v60 = vadd.f32 %v511_v57, %v499_v58  ;;  %985 = vmatpush.bf16.msra.mxu2 %v4433_v47  ;;  %v6139_v57 = vld [vmem:[#allocation11 + $0x124] sm:$0xf0]  ;;  %v6138_v58 = vld [vmem:[#allocation11 + $0x124] sm:$0xf]  ;;  %v4585_v40 = vor.u32 %v6179_v16, %v4584_v14  ;;  %v4609_v14 = vor.u32 %v6185_v39, %v4608_v37  ;;  %v6184_v16 = vld [vmem:[#allocation11 + $0x294] sm:$0xf] }
 0x13c   :  { %v6191_v47 = vld [vmem:[#allocation11 + $0x2c4] sm:$0xf0]  ;;  %v6208_v37 = vld [vmem:[#allocation11 + $0x354] sm:$0xf]  ;;  %v6222_v39 = vld [vmem:[#allocation11 + $0x3c4] sm:$0xf] }
 0x13d   :  { %v522_v38 = vadd.f32 %v518_v59, %v512_v60  ;;  %v4425_v59 = vor.u32 %v6139_v57, %v4424_v56  ;;  %v4426_v60 = vld [vmem:[#allocation11 + $0x128] sm:$0xf0]  ;;  %v559_v56 = vld [vmem:[#allocation12] sm:$0x3] }
 0x13e   :  { %1000 = vmatpush.bf16.msra.mxu3 %v4481_v53  ;;  %v6190_v53 = vld [vmem:[#allocation11 + $0x2c4] sm:$0xf] }
 0x13f   :  { %v524_v61 = vmax.f32 %v522_v38, 0.0  ;;  %v4429_v38 = vor.u32 %v6138_v58, %v4426_v60  ;;  %986 = vmatpush.bf16.msra.mxu2 %v4425_v59  ;;  %v4577_v58 = vor.u32 %v6177_v51, %v4576_v50  ;;  %v4581_v59 = vor.u32 %v6176_v52, %v4578_v55  ;;  %v6183_v50 = vld [vmem:[#allocation11 + $0x284] sm:$0xf0]  ;;  %v6182_v51 = vld [vmem:[#allocation11 + $0x284] sm:$0xf] }
 0x140   :  { %v500_v62 = vpop.f32.mrf.mxu0  ;;  %v513_v63 = vpop.f32.mrf.mxu1  ;;  %v4633_v60 = vor.u32 %v6191_v47, %v4632_v46  ;;  %v4554_v47 = vld [vmem:[#allocation11 + $0x228] sm:$0xf0]  ;;  %v4544_v55 = vld [vmem:[#allocation11 + $0x210] sm:$0xf] }
 0x141   :  { %v526_v0 = vpack.c.bf16 %v524_v61, %v524_v61  ;;  %v4472_v61 = vld [vmem:[#allocation11 + $0x180] sm:$0xf]  ;;  %v6151_v62 = vld [vmem:[#allocation11 + $0x184] sm:$0xf0]  ;;  %v6150_v63 = vld [vmem:[#allocation11 + $0x184] sm:$0xf]  ;;  %1012 = vmatpush.bf16.msrb.mxu0 %v4429_v38  ;;  %v4637_v38 = vor.u32 %v6190_v53, %v4634_v54 }
 0x142   :  { %v4477_v1 = vor.u32 %v6150_v63, %v4474_v41  ;;  %v561_v41 = vperm.slane %v559_v56, 0  ;;  %v4602_v53 = vld [vmem:[#allocation11 + $0x288] sm:$0xf0] }
 0x143   :  { %746 = vmatmul.bf16.vlgmr.msrb.gmra.mxu3 %v526_v0  ;;  %772 = vmatmul.bf16.vlgmr.msra.gmra.mxu1 %v526_v0  ;;  %v4473_v0 = vor.u32 %v6151_v62, %v4472_v61  ;;  %v562_v61 = vperm.slane %v559_v56, 1  ;;  %v4605_v54 = vor.u32 %v6182_v51, %v4602_v53  ;;  %v6169_v56 = vld [vmem:[#allocation11 + $0x214] sm:$0xf0] }
 0x144   :  { %1027 = vmatpush.bf16.msrb.mxu1 %v4477_v1  ;;  %987 = vmatpush.bf16.msra.mxu2 %v4417_v5 }
 0x145   :  { %1001 = vmatpush.bf16.msra.mxu3 %v4473_v0  ;;  %1013 = vmatpush.bf16.msrb.mxu0 %v4421_v7 }
 0x148   :  { %988 = vmatpush.bf16.msra.mxu2 %v4409_v11  ;;  %1276 = vmatpush.bf16.msra.mxu1 %v4661_v24  ;;  %v4624_v11 = vld [vmem:[#allocation11 + $0x2b0] sm:$0xf]  ;;  %v4616_v24 = vld [vmem:[#allocation11 + $0x2a0] sm:$0xf] }
 0x149   :  { %1014 = vmatpush.bf16.msrb.mxu0 %v4413_v13  ;;  %1250 = vmatpush.bf16.msrb.mxu3 %v4657_v19  ;;  %v6188_v13 = vld [vmem:[#allocation11 + $0x2b4] sm:$0xf]  ;;  %v4625_v15 = vor.u32 %v6189_v12, %v4624_v11  ;;  %v4568_v19 = vld [vmem:[#allocation11 + $0x240] sm:$0xf]  ;;  %v4617_v27 = vor.u32 %v6187_v25, %v4616_v24  ;;  %v4720_v11 = vld [vmem:[#allocation11 + $0x370] sm:$0xf] }
 0x14a   :  { %v4629_v18 = vor.u32 %v6188_v13, %v4626_v17  ;;  %v4569_v22 = vor.u32 %v6175_v20, %v4568_v19  ;;  %v6213_v13 = vld [vmem:[#allocation11 + $0x374] sm:$0xf0]  ;;  %v4722_v17 = vld [vmem:[#allocation11 + $0x378] sm:$0xf0]  ;;  %v4712_v25 = vld [vmem:[#allocation11 + $0x360] sm:$0xf] }
 0x14b   :  { %v4721_v19 = vor.u32 %v6213_v13, %v4720_v11  ;;  %v4770_v24 = vld [vmem:[#allocation11 + $0x3d8] sm:$0xf0]  ;;  %v6218_v13 = vld [vmem:[#allocation11 + $0x3a4] sm:$0xf] }
 0x14c   :  { %1237 = vmatpush.bf16.msrb.mxu2 %v4593_v33  ;;  %1277 = vmatpush.bf16.msra.mxu1 %v4653_v32  ;;  %v6173_v32 = vld [vmem:[#allocation11 + $0x234] sm:$0xf0]  ;;  %v6172_v33 = vld [vmem:[#allocation11 + $0x234] sm:$0xf] }
 0x14d   :  { %1263 = vmatpush.bf16.msra.mxu0 %v4597_v34  ;;  %1251 = vmatpush.bf16.msrb.mxu3 %v4649_v28  ;;  %v6186_v28 = vld [vmem:[#allocation11 + $0x2a4] sm:$0xf]  ;;  %v4561_v34 = vor.u32 %v6173_v32, %v4560_v31  ;;  %v4565_v36 = vor.u32 %v6172_v33, %v4562_v35  ;;  %v4760_v32 = vld [vmem:[#allocation11 + $0x3c0] sm:$0xf]  ;;  %v6223_v33 = vld [vmem:[#allocation11 + $0x3c4] sm:$0xf0] }
 0x14e   :  { %v4621_v30 = vor.u32 %v6186_v28, %v4618_v29  ;;  %v6210_v28 = vld [vmem:[#allocation11 + $0x364] sm:$0xf]  ;;  %v4714_v29 = vld [vmem:[#allocation11 + $0x368] sm:$0xf0]  ;;  %v4704_v35 = vld [vmem:[#allocation11 + $0x350] sm:$0xf] }
 0x14f   :  { %v4717_v31 = vor.u32 %v6210_v28, %v4714_v29  ;;  %v4738_v28 = vld [vmem:[#allocation11 + $0x398] sm:$0xf0] }
 0x150   :  { %1238 = vmatpush.bf16.msrb.mxu2 %v4585_v40  ;;  %1278 = vmatpush.bf16.msra.mxu1 %v4645_v49  ;;  %v4610_v40 = vld [vmem:[#allocation11 + $0x298] sm:$0xf0]  ;;  %v4600_v49 = vld [vmem:[#allocation11 + $0x280] sm:$0xf] }
 0x151   :  { %1264 = vmatpush.bf16.msra.mxu0 %v4589_v45  ;;  %1252 = vmatpush.bf16.msrb.mxu3 %v4641_v44  ;;  %v4613_v42 = vor.u32 %v6184_v16, %v4610_v40  ;;  %v6171_v44 = vld [vmem:[#allocation11 + $0x224] sm:$0xf0]  ;;  %v6170_v45 = vld [vmem:[#allocation11 + $0x224] sm:$0xf]  ;;  %v4601_v52 = vor.u32 %v6183_v50, %v4600_v49  ;;  %v4706_v16 = vld [vmem:[#allocation11 + $0x358] sm:$0xf0] }
 0x152   :  { %v4553_v46 = vor.u32 %v6171_v44, %v4552_v43  ;;  %v815_v44 = vld [vmem:[#allocation12 + $0x2] sm:$0x3] }
 0x153   :  { %v817_v53 = vperm.slane %v815_v44, 0 }
 0x154   :  { %1239 = vmatpush.bf16.msrb.mxu2 %v4577_v58  ;;  %1279 = vmatpush.bf16.msra.mxu1 %v4637_v38  ;;  %v6168_v58 = vld [vmem:[#allocation11 + $0x214] sm:$0xf]  ;;  %v4536_v38 = vld [vmem:[#allocation11 + $0x200] sm:$0xf] }
 0x155   :  { %1265 = vmatpush.bf16.msra.mxu0 %v4581_v59  ;;  %1253 = vmatpush.bf16.msrb.mxu3 %v4633_v60  ;;  %v4546_v59 = vld [vmem:[#allocation11 + $0x218] sm:$0xf0] }
 0x156   :  { %v4549_v60 = vor.u32 %v6168_v58, %v4546_v59 }
 0x158   :  { %1280 = vmatpush.bf16.msra.mxu1 %v4629_v18  ;;  %1240 = vmatpush.bf16.msrb.mxu2 %v4569_v22  ;;  %v6225_v22 = vld [vmem:[#allocation11 + $0x3d4] sm:$0xf0] }
 0x159   :  { %1254 = vmatpush.bf16.msrb.mxu3 %v4625_v15  ;;  %v6212_v15 = vld [vmem:[#allocation11 + $0x374] sm:$0xf] }
 0x15a   :  { %v4725_v20 = vor.u32 %v6212_v15, %v4722_v17  ;;  %v4746_v15 = vld [vmem:[#allocation11 + $0x3a8] sm:$0xf0] }
 0x15b   :  { %v4749_v17 = vor.u32 %v6218_v13, %v4746_v15  ;;  %v6242_v13 = vld [vmem:[#allocation11 + $0x464] sm:$0xf]  ;;  %v4842_v15 = vld [vmem:[#allocation11 + $0x468] sm:$0xf0] }
 0x15c   :  { %1281 = vmatpush.bf16.msra.mxu1 %v4621_v30  ;;  %1241 = vmatpush.bf16.msrb.mxu2 %v4561_v34 }
 0x15d   :  { %1255 = vmatpush.bf16.msrb.mxu3 %v4617_v27 }
 0x160   :  { %1282 = vmatpush.bf16.msra.mxu1 %v4613_v42  ;;  %1242 = vmatpush.bf16.msrb.mxu2 %v4553_v46  ;;  %v4709_v42 = vor.u32 %v6208_v37, %v4706_v16  ;;  %v6215_v37 = vld [vmem:[#allocation11 + $0x384] sm:$0xf0]  ;;  %v4730_v16 = vld [vmem:[#allocation11 + $0x388] sm:$0xf0] }
 0x161   :  { %1256 = vmatpush.bf16.msrb.mxu3 %v4609_v14  ;;  %v4762_v14 = vld [vmem:[#allocation11 + $0x3c8] sm:$0xf0] }
 0x162   :  { %v4765_v46 = vor.u32 %v6222_v39, %v4762_v14  ;;  %v6214_v39 = vld [vmem:[#allocation11 + $0x384] sm:$0xf] }
 0x164   :  { %1283 = vmatpush.bf16.msra.mxu1 %v4605_v54 }
 0x165   :  { %1257 = vmatpush.bf16.msrb.mxu3 %v4601_v52 }
 0x1b0   :  { %v760_v23 = vpop.f32.mrf.mxu0 }
 0x1b1   :  { %v761_v63 = vadd.f32 %v760_v23, %v562_v61  ;;  %v4570_v23 = vld [vmem:[#allocation11 + $0x248] sm:$0xf0]  ;;  %v6167_v61 = vld [vmem:[#allocation11 + $0x204] sm:$0xf0] }
 0x1b2   :  { %v4573_v26 = vor.u32 %v6174_v21, %v4570_v23  ;;  %v4768_v21 = vld [vmem:[#allocation11 + $0x3d0] sm:$0xf]  ;;  %v6224_v23 = vld [vmem:[#allocation11 + $0x3d4] sm:$0xf] }
 0x1b3   :  { %v4769_v30 = vor.u32 %v6225_v22, %v4768_v21  ;;  %v4773_v34 = vor.u32 %v6224_v23, %v4770_v24  ;;  %v4690_v22 = vld [vmem:[#allocation11 + $0x338] sm:$0xf0]  ;;  %v4736_v24 = vld [vmem:[#allocation11 + $0x390] sm:$0xf] }
 0x1b4   :  { %1266 = vmatpush.bf16.msra.mxu0 %v4573_v26  ;;  %v6211_v26 = vld [vmem:[#allocation11 + $0x364] sm:$0xf0] }
 0x1b5   :  { %v4713_v27 = vor.u32 %v6211_v26, %v4712_v25  ;;  %v6217_v25 = vld [vmem:[#allocation11 + $0x394] sm:$0xf0] }
 0x1b6   :  { %v734_v48 = vpop.f32.mrf.mxu2  ;;  %v4737_v26 = vor.u32 %v6217_v25, %v4736_v24  ;;  %v6240_v24 = vld [vmem:[#allocation11 + $0x454] sm:$0xf]  ;;  %v6254_v25 = vld [vmem:[#allocation11 + $0x4c4] sm:$0xf] }
 0x1b7   :  { %v735_v3 = vadd.f32 %v734_v48, %v561_v41  ;;  %v4557_v48 = vor.u32 %v6170_v45, %v4554_v47  ;;  %v4761_v45 = vor.u32 %v6223_v33, %v4760_v32  ;;  %v818_v47 = vperm.slane %v815_v44, 1  ;;  %v6202_v32 = vld [vmem:[#allocation11 + $0x324] sm:$0xf] }
 0x1b8   :  { %v762_v57 = vpop.f32.mrf.mxu0  ;;  %1267 = vmatpush.bf16.msra.mxu0 %v4565_v36  ;;  %v6209_v36 = vld [vmem:[#allocation11 + $0x354] sm:$0xf0] }
 0x1b9   :  { %v4545_v57 = vor.u32 %v6169_v56, %v4544_v55  ;;  %v4705_v40 = vor.u32 %v6209_v36, %v4704_v35  ;;  %v4728_v36 = vld [vmem:[#allocation11 + $0x380] sm:$0xf] }
 0x1ba   :  { %v4729_v14 = vor.u32 %v6215_v37, %v4728_v36 }
 0x1bb   :  { %1243 = vmatpush.bf16.msrb.mxu2 %v4545_v57 }
 0x1bc   :  { %1268 = vmatpush.bf16.msra.mxu0 %v4557_v48 }
 0x1be   :  { %v736_v62 = vpop.f32.mrf.mxu2 }
 0x1bf   :  { %v6166_v62 = vld [vmem:[#allocation11 + $0x204] sm:$0xf] }
 0x1c0   :  { %v773_v0 = vpop.f32.mrf.mxu1  ;;  %1269 = vmatpush.bf16.msra.mxu0 %v4549_v60 }
 0x1c1   :  { %v774_v1 = vadd.f32 %v773_v0, %v761_v63  ;;  %v4537_v63 = vor.u32 %v6167_v61, %v4536_v38  ;;  %v4538_v0 = vld [vmem:[#allocation11 + $0x208] sm:$0xf0] }
 0x1c2   :  { %v4541_v41 = vor.u32 %v6166_v62, %v4538_v0  ;;  %v6221_v0 = vld [vmem:[#allocation11 + $0x3b4] sm:$0xf0] }
 0x1c3   :  { %v778_v2 = vmax.f32 %v774_v1, 0.0  ;;  %1244 = vmatpush.bf16.msrb.mxu2 %v4537_v63  ;;  %v4784_v1 = vld [vmem:[#allocation11 + $0x3f0] sm:$0xf] }
 0x1c4   :  { %1270 = vmatpush.bf16.msra.mxu0 %v4541_v41  ;;  %v4752_v63 = vld [vmem:[#allocation11 + $0x3b0] sm:$0xf]  ;;  %v6220_v41 = vld [vmem:[#allocation11 + $0x3b4] sm:$0xf] }
 0x1c5   :  { %v780_v4 = vpack.c.bf16 %v778_v2, %v778_v2  ;;  %v6229_v2 = vld [vmem:[#allocation11 + $0x3f4] sm:$0xf0] }
 0x1c6   :  { %v747_v5 = vpop.f32.mrf.mxu3 }
 0x1c7   :  { %v748_v6 = vadd.f32 %v747_v5, %v735_v3  ;;  %1002 = vmatmul.bf16.vlgmr.msra.gmra.mxu3 %v780_v4  ;;  %1028 = vmatmul.bf16.vlgmr.msrb.gmra.mxu1 %v780_v4  ;;  %v6228_v3 = vld [vmem:[#allocation11 + $0x3f4] sm:$0xf]  ;;  %v4785_v4 = vor.u32 %v6229_v2, %v4784_v1  ;;  %v4786_v5 = vld [vmem:[#allocation11 + $0x3f8] sm:$0xf0]  ;;  %v4753_v1 = vor.u32 %v6221_v0, %v4752_v63  ;;  %v4848_v63 = vld [vmem:[#allocation11 + $0x470] sm:$0xf] }
 0x1c8   :  { %v775_v7 = vpop.f32.mrf.mxu1  ;;  %v4754_v2 = vld [vmem:[#allocation11 + $0x3b8] sm:$0xf0] }
 0x1c9   :  { %v777_v8 = vmax.f32 %v748_v6, 0.0  ;;  %v4776_v6 = vld [vmem:[#allocation11 + $0x3e0] sm:$0xf]  ;;  %v6227_v7 = vld [vmem:[#allocation11 + $0x3e4] sm:$0xf0]  ;;  %1506 = vmatpush.bf16.msra.mxu3 %v4785_v4 }
 0x1ca   :  { %v4777_v12 = vor.u32 %v6227_v7, %v4776_v6  ;;  %v4696_v4 = vld [vmem:[#allocation11 + $0x340] sm:$0xf]  ;;  %v6206_v6 = vld [vmem:[#allocation11 + $0x344] sm:$0xf] }
 0x1cb   :  { %v779_v9 = vpack.c.bf16 %v777_v8, %v777_v8  ;;  %v4789_v8 = vor.u32 %v6228_v3, %v4786_v5  ;;  %v4757_v3 = vor.u32 %v6220_v41, %v4754_v2  ;;  %v6207_v5 = vld [vmem:[#allocation11 + $0x344] sm:$0xf0]  ;;  %v6245_v41 = vld [vmem:[#allocation11 + $0x474] sm:$0xf0]  ;;  %v4850_v2 = vld [vmem:[#allocation11 + $0x478] sm:$0xf0] }
 0x1cc   :  { %v4697_v7 = vor.u32 %v6207_v5, %v4696_v4  ;;  %v4849_v4 = vor.u32 %v6245_v41, %v4848_v63  ;;  %v6250_v41 = vld [vmem:[#allocation11 + $0x4a4] sm:$0xf] }
 0x1cd   :  { %989 = vmatmul.bf16.vlgmr.msra.gmra.mxu2 %v779_v9  ;;  %1015 = vmatmul.bf16.vlgmr.msrb.gmra.mxu0 %v779_v9  ;;  %v6226_v9 = vld [vmem:[#allocation11 + $0x3e4] sm:$0xf] }
 0x1ce   :  { %v749_v10 = vpop.f32.mrf.mxu3  ;;  %1532 = vmatpush.bf16.msrb.mxu1 %v4789_v8  ;;  %1493 = vmatpush.bf16.msra.mxu2 %v4721_v19  ;;  %v4698_v8 = vld [vmem:[#allocation11 + $0x348] sm:$0xf0]  ;;  %v6205_v19 = vld [vmem:[#allocation11 + $0x334] sm:$0xf0] }
 0x1cf   :  { %v4778_v10 = vld [vmem:[#allocation11 + $0x3e8] sm:$0xf0]  ;;  %1519 = vmatpush.bf16.msrb.mxu0 %v4725_v20  ;;  %1507 = vmatpush.bf16.msra.mxu3 %v4777_v12  ;;  %v4701_v11 = vor.u32 %v6206_v6, %v4698_v8  ;;  %v6204_v20 = vld [vmem:[#allocation11 + $0x334] sm:$0xf]  ;;  %v4896_v6 = vld [vmem:[#allocation11 + $0x4d0] sm:$0xf] }
 0x1d0   :  { %v4781_v18 = vor.u32 %v6226_v9, %v4778_v10  ;;  %v4744_v9 = vld [vmem:[#allocation11 + $0x3a0] sm:$0xf]  ;;  %v6219_v10 = vld [vmem:[#allocation11 + $0x3a4] sm:$0xf0]  ;;  %v4693_v23 = vor.u32 %v6204_v20, %v4690_v22  ;;  %v6256_v8 = vld [vmem:[#allocation11 + $0x4d4] sm:$0xf] }
 0x1d1   :  { %v4745_v12 = vor.u32 %v6219_v10, %v4744_v9  ;;  %v4898_v9 = vld [vmem:[#allocation11 + $0x4d8] sm:$0xf0]  ;;  %v4840_v10 = vld [vmem:[#allocation11 + $0x460] sm:$0xf]  ;;  %v6255_v20 = vld [vmem:[#allocation11 + $0x4c4] sm:$0xf0] }
 0x1d2   :  { %1533 = vmatpush.bf16.msrb.mxu1 %v4781_v18  ;;  %1494 = vmatpush.bf16.msra.mxu2 %v4713_v27  ;;  %v4688_v18 = vld [vmem:[#allocation11 + $0x330] sm:$0xf]  ;;  %v6216_v27 = vld [vmem:[#allocation11 + $0x394] sm:$0xf] }
 0x1d3   :  { %1520 = vmatpush.bf16.msrb.mxu0 %v4717_v31  ;;  %1508 = vmatpush.bf16.msra.mxu3 %v4769_v30  ;;  %v4689_v21 = vor.u32 %v6205_v19, %v4688_v18  ;;  %v4741_v29 = vor.u32 %v6216_v27, %v4738_v28  ;;  %v4680_v30 = vld [vmem:[#allocation11 + $0x320] sm:$0xf]  ;;  %v6203_v31 = vld [vmem:[#allocation11 + $0x324] sm:$0xf0]  ;;  %v4845_v18 = vor.u32 %v6242_v13, %v4842_v15  ;;  %v4832_v22 = vld [vmem:[#allocation11 + $0x450] sm:$0xf] }
 0x1d4   :  { %v4681_v33 = vor.u32 %v6203_v31, %v4680_v30  ;;  %v4888_v19 = vld [vmem:[#allocation11 + $0x4c0] sm:$0xf]  ;;  %v4834_v27 = vld [vmem:[#allocation11 + $0x458] sm:$0xf0]  ;;  %v1071_v31 = vld [vmem:[#allocation12 + $0x4] sm:$0x3] }
 0x1d5   :  { %v4866_v13 = vld [vmem:[#allocation11 + $0x498] sm:$0xf0] }
 0x1d6   :  { %1534 = vmatpush.bf16.msrb.mxu1 %v4773_v34  ;;  %1495 = vmatpush.bf16.msra.mxu2 %v4705_v40  ;;  %v4682_v34 = vld [vmem:[#allocation11 + $0x328] sm:$0xf0]  ;;  %v4733_v40 = vor.u32 %v6214_v39, %v4730_v16  ;;  %v1073_v16 = vperm.slane %v1071_v31, 0 }
 0x1d7   :  { %1521 = vmatpush.bf16.msrb.mxu0 %v4709_v42  ;;  %1509 = vmatpush.bf16.msra.mxu3 %v4761_v45  ;;  %v4685_v35 = vor.u32 %v6202_v32, %v4682_v34  ;;  %v4672_v42 = vld [vmem:[#allocation11 + $0x310] sm:$0xf]  ;;  %v6200_v45 = vld [vmem:[#allocation11 + $0x314] sm:$0xf]  ;;  %v4889_v32 = vor.u32 %v6255_v20, %v4888_v19  ;;  %v1074_v34 = vperm.slane %v1071_v31, 1 }
 0x1d8   :  { %v6234_v19 = vld [vmem:[#allocation11 + $0x424] sm:$0xf] }
 0x1da   :  { %1535 = vmatpush.bf16.msrb.mxu1 %v4765_v46  ;;  %1496 = vmatpush.bf16.msra.mxu2 %v4697_v7  ;;  %v4674_v46 = vld [vmem:[#allocation11 + $0x318] sm:$0xf0]  ;;  %v6257_v7 = vld [vmem:[#allocation11 + $0x4d4] sm:$0xf0] }
 0x1db   :  { %1510 = vmatpush.bf16.msra.mxu3 %v4753_v1  ;;  %1522 = vmatpush.bf16.msrb.mxu0 %v4701_v11  ;;  %v6244_v1 = vld [vmem:[#allocation11 + $0x474] sm:$0xf]  ;;  %v6243_v11 = vld [vmem:[#allocation11 + $0x464] sm:$0xf0] }
 0x1dc   :  { %v4853_v5 = vor.u32 %v6244_v1, %v4850_v2  ;;  %v4874_v1 = vld [vmem:[#allocation11 + $0x4a8] sm:$0xf0] }
 0x1dd   :  { %v4877_v2 = vor.u32 %v6250_v41, %v4874_v1  ;;  %v6274_v41 = vld [vmem:[#allocation11 + $0x564] sm:$0xf]  ;;  %v4970_v1 = vld [vmem:[#allocation11 + $0x568] sm:$0xf0] }
 0x1de   :  { %1536 = vmatpush.bf16.msrb.mxu1 %v4757_v3  ;;  %1497 = vmatpush.bf16.msra.mxu2 %v4689_v21  ;;  %v4901_v21 = vor.u32 %v6256_v8, %v4898_v9  ;;  %v4864_v9 = vld [vmem:[#allocation11 + $0x490] sm:$0xf] }
 0x1df   :  { %1511 = vmatpush.bf16.msra.mxu3 %v4745_v12  ;;  %1523 = vmatpush.bf16.msrb.mxu0 %v4693_v23  ;;  %v4841_v12 = vor.u32 %v6243_v11, %v4840_v10  ;;  %v6241_v23 = vld [vmem:[#allocation11 + $0x454] sm:$0xf0] }
 0x1e0   :  { %v4833_v28 = vor.u32 %v6241_v23, %v4832_v22  ;;  %v6249_v10 = vld [vmem:[#allocation11 + $0x494] sm:$0xf0]  ;;  %v4856_v23 = vld [vmem:[#allocation11 + $0x480] sm:$0xf] }
 0x1e1   :  { %v4865_v11 = vor.u32 %v6249_v10, %v4864_v9  ;;  %v6272_v9 = vld [vmem:[#allocation11 + $0x554] sm:$0xf]  ;;  %v6286_v10 = vld [vmem:[#allocation11 + $0x5c4] sm:$0xf] }
 0x1e2   :  { %1537 = vmatpush.bf16.msrb.mxu1 %v4749_v17  ;;  %1498 = vmatpush.bf16.msra.mxu2 %v4681_v33  ;;  %v4897_v17 = vor.u32 %v6257_v7, %v4896_v6  ;;  %v4818_v7 = vld [vmem:[#allocation11 + $0x438] sm:$0xf0] }
 0x1e3   :  { %1512 = vmatpush.bf16.msra.mxu3 %v4737_v26  ;;  %1524 = vmatpush.bf16.msrb.mxu0 %v4685_v35  ;;  %v4890_v26 = vld [vmem:[#allocation11 + $0x4c8] sm:$0xf0] }
 0x1e4   :  { %v4893_v33 = vor.u32 %v6254_v25, %v4890_v26  ;;  %v6246_v25 = vld [vmem:[#allocation11 + $0x484] sm:$0xf] }
 0x1e6   :  { %1538 = vmatpush.bf16.msrb.mxu1 %v4741_v29  ;;  %v4837_v29 = vor.u32 %v6240_v24, %v4834_v27  ;;  %v6247_v24 = vld [vmem:[#allocation11 + $0x484] sm:$0xf0]  ;;  %v4858_v27 = vld [vmem:[#allocation11 + $0x488] sm:$0xf0] }
 0x1e7   :  { %1513 = vmatpush.bf16.msra.mxu3 %v4729_v14  ;;  %v4857_v26 = vor.u32 %v6247_v24, %v4856_v23 }
 0x1ea   :  { %1539 = vmatpush.bf16.msrb.mxu1 %v4733_v40 }
 0x244   :  { %v1029_v43 = vpop.f32.mrf.mxu1 }
 0x24a   :  { %v1003_v48 = vpop.f32.mrf.mxu3  ;;  %v1016_v49 = vpop.f32.mrf.mxu0 }
 0x24b   :  { %v1017_v50 = vadd.f32 %v1016_v49, %v818_v47  ;;  %v4677_v47 = vor.u32 %v6200_v45, %v4674_v46  ;;  %v6199_v49 = vld [vmem:[#allocation11 + $0x304] sm:$0xf0] }
 0x24c   :  { %v1031_v51 = vpop.f32.mrf.mxu1 }
 0x24d   :  { %v1030_v52 = vadd.f32 %v1029_v43, %v1017_v50  ;;  %v6201_v43 = vld [vmem:[#allocation11 + $0x314] sm:$0xf0]  ;;  %1525 = vmatpush.bf16.msrb.mxu0 %v4677_v47  ;;  %v6198_v50 = vld [vmem:[#allocation11 + $0x304] sm:$0xf] }
 0x24e   :  { %v4673_v44 = vor.u32 %v6201_v43, %v4672_v42 }
 0x24f   :  { %v1034_v54 = vmax.f32 %v1030_v52, 0.0  ;;  %v4666_v52 = vld [vmem:[#allocation11 + $0x308] sm:$0xf0] }
 0x250   :  { %v990_v55 = vpop.f32.mrf.mxu2  ;;  %1499 = vmatpush.bf16.msra.mxu2 %v4673_v44 }
 0x251   :  { %v1036_v56 = vpack.c.bf16 %v1034_v54, %v1034_v54  ;;  %v991_v57 = vadd.f32 %v990_v55, %v817_v53  ;;  %v4669_v53 = vor.u32 %v6198_v50, %v4666_v52  ;;  %v4912_v54 = vld [vmem:[#allocation11 + $0x4f0] sm:$0xf]  ;;  %v6261_v55 = vld [vmem:[#allocation11 + $0x4f4] sm:$0xf0] }
 0x252   :  { %v1005_v58 = vpop.f32.mrf.mxu3  ;;  %v1018_v59 = vpop.f32.mrf.mxu0  ;;  %v6253_v52 = vld [vmem:[#allocation11 + $0x4b4] sm:$0xf0] }
 0x253   :  { %v1004_v60 = vadd.f32 %v1003_v48, %v991_v57  ;;  %1258 = vmatmul.bf16.vlgmr.msrb.gmra.mxu3 %v1036_v56  ;;  %1284 = vmatmul.bf16.vlgmr.msra.gmra.mxu1 %v1036_v56  ;;  %v4664_v48 = vld [vmem:[#allocation11 + $0x300] sm:$0xf]  ;;  %v6260_v56 = vld [vmem:[#allocation11 + $0x4f4] sm:$0xf]  ;;  %v4913_v57 = vor.u32 %v6261_v55, %v4912_v54  ;;  %v4914_v58 = vld [vmem:[#allocation11 + $0x4f8] sm:$0xf0] }
 0x254   :  { %v4665_v51 = vor.u32 %v6199_v49, %v4664_v48  ;;  %1526 = vmatpush.bf16.msrb.mxu0 %v4669_v53  ;;  %v4904_v59 = vld [vmem:[#allocation11 + $0x4e0] sm:$0xf]  ;;  %v6252_v53 = vld [vmem:[#allocation11 + $0x4b4] sm:$0xf]  ;;  %v4882_v55 = vld [vmem:[#allocation11 + $0x4b8] sm:$0xf0] }
 0x255   :  { %v1033_v38 = vmax.f32 %v1004_v60, 0.0  ;;  %v6259_v60 = vld [vmem:[#allocation11 + $0x4e4] sm:$0xf0]  ;;  %1762 = vmatpush.bf16.msrb.mxu3 %v4913_v57  ;;  %v4824_v57 = vld [vmem:[#allocation11 + $0x440] sm:$0xf] }
 0x256   :  { %1500 = vmatpush.bf16.msra.mxu2 %v4665_v51  ;;  %v4905_v0 = vor.u32 %v6259_v60, %v4904_v59  ;;  %v4880_v51 = vld [vmem:[#allocation11 + $0x4b0] sm:$0xf]  ;;  %v6238_v59 = vld [vmem:[#allocation11 + $0x444] sm:$0xf] }
 0x257   :  { %v1035_v61 = vpack.c.bf16 %v1033_v38, %v1033_v38  ;;  %v4917_v38 = vor.u32 %v6260_v56, %v4914_v58  ;;  %v4881_v54 = vor.u32 %v6253_v52, %v4880_v51  ;;  %v4885_v56 = vor.u32 %v6252_v53, %v4882_v55  ;;  %v6239_v58 = vld [vmem:[#allocation11 + $0x444] sm:$0xf0]  ;;  %v4976_v51 = vld [vmem:[#allocation11 + $0x570] sm:$0xf]  ;;  %v6277_v53 = vld [vmem:[#allocation11 + $0x574] sm:$0xf0] }
 0x258   :  { %v992_v62 = vpop.f32.mrf.mxu2  ;;  %v4825_v60 = vor.u32 %v6239_v58, %v4824_v57  ;;  %v4978_v55 = vld [vmem:[#allocation11 + $0x578] sm:$0xf0]  ;;  %v4977_v57 = vor.u32 %v6277_v53, %v4976_v51  ;;  %v6282_v53 = vld [vmem:[#allocation11 + $0x5a4] sm:$0xf] }
 0x259   :  { %1245 = vmatmul.bf16.vlgmr.msrb.gmra.mxu2 %v1035_v61  ;;  %1271 = vmatmul.bf16.vlgmr.msra.gmra.mxu0 %v1035_v61  ;;  %v6258_v61 = vld [vmem:[#allocation11 + $0x4e4] sm:$0xf]  ;;  %v4906_v62 = vld [vmem:[#allocation11 + $0x4e8] sm:$0xf0] }
 0x25a   :  { %1788 = vmatpush.bf16.msra.mxu1 %v4917_v38  ;;  %v4909_v3 = vor.u32 %v6258_v61, %v4906_v62  ;;  %1749 = vmatpush.bf16.msrb.mxu2 %v4849_v4  ;;  %v4826_v38 = vld [vmem:[#allocation11 + $0x448] sm:$0xf0]  ;;  %v4872_v61 = vld [vmem:[#allocation11 + $0x4a0] sm:$0xf]  ;;  %v6251_v62 = vld [vmem:[#allocation11 + $0x4a4] sm:$0xf0] }
 0x25b   :  { %1775 = vmatpush.bf16.msra.mxu0 %v4853_v5  ;;  %1763 = vmatpush.bf16.msrb.mxu3 %v4905_v0  ;;  %v4829_v63 = vor.u32 %v6238_v59, %v4826_v38  ;;  %v4873_v0 = vor.u32 %v6251_v62, %v4872_v61  ;;  %v6237_v4 = vld [vmem:[#allocation11 + $0x434] sm:$0xf0]  ;;  %v6236_v5 = vld [vmem:[#allocation11 + $0x434] sm:$0xf]  ;;  %v5024_v59 = vld [vmem:[#allocation11 + $0x5d0] sm:$0xf] }
 0x25c   :  { %v4821_v8 = vor.u32 %v6236_v5, %v4818_v7  ;;  %v6288_v38 = vld [vmem:[#allocation11 + $0x5d4] sm:$0xf]  ;;  %v5026_v61 = vld [vmem:[#allocation11 + $0x5d8] sm:$0xf0]  ;;  %v4968_v62 = vld [vmem:[#allocation11 + $0x560] sm:$0xf] }
 0x25d   :  { %v6287_v5 = vld [vmem:[#allocation11 + $0x5c4] sm:$0xf0]  ;;  %v4960_v7 = vld [vmem:[#allocation11 + $0x550] sm:$0xf] }
 0x25e   :  { %1789 = vmatpush.bf16.msra.mxu1 %v4909_v3  ;;  %1750 = vmatpush.bf16.msrb.mxu2 %v4841_v12  ;;  %v4816_v3 = vld [vmem:[#allocation11 + $0x430] sm:$0xf]  ;;  %v6248_v12 = vld [vmem:[#allocation11 + $0x494] sm:$0xf] }
 0x25f   :  { %1776 = vmatpush.bf16.msra.mxu0 %v4845_v18  ;;  %1764 = vmatpush.bf16.msrb.mxu3 %v4897_v17  ;;  %v4817_v6 = vor.u32 %v6237_v4, %v4816_v3  ;;  %v4869_v15 = vor.u32 %v6248_v12, %v4866_v13  ;;  %v4808_v17 = vld [vmem:[#allocation11 + $0x420] sm:$0xf]  ;;  %v6235_v18 = vld [vmem:[#allocation11 + $0x424] sm:$0xf0]  ;;  %v4973_v3 = vor.u32 %v6274_v41, %v4970_v1  ;;  %v4962_v12 = vld [vmem:[#allocation11 + $0x558] sm:$0xf0] }
 0x260   :  { %v4809_v20 = vor.u32 %v6235_v18, %v4808_v17  ;;  %v5016_v4 = vld [vmem:[#allocation11 + $0x5c0] sm:$0xf]  ;;  %v1327_v18 = vld [vmem:[#allocation12 + $0x6] sm:$0x3]  ;;  %v4994_v41 = vld [vmem:[#allocation11 + $0x598] sm:$0xf0] }
 0x262   :  { %1790 = vmatpush.bf16.msra.mxu1 %v4901_v21  ;;  %1751 = vmatpush.bf16.msrb.mxu2 %v4833_v28  ;;  %v4810_v21 = vld [vmem:[#allocation11 + $0x428] sm:$0xf0]  ;;  %v4861_v28 = vor.u32 %v6246_v25, %v4858_v27  ;;  %v1329_v27 = vperm.slane %v1327_v18, 0 }
 0x263   :  { %1777 = vmatpush.bf16.msra.mxu0 %v4837_v29  ;;  %1765 = vmatpush.bf16.msrb.mxu3 %v4889_v32  ;;  %v4813_v22 = vor.u32 %v6234_v19, %v4810_v21  ;;  %v4800_v29 = vld [vmem:[#allocation11 + $0x410] sm:$0xf]  ;;  %v6232_v32 = vld [vmem:[#allocation11 + $0x414] sm:$0xf]  ;;  %v5017_v19 = vor.u32 %v6287_v5, %v5016_v4  ;;  %v1330_v21 = vperm.slane %v1327_v18, 1 }
 0x264   :  { %v6266_v4 = vld [vmem:[#allocation11 + $0x524] sm:$0xf] }
 0x266   :  { %1791 = vmatpush.bf16.msra.mxu1 %v4893_v33  ;;  %1752 = vmatpush.bf16.msrb.mxu2 %v4825_v60  ;;  %v4802_v33 = vld [vmem:[#allocation11 + $0x418] sm:$0xf0]  ;;  %v6289_v60 = vld [vmem:[#allocation11 + $0x5d4] sm:$0xf0] }
 0x267   :  { %1766 = vmatpush.bf16.msrb.mxu3 %v4881_v54  ;;  %1778 = vmatpush.bf16.msra.mxu0 %v4829_v63  ;;  %v6276_v54 = vld [vmem:[#allocation11 + $0x574] sm:$0xf]  ;;  %v6275_v63 = vld [vmem:[#allocation11 + $0x564] sm:$0xf0] }
 0x268   :  { %v4981_v58 = vor.u32 %v6276_v54, %v4978_v55  ;;  %v5002_v54 = vld [vmem:[#allocation11 + $0x5a8] sm:$0xf0] }
 0x269   :  { %v5005_v55 = vor.u32 %v6282_v53, %v5002_v54  ;;  %v6306_v53 = vld [vmem:[#allocation11 + $0x664] sm:$0xf]  ;;  %v5098_v54 = vld [vmem:[#allocation11 + $0x668] sm:$0xf0] }
 0x26a   :  { %1792 = vmatpush.bf16.msra.mxu1 %v4885_v56  ;;  %1753 = vmatpush.bf16.msrb.mxu2 %v4817_v6  ;;  %v5029_v6 = vor.u32 %v6288_v38, %v5026_v61  ;;  %v4992_v61 = vld [vmem:[#allocation11 + $0x590] sm:$0xf] }
 0x26b   :  { %1767 = vmatpush.bf16.msrb.mxu3 %v4873_v0  ;;  %1779 = vmatpush.bf16.msra.mxu0 %v4821_v8  ;;  %v4969_v0 = vor.u32 %v6275_v63, %v4968_v62  ;;  %v6273_v8 = vld [vmem:[#allocation11 + $0x554] sm:$0xf0] }
 0x26c   :  { %v4961_v13 = vor.u32 %v6273_v8, %v4960_v7  ;;  %v6281_v62 = vld [vmem:[#allocation11 + $0x594] sm:$0xf0]  ;;  %v4984_v8 = vld [vmem:[#allocation11 + $0x580] sm:$0xf] }
 0x26d   :  { %v4993_v63 = vor.u32 %v6281_v62, %v4992_v61  ;;  %v6304_v61 = vld [vmem:[#allocation11 + $0x654] sm:$0xf]  ;;  %v6318_v62 = vld [vmem:[#allocation11 + $0x6c4] sm:$0xf] }
 0x26e   :  { %1793 = vmatpush.bf16.msra.mxu1 %v4877_v2  ;;  %1754 = vmatpush.bf16.msrb.mxu2 %v4809_v20  ;;  %v5025_v2 = vor.u32 %v6289_v60, %v5024_v59  ;;  %v4946_v60 = vld [vmem:[#allocation11 + $0x538] sm:$0xf0] }
 0x26f   :  { %1768 = vmatpush.bf16.msrb.mxu3 %v4865_v11  ;;  %1780 = vmatpush.bf16.msra.mxu0 %v4813_v22  ;;  %v5018_v11 = vld [vmem:[#allocation11 + $0x5c8] sm:$0xf0] }
 0x270   :  { %v5021_v20 = vor.u32 %v6286_v10, %v5018_v11  ;;  %v6278_v10 = vld [vmem:[#allocation11 + $0x584] sm:$0xf] }
 0x272   :  { %1794 = vmatpush.bf16.msra.mxu1 %v4869_v15  ;;  %v4965_v15 = vor.u32 %v6272_v9, %v4962_v12  ;;  %v6279_v9 = vld [vmem:[#allocation11 + $0x584] sm:$0xf0]  ;;  %v4986_v12 = vld [vmem:[#allocation11 + $0x588] sm:$0xf0] }
 0x273   :  { %1769 = vmatpush.bf16.msrb.mxu3 %v4857_v26  ;;  %v4985_v11 = vor.u32 %v6279_v9, %v4984_v8 }
 0x276   :  { %1795 = vmatpush.bf16.msra.mxu1 %v4861_v28 }
 0x2d0   :  { %v1285_v30 = vpop.f32.mrf.mxu1 }
 0x2d6   :  { %v1259_v35 = vpop.f32.mrf.mxu3  ;;  %v1272_v36 = vpop.f32.mrf.mxu0 }
 0x2d7   :  { %v1273_v37 = vadd.f32 %v1272_v36, %v1074_v34  ;;  %v4805_v34 = vor.u32 %v6232_v32, %v4802_v33  ;;  %v6231_v36 = vld [vmem:[#allocation11 + $0x404] sm:$0xf0] }
 0x2d8   :  { %v1287_v39 = vpop.f32.mrf.mxu1 }
 0x2d9   :  { %v1286_v14 = vadd.f32 %v1285_v30, %v1273_v37  ;;  %v6233_v30 = vld [vmem:[#allocation11 + $0x414] sm:$0xf0]  ;;  %1781 = vmatpush.bf16.msra.mxu0 %v4805_v34  ;;  %v6230_v37 = vld [vmem:[#allocation11 + $0x404] sm:$0xf] }
 0x2da   :  { %v4801_v31 = vor.u32 %v6233_v30, %v4800_v29 }
 0x2db   :  { %v1290_v40 = vmax.f32 %v1286_v14, 0.0  ;;  %v4794_v14 = vld [vmem:[#allocation11 + $0x408] sm:$0xf0] }
 0x2dc   :  { %v1246_v42 = vpop.f32.mrf.mxu2  ;;  %1755 = vmatpush.bf16.msrb.mxu2 %v4801_v31 }
 0x2dd   :  { %v1292_v43 = vpack.c.bf16 %v1290_v40, %v1290_v40  ;;  %v1247_v44 = vadd.f32 %v1246_v42, %v1073_v16  ;;  %v4797_v16 = vor.u32 %v6230_v37, %v4794_v14  ;;  %v5040_v40 = vld [vmem:[#allocation11 + $0x5f0] sm:$0xf]  ;;  %v6293_v42 = vld [vmem:[#allocation11 + $0x5f4] sm:$0xf0] }
 0x2de   :  { %v1261_v45 = vpop.f32.mrf.mxu3  ;;  %v1274_v46 = vpop.f32.mrf.mxu0  ;;  %v6285_v14 = vld [vmem:[#allocation11 + $0x5b4] sm:$0xf0] }
 0x2df   :  { %v1260_v47 = vadd.f32 %v1259_v35, %v1247_v44  ;;  %1514 = vmatmul.bf16.vlgmr.msra.gmra.mxu3 %v1292_v43  ;;  %1540 = vmatmul.bf16.vlgmr.msrb.gmra.mxu1 %v1292_v43  ;;  %v4792_v35 = vld [vmem:[#allocation11 + $0x400] sm:$0xf]  ;;  %v6292_v43 = vld [vmem:[#allocation11 + $0x5f4] sm:$0xf]  ;;  %v5041_v44 = vor.u32 %v6293_v42, %v5040_v40  ;;  %v5042_v45 = vld [vmem:[#allocation11 + $0x5f8] sm:$0xf0] }
 0x2e0   :  { %v4793_v39 = vor.u32 %v6231_v36, %v4792_v35  ;;  %1782 = vmatpush.bf16.msra.mxu0 %v4797_v16  ;;  %v5032_v46 = vld [vmem:[#allocation11 + $0x5e0] sm:$0xf]  ;;  %v6284_v16 = vld [vmem:[#allocation11 + $0x5b4] sm:$0xf]  ;;  %v5010_v42 = vld [vmem:[#allocation11 + $0x5b8] sm:$0xf0] }
 0x2e1   :  { %v1289_v48 = vmax.f32 %v1260_v47, 0.0  ;;  %v6291_v47 = vld [vmem:[#allocation11 + $0x5e4] sm:$0xf0]  ;;  %2018 = vmatpush.bf16.msra.mxu3 %v5041_v44  ;;  %v4952_v44 = vld [vmem:[#allocation11 + $0x540] sm:$0xf] }
 0x2e2   :  { %1756 = vmatpush.bf16.msrb.mxu2 %v4793_v39  ;;  %v5033_v52 = vor.u32 %v6291_v47, %v5032_v46  ;;  %v5008_v39 = vld [vmem:[#allocation11 + $0x5b0] sm:$0xf]  ;;  %v6270_v46 = vld [vmem:[#allocation11 + $0x544] sm:$0xf] }
 0x2e3   :  { %v1291_v49 = vpack.c.bf16 %v1289_v48, %v1289_v48  ;;  %v5045_v48 = vor.u32 %v6292_v43, %v5042_v45  ;;  %v5009_v40 = vor.u32 %v6285_v14, %v5008_v39  ;;  %v5013_v43 = vor.u32 %v6284_v16, %v5010_v42  ;;  %v6271_v45 = vld [vmem:[#allocation11 + $0x544] sm:$0xf0]  ;;  %v5104_v39 = vld [vmem:[#allocation11 + $0x670] sm:$0xf]  ;;  %v6309_v16 = vld [vmem:[#allocation11 + $0x674] sm:$0xf0] }
 0x2e4   :  { %v1248_v50 = vpop.f32.mrf.mxu2  ;;  %v4953_v47 = vor.u32 %v6271_v45, %v4952_v44  ;;  %v5106_v42 = vld [vmem:[#allocation11 + $0x678] sm:$0xf0]  ;;  %v5105_v44 = vor.u32 %v6309_v16, %v5104_v39  ;;  %v6314_v16 = vld [vmem:[#allocation11 + $0x6a4] sm:$0xf] }
 0x2e5   :  { %1501 = vmatmul.bf16.vlgmr.msra.gmra.mxu2 %v1291_v49  ;;  %1527 = vmatmul.bf16.vlgmr.msrb.gmra.mxu0 %v1291_v49  ;;  %v6290_v49 = vld [vmem:[#allocation11 + $0x5e4] sm:$0xf]  ;;  %v5034_v50 = vld [vmem:[#allocation11 + $0x5e8] sm:$0xf0] }
 0x2e6   :  { %2044 = vmatpush.bf16.msrb.mxu1 %v5045_v48  ;;  %v5037_v56 = vor.u32 %v6290_v49, %v5034_v50  ;;  %2005 = vmatpush.bf16.msra.mxu2 %v4977_v57  ;;  %v4954_v48 = vld [vmem:[#allocation11 + $0x548] sm:$0xf0]  ;;  %v5000_v49 = vld [vmem:[#allocation11 + $0x5a0] sm:$0xf]  ;;  %v6283_v50 = vld [vmem:[#allocation11 + $0x5a4] sm:$0xf0] }
 0x2e7   :  { %2031 = vmatpush.bf16.msrb.mxu0 %v4981_v58  ;;  %2019 = vmatpush.bf16.msra.mxu3 %v5033_v52  ;;  %v4957_v51 = vor.u32 %v6270_v46, %v4954_v48  ;;  %v5001_v52 = vor.u32 %v6283_v50, %v5000_v49  ;;  %v6269_v57 = vld [vmem:[#allocation11 + $0x534] sm:$0xf0]  ;;  %v6268_v58 = vld [vmem:[#allocation11 + $0x534] sm:$0xf]  ;;  %v5152_v46 = vld [vmem:[#allocation11 + $0x6d0] sm:$0xf] }
 0x2e8   :  { %v4949_v38 = vor.u32 %v6268_v58, %v4946_v60  ;;  %v6320_v48 = vld [vmem:[#allocation11 + $0x6d4] sm:$0xf]  ;;  %v5154_v49 = vld [vmem:[#allocation11 + $0x6d8] sm:$0xf0]  ;;  %v5096_v50 = vld [vmem:[#allocation11 + $0x660] sm:$0xf] }
 0x2e9   :  { %v6319_v58 = vld [vmem:[#allocation11 + $0x6c4] sm:$0xf0]  ;;  %v5088_v60 = vld [vmem:[#allocation11 + $0x650] sm:$0xf] }
 0x2ea   :  { %2045 = vmatpush.bf16.msrb.mxu1 %v5037_v56  ;;  %2006 = vmatpush.bf16.msra.mxu2 %v4969_v0  ;;  %v4944_v56 = vld [vmem:[#allocation11 + $0x530] sm:$0xf]  ;;  %v6280_v0 = vld [vmem:[#allocation11 + $0x594] sm:$0xf] }
 0x2eb   :  { %2032 = vmatpush.bf16.msrb.mxu0 %v4973_v3  ;;  %2020 = vmatpush.bf16.msra.mxu3 %v5025_v2  ;;  %v4945_v59 = vor.u32 %v6269_v57, %v4944_v56  ;;  %v4997_v1 = vor.u32 %v6280_v0, %v4994_v41  ;;  %v4936_v2 = vld [vmem:[#allocation11 + $0x520] sm:$0xf]  ;;  %v6267_v3 = vld [vmem:[#allocation11 + $0x524] sm:$0xf0]  ;;  %v5101_v56 = vor.u32 %v6306_v53, %v5098_v54  ;;  %v5090_v0 = vld [vmem:[#allocation11 + $0x658] sm:$0xf0] }
 0x2ec   :  { %v4937_v5 = vor.u32 %v6267_v3, %v4936_v2  ;;  %v5144_v57 = vld [vmem:[#allocation11 + $0x6c0] sm:$0xf]  ;;  %v1583_v3 = vld [vmem:[#allocation12 + $0x8] sm:$0x3]  ;;  %v5122_v53 = vld [vmem:[#allocation11 + $0x698] sm:$0xf0] }
 0x2ee   :  { %2046 = vmatpush.bf16.msrb.mxu1 %v5029_v6  ;;  %2007 = vmatpush.bf16.msra.mxu2 %v4961_v13  ;;  %v4938_v6 = vld [vmem:[#allocation11 + $0x528] sm:$0xf0]  ;;  %v4989_v13 = vor.u32 %v6278_v10, %v4986_v12  ;;  %v1585_v12 = vperm.slane %v1583_v3, 0 }
 0x2ef   :  { %2033 = vmatpush.bf16.msrb.mxu0 %v4965_v15  ;;  %2021 = vmatpush.bf16.msra.mxu3 %v5017_v19  ;;  %v4941_v7 = vor.u32 %v6266_v4, %v4938_v6  ;;  %v4928_v15 = vld [vmem:[#allocation11 + $0x510] sm:$0xf]  ;;  %v6264_v19 = vld [vmem:[#allocation11 + $0x514] sm:$0xf]  ;;  %v5145_v4 = vor.u32 %v6319_v58, %v5144_v57  ;;  %v1586_v6 = vperm.slane %v1583_v3, 1 }
 0x2f0   :  { %v6298_v57 = vld [vmem:[#allocation11 + $0x624] sm:$0xf] }
 0x2f2   :  { %2047 = vmatpush.bf16.msrb.mxu1 %v5021_v20  ;;  %2008 = vmatpush.bf16.msra.mxu2 %v4953_v47  ;;  %v4930_v20 = vld [vmem:[#allocation11 + $0x518] sm:$0xf0]  ;;  %v6321_v47 = vld [vmem:[#allocation11 + $0x6d4] sm:$0xf0] }
 0x2f3   :  { %2022 = vmatpush.bf16.msra.mxu3 %v5009_v40  ;;  %2034 = vmatpush.bf16.msrb.mxu0 %v4957_v51  ;;  %v6308_v40 = vld [vmem:[#allocation11 + $0x674] sm:$0xf]  ;;  %v6307_v51 = vld [vmem:[#allocation11 + $0x664] sm:$0xf0] }
 0x2f4   :  { %v5109_v45 = vor.u32 %v6308_v40, %v5106_v42  ;;  %v5130_v40 = vld [vmem:[#allocation11 + $0x6a8] sm:$0xf0] }
 0x2f5   :  { %v5133_v42 = vor.u32 %v6314_v16, %v5130_v40  ;;  %v6338_v16 = vld [vmem:[#allocation11 + $0x764] sm:$0xf]  ;;  %v5226_v40 = vld [vmem:[#allocation11 + $0x768] sm:$0xf0] }
 0x2f6   :  { %2048 = vmatpush.bf16.msrb.mxu1 %v5013_v43  ;;  %2009 = vmatpush.bf16.msra.mxu2 %v4945_v59  ;;  %v5157_v59 = vor.u32 %v6320_v48, %v5154_v49  ;;  %v5120_v49 = vld [vmem:[#allocation11 + $0x690] sm:$0xf] }
 0x2f7   :  { %2023 = vmatpush.bf16.msra.mxu3 %v5001_v52  ;;  %2035 = vmatpush.bf16.msrb.mxu0 %v4949_v38  ;;  %v5097_v52 = vor.u32 %v6307_v51, %v5096_v50  ;;  %v6305_v38 = vld [vmem:[#allocation11 + $0x654] sm:$0xf0] }
 0x2f8   :  { %v5089_v41 = vor.u32 %v6305_v38, %v5088_v60  ;;  %v6313_v50 = vld [vmem:[#allocation11 + $0x694] sm:$0xf0]  ;;  %v5112_v38 = vld [vmem:[#allocation11 + $0x680] sm:$0xf] }
 0x2f9   :  { %v5121_v51 = vor.u32 %v6313_v50, %v5120_v49  ;;  %v6336_v49 = vld [vmem:[#allocation11 + $0x754] sm:$0xf]  ;;  %v6350_v50 = vld [vmem:[#allocation11 + $0x7c4] sm:$0xf] }
 0x2fa   :  { %2049 = vmatpush.bf16.msrb.mxu1 %v5005_v55  ;;  %2010 = vmatpush.bf16.msra.mxu2 %v4937_v5  ;;  %v5153_v55 = vor.u32 %v6321_v47, %v5152_v46  ;;  %v5074_v47 = vld [vmem:[#allocation11 + $0x638] sm:$0xf0] }
 0x2fb   :  { %2024 = vmatpush.bf16.msra.mxu3 %v4993_v63  ;;  %2036 = vmatpush.bf16.msrb.mxu0 %v4941_v7  ;;  %v5146_v63 = vld [vmem:[#allocation11 + $0x6c8] sm:$0xf0] }
 0x2fc   :  { %v5149_v5 = vor.u32 %v6318_v62, %v5146_v63  ;;  %v6310_v62 = vld [vmem:[#allocation11 + $0x684] sm:$0xf] }
 0x2fe   :  { %2050 = vmatpush.bf16.msrb.mxu1 %v4997_v1  ;;  %v5093_v1 = vor.u32 %v6304_v61, %v5090_v0  ;;  %v6311_v61 = vld [vmem:[#allocation11 + $0x684] sm:$0xf0]  ;;  %v5114_v0 = vld [vmem:[#allocation11 + $0x688] sm:$0xf0] }
 0x2ff   :  { %2025 = vmatpush.bf16.msra.mxu3 %v4985_v11  ;;  %v5113_v63 = vor.u32 %v6311_v61, %v5112_v38 }
 0x302   :  { %2051 = vmatpush.bf16.msrb.mxu1 %v4989_v13 }
 0x35c   :  { %v1541_v17 = vpop.f32.mrf.mxu1 }
 0x362   :  { %v1515_v22 = vpop.f32.mrf.mxu3  ;;  %v1528_v23 = vpop.f32.mrf.mxu0 }
 0x363   :  { %v1529_v24 = vadd.f32 %v1528_v23, %v1330_v21  ;;  %v4933_v21 = vor.u32 %v6264_v19, %v4930_v20  ;;  %v6263_v23 = vld [vmem:[#allocation11 + $0x504] sm:$0xf0] }
 0x364   :  { %v1543_v25 = vpop.f32.mrf.mxu1 }
 0x365   :  { %v1542_v26 = vadd.f32 %v1541_v17, %v1529_v24  ;;  %v6265_v17 = vld [vmem:[#allocation11 + $0x514] sm:$0xf0]  ;;  %2037 = vmatpush.bf16.msrb.mxu0 %v4933_v21  ;;  %v6262_v24 = vld [vmem:[#allocation11 + $0x504] sm:$0xf] }
 0x366   :  { %v4929_v18 = vor.u32 %v6265_v17, %v4928_v15 }
 0x367   :  { %v1546_v28 = vmax.f32 %v1542_v26, 0.0  ;;  %v4922_v26 = vld [vmem:[#allocation11 + $0x508] sm:$0xf0] }
 0x368   :  { %v1502_v29 = vpop.f32.mrf.mxu2  ;;  %2011 = vmatpush.bf16.msra.mxu2 %v4929_v18 }
 0x369   :  { %v1548_v30 = vpack.c.bf16 %v1546_v28, %v1546_v28  ;;  %v1503_v31 = vadd.f32 %v1502_v29, %v1329_v27  ;;  %v4925_v27 = vor.u32 %v6262_v24, %v4922_v26  ;;  %v5168_v28 = vld [vmem:[#allocation11 + $0x6f0] sm:$0xf]  ;;  %v6325_v29 = vld [vmem:[#allocation11 + $0x6f4] sm:$0xf0] }
 0x36a   :  { %v1517_v32 = vpop.f32.mrf.mxu3  ;;  %v1530_v33 = vpop.f32.mrf.mxu0  ;;  %v6317_v26 = vld [vmem:[#allocation11 + $0x6b4] sm:$0xf0] }
 0x36b   :  { %v1516_v34 = vadd.f32 %v1515_v22, %v1503_v31  ;;  %1770 = vmatmul.bf16.vlgmr.msrb.gmra.mxu3 %v1548_v30  ;;  %1796 = vmatmul.bf16.vlgmr.msra.gmra.mxu1 %v1548_v30  ;;  %v4920_v22 = vld [vmem:[#allocation11 + $0x500] sm:$0xf]  ;;  %v6324_v30 = vld [vmem:[#allocation11 + $0x6f4] sm:$0xf]  ;;  %v5169_v31 = vor.u32 %v6325_v29, %v5168_v28  ;;  %v5170_v32 = vld [vmem:[#allocation11 + $0x6f8] sm:$0xf0] }
 0x36c   :  { %v4921_v25 = vor.u32 %v6263_v23, %v4920_v22  ;;  %2038 = vmatpush.bf16.msrb.mxu0 %v4925_v27  ;;  %v5160_v33 = vld [vmem:[#allocation11 + $0x6e0] sm:$0xf]  ;;  %v6316_v27 = vld [vmem:[#allocation11 + $0x6b4] sm:$0xf]  ;;  %v5138_v29 = vld [vmem:[#allocation11 + $0x6b8] sm:$0xf0] }
 0x36d   :  { %v1545_v35 = vmax.f32 %v1516_v34, 0.0  ;;  %v6323_v34 = vld [vmem:[#allocation11 + $0x6e4] sm:$0xf0]  ;;  %2274 = vmatpush.bf16.msrb.mxu3 %v5169_v31  ;;  %v5080_v31 = vld [vmem:[#allocation11 + $0x640] sm:$0xf] }
 0x36e   :  { %2012 = vmatpush.bf16.msra.mxu2 %v4921_v25  ;;  %v5161_v14 = vor.u32 %v6323_v34, %v5160_v33  ;;  %v5136_v25 = vld [vmem:[#allocation11 + $0x6b0] sm:$0xf]  ;;  %v6302_v33 = vld [vmem:[#allocation11 + $0x644] sm:$0xf] }
 0x36f   :  { %v1547_v36 = vpack.c.bf16 %v1545_v35, %v1545_v35  ;;  %v5173_v35 = vor.u32 %v6324_v30, %v5170_v32  ;;  %v5137_v28 = vor.u32 %v6317_v26, %v5136_v25  ;;  %v5141_v30 = vor.u32 %v6316_v27, %v5138_v29  ;;  %v6303_v32 = vld [vmem:[#allocation11 + $0x644] sm:$0xf0]  ;;  %v5232_v25 = vld [vmem:[#allocation11 + $0x770] sm:$0xf]  ;;  %v6341_v27 = vld [vmem:[#allocation11 + $0x774] sm:$0xf0] }
 0x370   :  { %v1504_v37 = vpop.f32.mrf.mxu2  ;;  %v5081_v34 = vor.u32 %v6303_v32, %v5080_v31  ;;  %v5234_v29 = vld [vmem:[#allocation11 + $0x778] sm:$0xf0]  ;;  %v5233_v31 = vor.u32 %v6341_v27, %v5232_v25  ;;  %v6346_v27 = vld [vmem:[#allocation11 + $0x7a4] sm:$0xf] }
 0x371   :  { %1757 = vmatmul.bf16.vlgmr.msrb.gmra.mxu2 %v1547_v36  ;;  %1783 = vmatmul.bf16.vlgmr.msra.gmra.mxu0 %v1547_v36  ;;  %v6322_v36 = vld [vmem:[#allocation11 + $0x6e4] sm:$0xf]  ;;  %v5162_v37 = vld [vmem:[#allocation11 + $0x6e8] sm:$0xf0] }
 0x372   :  { %2300 = vmatpush.bf16.msra.mxu1 %v5173_v35  ;;  %v5165_v43 = vor.u32 %v6322_v36, %v5162_v37  ;;  %2261 = vmatpush.bf16.msrb.mxu2 %v5105_v44  ;;  %v5082_v35 = vld [vmem:[#allocation11 + $0x648] sm:$0xf0]  ;;  %v5128_v36 = vld [vmem:[#allocation11 + $0x6a0] sm:$0xf]  ;;  %v6315_v37 = vld [vmem:[#allocation11 + $0x6a4] sm:$0xf0] }
 0x373   :  { %2287 = vmatpush.bf16.msra.mxu0 %v5109_v45  ;;  %2275 = vmatpush.bf16.msrb.mxu3 %v5161_v14  ;;  %v5085_v39 = vor.u32 %v6302_v33, %v5082_v35  ;;  %v5129_v14 = vor.u32 %v6315_v37, %v5128_v36  ;;  %v6301_v44 = vld [vmem:[#allocation11 + $0x634] sm:$0xf0]  ;;  %v6300_v45 = vld [vmem:[#allocation11 + $0x634] sm:$0xf]  ;;  %v5280_v33 = vld [vmem:[#allocation11 + $0x7d0] sm:$0xf] }
 0x374   :  { %v5077_v48 = vor.u32 %v6300_v45, %v5074_v47  ;;  %v6352_v35 = vld [vmem:[#allocation11 + $0x7d4] sm:$0xf]  ;;  %v5282_v36 = vld [vmem:[#allocation11 + $0x7d8] sm:$0xf0]  ;;  %v5224_v37 = vld [vmem:[#allocation11 + $0x760] sm:$0xf] }
 0x375   :  { %v6351_v45 = vld [vmem:[#allocation11 + $0x7c4] sm:$0xf0]  ;;  %v5216_v47 = vld [vmem:[#allocation11 + $0x750] sm:$0xf] }
 0x376   :  { %2301 = vmatpush.bf16.msra.mxu1 %v5165_v43  ;;  %2262 = vmatpush.bf16.msrb.mxu2 %v5097_v52  ;;  %v5072_v43 = vld [vmem:[#allocation11 + $0x630] sm:$0xf]  ;;  %v6312_v52 = vld [vmem:[#allocation11 + $0x694] sm:$0xf] }
 0x377   :  { %2288 = vmatpush.bf16.msra.mxu0 %v5101_v56  ;;  %2276 = vmatpush.bf16.msrb.mxu3 %v5153_v55  ;;  %v5073_v46 = vor.u32 %v6301_v44, %v5072_v43  ;;  %v5125_v54 = vor.u32 %v6312_v52, %v5122_v53  ;;  %v5064_v55 = vld [vmem:[#allocation11 + $0x620] sm:$0xf]  ;;  %v6299_v56 = vld [vmem:[#allocation11 + $0x624] sm:$0xf0]  ;;  %v5229_v43 = vor.u32 %v6338_v16, %v5226_v40  ;;  %v5218_v52 = vld [vmem:[#allocation11 + $0x758] sm:$0xf0] }
 0x378   :  { %v5065_v58 = vor.u32 %v6299_v56, %v5064_v55  ;;  %v5272_v44 = vld [vmem:[#allocation11 + $0x7c0] sm:$0xf]  ;;  %v1839_v56 = vld [vmem:[#allocation12 + $0xa] sm:$0x3]  ;;  %v5250_v16 = vld [vmem:[#allocation11 + $0x798] sm:$0xf0] }
 0x37a   :  { %2302 = vmatpush.bf16.msra.mxu1 %v5157_v59  ;;  %2263 = vmatpush.bf16.msrb.mxu2 %v5089_v41  ;;  %v5066_v59 = vld [vmem:[#allocation11 + $0x628] sm:$0xf0]  ;;  %v5117_v41 = vor.u32 %v6310_v62, %v5114_v0  ;;  %v1841_v0 = vperm.slane %v1839_v56, 0 }
 0x37b   :  { %2289 = vmatpush.bf16.msra.mxu0 %v5093_v1  ;;  %2277 = vmatpush.bf16.msrb.mxu3 %v5145_v4  ;;  %v5069_v60 = vor.u32 %v6298_v57, %v5066_v59  ;;  %v5056_v1 = vld [vmem:[#allocation11 + $0x610] sm:$0xf]  ;;  %v6296_v4 = vld [vmem:[#allocation11 + $0x614] sm:$0xf]  ;;  %v5273_v57 = vor.u32 %v6351_v45, %v5272_v44  ;;  %v1842_v59 = vperm.slane %v1839_v56, 1 }
 0x37c   :  { %v6330_v44 = vld [vmem:[#allocation11 + $0x724] sm:$0xf] }
 0x37e   :  { %2303 = vmatpush.bf16.msra.mxu1 %v5149_v5  ;;  %2264 = vmatpush.bf16.msrb.mxu2 %v5081_v34  ;;  %v5058_v5 = vld [vmem:[#allocation11 + $0x618] sm:$0xf0]  ;;  %v6353_v34 = vld [vmem:[#allocation11 + $0x7d4] sm:$0xf0] }
 0x37f   :  { %2278 = vmatpush.bf16.msrb.mxu3 %v5137_v28  ;;  %2290 = vmatpush.bf16.msra.mxu0 %v5085_v39  ;;  %v6340_v28 = vld [vmem:[#allocation11 + $0x774] sm:$0xf]  ;;  %v6339_v39 = vld [vmem:[#allocation11 + $0x764] sm:$0xf0] }
 0x380   :  { %v5237_v32 = vor.u32 %v6340_v28, %v5234_v29  ;;  %v5258_v28 = vld [vmem:[#allocation11 + $0x7a8] sm:$0xf0] }
 0x381   :  { %v5261_v29 = vor.u32 %v6346_v27, %v5258_v28  ;;  %v6370_v27 = vld [vmem:[#allocation11 + $0x864] sm:$0xf]  ;;  %v5354_v28 = vld [vmem:[#allocation11 + $0x868] sm:$0xf0] }
 0x382   :  { %2304 = vmatpush.bf16.msra.mxu1 %v5141_v30  ;;  %2265 = vmatpush.bf16.msrb.mxu2 %v5073_v46  ;;  %v5285_v46 = vor.u32 %v6352_v35, %v5282_v36  ;;  %v5248_v36 = vld [vmem:[#allocation11 + $0x790] sm:$0xf] }
 0x383   :  { %2279 = vmatpush.bf16.msrb.mxu3 %v5129_v14  ;;  %2291 = vmatpush.bf16.msra.mxu0 %v5077_v48  ;;  %v5225_v14 = vor.u32 %v6339_v39, %v5224_v37  ;;  %v6337_v48 = vld [vmem:[#allocation11 + $0x754] sm:$0xf0] }
 0x384   :  { %v5217_v53 = vor.u32 %v6337_v48, %v5216_v47  ;;  %v6345_v37 = vld [vmem:[#allocation11 + $0x794] sm:$0xf0]  ;;  %v5240_v48 = vld [vmem:[#allocation11 + $0x780] sm:$0xf] }
 0x385   :  { %v5249_v39 = vor.u32 %v6345_v37, %v5248_v36  ;;  %v6368_v36 = vld [vmem:[#allocation11 + $0x854] sm:$0xf]  ;;  %v6382_v37 = vld [vmem:[#allocation11 + $0x8c4] sm:$0xf] }
 0x386   :  { %2305 = vmatpush.bf16.msra.mxu1 %v5133_v42  ;;  %2266 = vmatpush.bf16.msrb.mxu2 %v5065_v58  ;;  %v5281_v42 = vor.u32 %v6353_v34, %v5280_v33  ;;  %v5202_v34 = vld [vmem:[#allocation11 + $0x738] sm:$0xf0] }
 0x387   :  { %2280 = vmatpush.bf16.msrb.mxu3 %v5121_v51  ;;  %2292 = vmatpush.bf16.msra.mxu0 %v5069_v60  ;;  %v5274_v51 = vld [vmem:[#allocation11 + $0x7c8] sm:$0xf0] }
 0x388   :  { %v5277_v58 = vor.u32 %v6350_v50, %v5274_v51  ;;  %v6342_v50 = vld [vmem:[#allocation11 + $0x784] sm:$0xf] }
 0x38a   :  { %2306 = vmatpush.bf16.msra.mxu1 %v5125_v54  ;;  %v5221_v54 = vor.u32 %v6336_v49, %v5218_v52  ;;  %v6343_v49 = vld [vmem:[#allocation11 + $0x784] sm:$0xf0]  ;;  %v5242_v52 = vld [vmem:[#allocation11 + $0x788] sm:$0xf0] }
 0x38b   :  { %2281 = vmatpush.bf16.msrb.mxu3 %v5113_v63  ;;  %v5241_v51 = vor.u32 %v6343_v49, %v5240_v48 }
 0x38e   :  { %2307 = vmatpush.bf16.msra.mxu1 %v5117_v41 }
 0x3e8   :  { %v1797_v2 = vpop.f32.mrf.mxu1 }
 0x3ee   :  { %v1771_v7 = vpop.f32.mrf.mxu3  ;;  %v1784_v8 = vpop.f32.mrf.mxu0 }
 0x3ef   :  { %v1785_v9 = vadd.f32 %v1784_v8, %v1586_v6  ;;  %v5061_v6 = vor.u32 %v6296_v4, %v5058_v5  ;;  %v6295_v8 = vld [vmem:[#allocation11 + $0x604] sm:$0xf0] }
 0x3f0   :  { %v1799_v10 = vpop.f32.mrf.mxu1 }
 0x3f1   :  { %v1798_v11 = vadd.f32 %v1797_v2, %v1785_v9  ;;  %v6297_v2 = vld [vmem:[#allocation11 + $0x614] sm:$0xf0]  ;;  %2293 = vmatpush.bf16.msra.mxu0 %v5061_v6  ;;  %v6294_v9 = vld [vmem:[#allocation11 + $0x604] sm:$0xf] }
 0x3f2   :  { %v5057_v3 = vor.u32 %v6297_v2, %v5056_v1 }
 0x3f3   :  { %v1802_v13 = vmax.f32 %v1798_v11, 0.0  ;;  %v5050_v11 = vld [vmem:[#allocation11 + $0x608] sm:$0xf0] }
 0x3f4   :  { %v1758_v15 = vpop.f32.mrf.mxu2  ;;  %2267 = vmatpush.bf16.msrb.mxu2 %v5057_v3 }
 0x3f5   :  { %v1804_v17 = vpack.c.bf16 %v1802_v13, %v1802_v13  ;;  %v1759_v18 = vadd.f32 %v1758_v15, %v1585_v12  ;;  %v5053_v12 = vor.u32 %v6294_v9, %v5050_v11  ;;  %v5296_v13 = vld [vmem:[#allocation11 + $0x7f0] sm:$0xf]  ;;  %v6357_v15 = vld [vmem:[#allocation11 + $0x7f4] sm:$0xf0] }
 0x3f6   :  { %v1773_v19 = vpop.f32.mrf.mxu3  ;;  %v1786_v20 = vpop.f32.mrf.mxu0  ;;  %v6349_v11 = vld [vmem:[#allocation11 + $0x7b4] sm:$0xf0] }
 0x3f7   :  { %v1772_v21 = vadd.f32 %v1771_v7, %v1759_v18  ;;  %2026 = vmatmul.bf16.vlgmr.msra.gmra.mxu3 %v1804_v17  ;;  %2052 = vmatmul.bf16.vlgmr.msrb.gmra.mxu1 %v1804_v17  ;;  %v5048_v7 = vld [vmem:[#allocation11 + $0x600] sm:$0xf]  ;;  %v6356_v17 = vld [vmem:[#allocation11 + $0x7f4] sm:$0xf]  ;;  %v5297_v18 = vor.u32 %v6357_v15, %v5296_v13  ;;  %v5298_v19 = vld [vmem:[#allocation11 + $0x7f8] sm:$0xf0] }
 0x3f8   :  { %v5049_v10 = vor.u32 %v6295_v8, %v5048_v7  ;;  %2294 = vmatpush.bf16.msra.mxu0 %v5053_v12  ;;  %v5288_v20 = vld [vmem:[#allocation11 + $0x7e0] sm:$0xf]  ;;  %v6348_v12 = vld [vmem:[#allocation11 + $0x7b4] sm:$0xf]  ;;  %v5266_v15 = vld [vmem:[#allocation11 + $0x7b8] sm:$0xf0] }
 0x3f9   :  { %v1801_v22 = vmax.f32 %v1772_v21, 0.0  ;;  %v6355_v21 = vld [vmem:[#allocation11 + $0x7e4] sm:$0xf0]  ;;  %2530 = vmatpush.bf16.msra.mxu3 %v5297_v18  ;;  %v5208_v18 = vld [vmem:[#allocation11 + $0x740] sm:$0xf] }
 0x3fa   :  { %2268 = vmatpush.bf16.msrb.mxu2 %v5049_v10  ;;  %v5289_v26 = vor.u32 %v6355_v21, %v5288_v20  ;;  %v5264_v10 = vld [vmem:[#allocation11 + $0x7b0] sm:$0xf]  ;;  %v6334_v20 = vld [vmem:[#allocation11 + $0x744] sm:$0xf] }
 0x3fb   :  { %v1803_v23 = vpack.c.bf16 %v1801_v22, %v1801_v22  ;;  %v5301_v22 = vor.u32 %v6356_v17, %v5298_v19  ;;  %v5265_v13 = vor.u32 %v6349_v11, %v5264_v10  ;;  %v5269_v17 = vor.u32 %v6348_v12, %v5266_v15  ;;  %v6335_v19 = vld [vmem:[#allocation11 + $0x744] sm:$0xf0]  ;;  %v5360_v10 = vld [vmem:[#allocation11 + $0x870] sm:$0xf]  ;;  %v6373_v12 = vld [vmem:[#allocation11 + $0x874] sm:$0xf0] }
 0x3fc   :  { %v1760_v24 = vpop.f32.mrf.mxu2  ;;  %v5209_v21 = vor.u32 %v6335_v19, %v5208_v18  ;;  %v5362_v15 = vld [vmem:[#allocation11 + $0x878] sm:$0xf0]  ;;  %v5361_v18 = vor.u32 %v6373_v12, %v5360_v10  ;;  %v6378_v12 = vld [vmem:[#allocation11 + $0x8a4] sm:$0xf] }
 0x3fd   :  { %2013 = vmatmul.bf16.vlgmr.msra.gmra.mxu2 %v1803_v23  ;;  %2039 = vmatmul.bf16.vlgmr.msrb.gmra.mxu0 %v1803_v23  ;;  %v6354_v23 = vld [vmem:[#allocation11 + $0x7e4] sm:$0xf]  ;;  %v5290_v24 = vld [vmem:[#allocation11 + $0x7e8] sm:$0xf0] }
 0x3fe   :  { %2556 = vmatpush.bf16.msrb.mxu1 %v5301_v22  ;;  %v5293_v30 = vor.u32 %v6354_v23, %v5290_v24  ;;  %2517 = vmatpush.bf16.msra.mxu2 %v5233_v31  ;;  %v5210_v22 = vld [vmem:[#allocation11 + $0x748] sm:$0xf0]  ;;  %v5256_v23 = vld [vmem:[#allocation11 + $0x7a0] sm:$0xf]  ;;  %v6347_v24 = vld [vmem:[#allocation11 + $0x7a4] sm:$0xf0] }
 0x3ff   :  { %2543 = vmatpush.bf16.msrb.mxu0 %v5237_v32  ;;  %2531 = vmatpush.bf16.msra.mxu3 %v5289_v26  ;;  %v5213_v25 = vor.u32 %v6334_v20, %v5210_v22  ;;  %v5257_v26 = vor.u32 %v6347_v24, %v5256_v23  ;;  %v6333_v31 = vld [vmem:[#allocation11 + $0x734] sm:$0xf0]  ;;  %v6332_v32 = vld [vmem:[#allocation11 + $0x734] sm:$0xf]  ;;  %v5408_v20 = vld [vmem:[#allocation11 + $0x8d0] sm:$0xf] }
 0x400   :  { %v5205_v35 = vor.u32 %v6332_v32, %v5202_v34  ;;  %v6384_v22 = vld [vmem:[#allocation11 + $0x8d4] sm:$0xf]  ;;  %v5410_v23 = vld [vmem:[#allocation11 + $0x8d8] sm:$0xf0]  ;;  %v5352_v24 = vld [vmem:[#allocation11 + $0x860] sm:$0xf] }
 0x401   :  { %v6383_v32 = vld [vmem:[#allocation11 + $0x8c4] sm:$0xf0]  ;;  %v5344_v34 = vld [vmem:[#allocation11 + $0x850] sm:$0xf] }
 0x402   :  { %2557 = vmatpush.bf16.msrb.mxu1 %v5293_v30  ;;  %2518 = vmatpush.bf16.msra.mxu2 %v5225_v14  ;;  %v5200_v30 = vld [vmem:[#allocation11 + $0x730] sm:$0xf]  ;;  %v6344_v14 = vld [vmem:[#allocation11 + $0x794] sm:$0xf] }
 0x403   :  { %2544 = vmatpush.bf16.msrb.mxu0 %v5229_v43  ;;  %2532 = vmatpush.bf16.msra.mxu3 %v5281_v42  ;;  %v5201_v33 = vor.u32 %v6333_v31, %v5200_v30  ;;  %v5253_v40 = vor.u32 %v6344_v14, %v5250_v16  ;;  %v5192_v42 = vld [vmem:[#allocation11 + $0x720] sm:$0xf]  ;;  %v6331_v43 = vld [vmem:[#allocation11 + $0x724] sm:$0xf0]  ;;  %v5357_v30 = vor.u32 %v6370_v27, %v5354_v28  ;;  %v5346_v14 = vld [vmem:[#allocation11 + $0x858] sm:$0xf0] }
 0x404   :  { %v5193_v45 = vor.u32 %v6331_v43, %v5192_v42  ;;  %v5400_v31 = vld [vmem:[#allocation11 + $0x8c0] sm:$0xf]  ;;  %v2095_v43 = vld [vmem:[#allocation12 + $0xc] sm:$0x3]  ;;  %v5378_v27 = vld [vmem:[#allocation11 + $0x898] sm:$0xf0] }
 0x406   :  { %2558 = vmatpush.bf16.msrb.mxu1 %v5285_v46  ;;  %2519 = vmatpush.bf16.msra.mxu2 %v5217_v53  ;;  %v5194_v46 = vld [vmem:[#allocation11 + $0x728] sm:$0xf0]  ;;  %v5245_v53 = vor.u32 %v6342_v50, %v5242_v52  ;;  %v2097_v52 = vperm.slane %v2095_v43, 0 }
 0x407   :  { %2545 = vmatpush.bf16.msrb.mxu0 %v5221_v54  ;;  %2533 = vmatpush.bf16.msra.mxu3 %v5273_v57  ;;  %v5197_v47 = vor.u32 %v6330_v44, %v5194_v46  ;;  %v5184_v54 = vld [vmem:[#allocation11 + $0x710] sm:$0xf]  ;;  %v6328_v57 = vld [vmem:[#allocation11 + $0x714] sm:$0xf]  ;;  %v5401_v44 = vor.u32 %v6383_v32, %v5400_v31  ;;  %v2098_v46 = vperm.slane %v2095_v43, 1 }
 0x408   :  { %v6362_v31 = vld [vmem:[#allocation11 + $0x824] sm:$0xf] }
 0x40a   :  { %2559 = vmatpush.bf16.msrb.mxu1 %v5277_v58  ;;  %2520 = vmatpush.bf16.msra.mxu2 %v5209_v21  ;;  %v5186_v58 = vld [vmem:[#allocation11 + $0x718] sm:$0xf0]  ;;  %v6385_v21 = vld [vmem:[#allocation11 + $0x8d4] sm:$0xf0] }
 0x40b   :  { %2534 = vmatpush.bf16.msra.mxu3 %v5265_v13  ;;  %2546 = vmatpush.bf16.msrb.mxu0 %v5213_v25  ;;  %v6372_v13 = vld [vmem:[#allocation11 + $0x874] sm:$0xf]  ;;  %v6371_v25 = vld [vmem:[#allocation11 + $0x864] sm:$0xf0] }
 0x40c   :  { %v5365_v19 = vor.u32 %v6372_v13, %v5362_v15  ;;  %v5386_v13 = vld [vmem:[#allocation11 + $0x8a8] sm:$0xf0] }
 0x40d   :  { %v5389_v15 = vor.u32 %v6378_v12, %v5386_v13  ;;  %v6402_v12 = vld [vmem:[#allocation14 + $0x64] sm:$0xf]  ;;  %v5482_v13 = vld [vmem:[#allocation14 + $0x68] sm:$0xf0] }
 0x40e   :  { %2560 = vmatpush.bf16.msrb.mxu1 %v5269_v17  ;;  %2521 = vmatpush.bf16.msra.mxu2 %v5201_v33  ;;  %v5413_v33 = vor.u32 %v6384_v22, %v5410_v23  ;;  %v5376_v23 = vld [vmem:[#allocation11 + $0x890] sm:$0xf] }
 0x40f   :  { %2535 = vmatpush.bf16.msra.mxu3 %v5257_v26  ;;  %2547 = vmatpush.bf16.msrb.mxu0 %v5205_v35  ;;  %v5353_v26 = vor.u32 %v6371_v25, %v5352_v24  ;;  %v6369_v35 = vld [vmem:[#allocation11 + $0x854] sm:$0xf0] }
 0x410   :  { %v5345_v16 = vor.u32 %v6369_v35, %v5344_v34  ;;  %v6377_v24 = vld [vmem:[#allocation11 + $0x894] sm:$0xf0]  ;;  %v5368_v35 = vld [vmem:[#allocation11 + $0x880] sm:$0xf] }
 0x411   :  { %v5377_v25 = vor.u32 %v6377_v24, %v5376_v23  ;;  %v6400_v23 = vld [vmem:[#allocation14 + $0x54] sm:$0xf]  ;;  %v6414_v24 = vld [vmem:[#allocation14 + $0xc4] sm:$0xf] }
 0x412   :  { %2561 = vmatpush.bf16.msrb.mxu1 %v5261_v29  ;;  %2522 = vmatpush.bf16.msra.mxu2 %v5193_v45  ;;  %v5409_v29 = vor.u32 %v6385_v21, %v5408_v20  ;;  %v5330_v21 = vld [vmem:[#allocation11 + $0x838] sm:$0xf0] }
 0x413   :  { %2536 = vmatpush.bf16.msra.mxu3 %v5249_v39  ;;  %2548 = vmatpush.bf16.msrb.mxu0 %v5197_v47  ;;  %v5402_v39 = vld [vmem:[#allocation11 + $0x8c8] sm:$0xf0] }
 0x414   :  { %v5405_v45 = vor.u32 %v6382_v37, %v5402_v39  ;;  %v6374_v37 = vld [vmem:[#allocation11 + $0x884] sm:$0xf] }
 0x416   :  { %2562 = vmatpush.bf16.msrb.mxu1 %v5253_v40  ;;  %v5349_v40 = vor.u32 %v6368_v36, %v5346_v14  ;;  %v6375_v36 = vld [vmem:[#allocation11 + $0x884] sm:$0xf0]  ;;  %v5370_v14 = vld [vmem:[#allocation11 + $0x888] sm:$0xf0] }
 0x417   :  { %2537 = vmatpush.bf16.msra.mxu3 %v5241_v51  ;;  %v5369_v39 = vor.u32 %v6375_v36, %v5368_v35  ;;  %v5466_v35 = vld [vmem:[#allocation14 + $0x48] sm:$0xf0] }
 0x41a   :  { %2563 = vmatpush.bf16.msrb.mxu1 %v5245_v53 }
 0x474   :  { %v2053_v55 = vpop.f32.mrf.mxu1 }
 0x47a   :  { %v2027_v60 = vpop.f32.mrf.mxu3  ;;  %v2040_v38 = vpop.f32.mrf.mxu0 }
 0x47b   :  { %v2041_v61 = vadd.f32 %v2040_v38, %v1842_v59  ;;  %v5189_v59 = vor.u32 %v6328_v57, %v5186_v58  ;;  %v6327_v38 = vld [vmem:[#allocation11 + $0x704] sm:$0xf0] }
 0x47c   :  { %v2055_v62 = vpop.f32.mrf.mxu1 }
 0x47d   :  { %v2054_v63 = vadd.f32 %v2053_v55, %v2041_v61  ;;  %v6329_v55 = vld [vmem:[#allocation11 + $0x714] sm:$0xf0]  ;;  %2549 = vmatpush.bf16.msrb.mxu0 %v5189_v59  ;;  %v6326_v61 = vld [vmem:[#allocation11 + $0x704] sm:$0xf] }
 0x47e   :  { %v5185_v56 = vor.u32 %v6329_v55, %v5184_v54 }
 0x47f   :  { %v2058_v41 = vmax.f32 %v2054_v63, 0.0  ;;  %v5178_v63 = vld [vmem:[#allocation11 + $0x708] sm:$0xf0] }
 0x480   :  { %v2014_v1 = vpop.f32.mrf.mxu2  ;;  %2523 = vmatpush.bf16.msra.mxu2 %v5185_v56 }
 0x481   :  { %v2060_v2 = vpack.c.bf16 %v2058_v41, %v2058_v41  ;;  %v2015_v3 = vadd.f32 %v2014_v1, %v1841_v0  ;;  %v5181_v0 = vor.u32 %v6326_v61, %v5178_v63  ;;  %v5424_v41 = vld [vmem:[#allocation11 + $0x8f0] sm:$0xf]  ;;  %v6389_v1 = vld [vmem:[#allocation11 + $0x8f4] sm:$0xf0] }
 0x482   :  { %v2029_v4 = vpop.f32.mrf.mxu3  ;;  %v2042_v5 = vpop.f32.mrf.mxu0  ;;  %v6381_v63 = vld [vmem:[#allocation11 + $0x8b4] sm:$0xf0] }
 0x483   :  { %v2028_v6 = vadd.f32 %v2027_v60, %v2015_v3  ;;  %2282 = vmatmul.bf16.vlgmr.msrb.gmra.mxu3 %v2060_v2  ;;  %2308 = vmatmul.bf16.vlgmr.msra.gmra.mxu1 %v2060_v2  ;;  %v5176_v60 = vld [vmem:[#allocation11 + $0x700] sm:$0xf]  ;;  %v6388_v2 = vld [vmem:[#allocation11 + $0x8f4] sm:$0xf]  ;;  %v5425_v3 = vor.u32 %v6389_v1, %v5424_v41  ;;  %v5426_v4 = vld [vmem:[#allocation11 + $0x8f8] sm:$0xf0] }
 0x484   :  { %v5177_v62 = vor.u32 %v6327_v38, %v5176_v60  ;;  %2550 = vmatpush.bf16.msrb.mxu0 %v5181_v0  ;;  %v5416_v5 = vld [vmem:[#allocation11 + $0x8e0] sm:$0xf]  ;;  %v6380_v0 = vld [vmem:[#allocation11 + $0x8b4] sm:$0xf]  ;;  %v5394_v1 = vld [vmem:[#allocation11 + $0x8b8] sm:$0xf0] }
 0x485   :  { %v2057_v7 = vmax.f32 %v2028_v6, 0.0  ;;  %v6387_v6 = vld [vmem:[#allocation11 + $0x8e4] sm:$0xf0]  ;;  %2786 = vmatpush.bf16.msrb.mxu3 %v5425_v3  ;;  %v5336_v3 = vld [vmem:[#allocation11 + $0x840] sm:$0xf] }
 0x486   :  { %2524 = vmatpush.bf16.msra.mxu2 %v5177_v62  ;;  %v5417_v11 = vor.u32 %v6387_v6, %v5416_v5  ;;  %v5392_v62 = vld [vmem:[#allocation11 + $0x8b0] sm:$0xf]  ;;  %v6366_v5 = vld [vmem:[#allocation11 + $0x844] sm:$0xf] }
 0x487   :  { %v2059_v8 = vpack.c.bf16 %v2057_v7, %v2057_v7  ;;  %v5429_v7 = vor.u32 %v6388_v2, %v5426_v4  ;;  %v5393_v41 = vor.u32 %v6381_v63, %v5392_v62  ;;  %v5397_v2 = vor.u32 %v6380_v0, %v5394_v1  ;;  %v6367_v4 = vld [vmem:[#allocation11 + $0x844] sm:$0xf0]  ;;  %v5488_v62 = vld [vmem:[#allocation14 + $0x70] sm:$0xf]  ;;  %v5490_v1 = vld [vmem:[#allocation14 + $0x78] sm:$0xf0] }
 0x488   :  { %v2016_v9 = vpop.f32.mrf.mxu2  ;;  %v5337_v6 = vor.u32 %v6367_v4, %v5336_v3  ;;  %v6405_v0 = vld [vmem:[#allocation14 + $0x74] sm:$0xf0] }
 0x489   :  { %2269 = vmatmul.bf16.vlgmr.msrb.gmra.mxu2 %v2059_v8  ;;  %2295 = vmatmul.bf16.vlgmr.msra.gmra.mxu0 %v2059_v8  ;;  %v6386_v8 = vld [vmem:[#allocation11 + $0x8e4] sm:$0xf]  ;;  %v5418_v9 = vld [vmem:[#allocation11 + $0x8e8] sm:$0xf0]  ;;  %v5489_v3 = vor.u32 %v6405_v0, %v5488_v62 }
 0x48a   :  { %2812 = vmatpush.bf16.msra.mxu1 %v5429_v7  ;;  %v5421_v17 = vor.u32 %v6386_v8, %v5418_v9  ;;  %2773 = vmatpush.bf16.msrb.mxu2 %v5361_v18  ;;  %v5338_v7 = vld [vmem:[#allocation11 + $0x848] sm:$0xf0]  ;;  %v5384_v8 = vld [vmem:[#allocation11 + $0x8a0] sm:$0xf]  ;;  %v6379_v9 = vld [vmem:[#allocation11 + $0x8a4] sm:$0xf0] }
 0x48b   :  { %2799 = vmatpush.bf16.msra.mxu0 %v5365_v19  ;;  %2787 = vmatpush.bf16.msrb.mxu3 %v5417_v11  ;;  %v5341_v10 = vor.u32 %v6366_v5, %v5338_v7  ;;  %v5385_v11 = vor.u32 %v6379_v9, %v5384_v8  ;;  %v6365_v18 = vld [vmem:[#allocation11 + $0x834] sm:$0xf0]  ;;  %v6364_v19 = vld [vmem:[#allocation11 + $0x834] sm:$0xf]  ;;  %v5536_v5 = vld [vmem:[#allocation14 + $0xd0] sm:$0xf] }
 0x48c   :  { %v5333_v22 = vor.u32 %v6364_v19, %v5330_v21  ;;  %v6416_v7 = vld [vmem:[#allocation14 + $0xd4] sm:$0xf]  ;;  %v5538_v8 = vld [vmem:[#allocation14 + $0xd8] sm:$0xf0]  ;;  %v5480_v9 = vld [vmem:[#allocation14 + $0x60] sm:$0xf] }
 0x48d   :  { %v6415_v19 = vld [vmem:[#allocation14 + $0xc4] sm:$0xf0]  ;;  %v5472_v21 = vld [vmem:[#allocation14 + $0x50] sm:$0xf]  ;;  %v6409_v62 = vld [vmem:[#allocation14 + $0x94] sm:$0xf0] }
 0x48e   :  { %2813 = vmatpush.bf16.msra.mxu1 %v5421_v17  ;;  %2774 = vmatpush.bf16.msrb.mxu2 %v5353_v26  ;;  %v5328_v17 = vld [vmem:[#allocation11 + $0x830] sm:$0xf]  ;;  %v6376_v26 = vld [vmem:[#allocation11 + $0x894] sm:$0xf] }
 0x48f   :  { %2800 = vmatpush.bf16.msra.mxu0 %v5357_v30  ;;  %2788 = vmatpush.bf16.msrb.mxu3 %v5409_v29  ;;  %v5329_v20 = vor.u32 %v6365_v18, %v5328_v17  ;;  %v5381_v28 = vor.u32 %v6376_v26, %v5378_v27  ;;  %v5320_v29 = vld [vmem:[#allocation11 + $0x820] sm:$0xf]  ;;  %v6363_v30 = vld [vmem:[#allocation11 + $0x824] sm:$0xf0]  ;;  %v5485_v17 = vor.u32 %v6402_v12, %v5482_v13  ;;  %v5528_v18 = vld [vmem:[#allocation14 + $0xc0] sm:$0xf] }
 0x490   :  { %v5321_v32 = vor.u32 %v6363_v30, %v5320_v29  ;;  %v5474_v26 = vld [vmem:[#allocation14 + $0x58] sm:$0xf0]  ;;  %v5464_v30 = vld [vmem:[#allocation14 + $0x40] sm:$0xf] }
 0x491   :  { %v7032_v27 = vld [vmem:[#allocation12 + $0xe] sm:$0x3]  ;;  %v5477_v29 = vor.u32 %v6400_v23, %v5474_v26 }
 0x492   :  { %2814 = vmatpush.bf16.msra.mxu1 %v5413_v33  ;;  %2775 = vmatpush.bf16.msrb.mxu2 %v5345_v16  ;;  %v5322_v33 = vld [vmem:[#allocation11 + $0x828] sm:$0xf0]  ;;  %v5373_v16 = vor.u32 %v6374_v37, %v5370_v14  ;;  %v5520_v37 = vld [vmem:[#allocation14 + $0xb0] sm:$0xf]  ;;  %v6412_v14 = vld [vmem:[#allocation14 + $0xb4] sm:$0xf] }
 0x493   :  { %2801 = vmatpush.bf16.msra.mxu0 %v5349_v40  ;;  %2789 = vmatpush.bf16.msrb.mxu3 %v5401_v44  ;;  %v5325_v34 = vor.u32 %v6362_v31, %v5322_v33  ;;  %v5312_v40 = vld [vmem:[#allocation11 + $0x810] sm:$0xf]  ;;  %v6360_v44 = vld [vmem:[#allocation11 + $0x814] sm:$0xf]  ;;  %v6399_v33 = vld [vmem:[#allocation14 + $0x44] sm:$0xf0] }
 0x496   :  { %2815 = vmatpush.bf16.msra.mxu1 %v5405_v45  ;;  %2776 = vmatpush.bf16.msrb.mxu2 %v5337_v6  ;;  %v5314_v45 = vld [vmem:[#allocation11 + $0x818] sm:$0xf0]  ;;  %v6417_v6 = vld [vmem:[#allocation14 + $0xd4] sm:$0xf0] }
 0x497   :  { %2790 = vmatpush.bf16.msrb.mxu3 %v5393_v41  ;;  %2802 = vmatpush.bf16.msra.mxu0 %v5341_v10  ;;  %v6404_v41 = vld [vmem:[#allocation14 + $0x74] sm:$0xf]  ;;  %v6403_v10 = vld [vmem:[#allocation14 + $0x64] sm:$0xf0] }
 0x498   :  { %v5493_v4 = vor.u32 %v6404_v41, %v5490_v1  ;;  %v6408_v41 = vld [vmem:[#allocation14 + $0x94] sm:$0xf]  ;;  %v5448_v1 = vld [vmem:[#allocation14 + $0x20] sm:$0xf] }
 0x49a   :  { %2816 = vmatpush.bf16.msra.mxu1 %v5397_v2  ;;  %2777 = vmatpush.bf16.msrb.mxu2 %v5329_v20  ;;  %v5541_v20 = vor.u32 %v6416_v7, %v5538_v8 }
 0x49b   :  { %2791 = vmatpush.bf16.msrb.mxu3 %v5385_v11  ;;  %2803 = vmatpush.bf16.msra.mxu0 %v5333_v22  ;;  %v5481_v11 = vor.u32 %v6403_v10, %v5480_v9  ;;  %v6401_v22 = vld [vmem:[#allocation14 + $0x54] sm:$0xf0] }
 0x49e   :  { %2817 = vmatpush.bf16.msra.mxu1 %v5389_v15  ;;  %2778 = vmatpush.bf16.msrb.mxu2 %v5321_v32  ;;  %v5537_v15 = vor.u32 %v6417_v6, %v5536_v5  ;;  %v5529_v32 = vor.u32 %v6415_v19, %v5528_v18  ;;  %v5450_v5 = vld [vmem:[#allocation14 + $0x28] sm:$0xf0] }
 0x49f   :  { %2792 = vmatpush.bf16.msrb.mxu3 %v5377_v25  ;;  %2804 = vmatpush.bf16.msra.mxu0 %v5325_v34  ;;  %v5530_v25 = vld [vmem:[#allocation14 + $0xc8] sm:$0xf0]  ;;  %v6398_v34 = vld [vmem:[#allocation14 + $0x44] sm:$0xf] }
 0x4a0   :  { %v5533_v36 = vor.u32 %v6414_v24, %v5530_v25 }
 0x4a2   :  { %2818 = vmatpush.bf16.msra.mxu1 %v5381_v28  ;;  %v5473_v28 = vor.u32 %v6401_v22, %v5472_v21  ;;  %v6406_v21 = vld [vmem:[#allocation14 + $0x84] sm:$0xf]  ;;  %v5498_v22 = vld [vmem:[#allocation14 + $0x88] sm:$0xf0] }
 0x4a3   :  { %2793 = vmatpush.bf16.msrb.mxu3 %v5369_v39  ;;  %v6413_v39 = vld [vmem:[#allocation14 + $0xb4] sm:$0xf0]  ;;  %v5501_v25 = vor.u32 %v6406_v21, %v5498_v22  ;;  %v5650_v22 = vld [vmem:[#allocation17 + $0xb8] sm:$0xf0] }
 0x4a6   :  { %2819 = vmatpush.bf16.msra.mxu1 %v5373_v16  ;;  %v5522_v16 = vld [vmem:[#allocation14 + $0xb8] sm:$0xf0] }
 0x500   :  { %v2309_v42 = vpop.f32.mrf.mxu1 }
 0x506   :  { %v2283_v47 = vpop.f32.mrf.mxu3  ;;  %v2296_v48 = vpop.f32.mrf.mxu0 }
 0x507   :  { %v2297_v49 = vadd.f32 %v2296_v48, %v2098_v46  ;;  %v5317_v46 = vor.u32 %v6360_v44, %v5314_v45  ;;  %v6359_v48 = vld [vmem:[#allocation11 + $0x804] sm:$0xf0]  ;;  %v5456_v44 = vld [vmem:[#allocation14 + $0x30] sm:$0xf]  ;;  %v5521_v45 = vor.u32 %v6413_v39, %v5520_v37  ;;  %v5442_v39 = vld [vmem:[#allocation14 + $0x18] sm:$0xf0] }
 0x508   :  { %v2311_v50 = vpop.f32.mrf.mxu1  ;;  %v6392_v37 = vld [vmem:[#allocation14 + $0x14] sm:$0xf] }
 0x509   :  { %v2310_v51 = vadd.f32 %v2309_v42, %v2297_v49  ;;  %v6361_v42 = vld [vmem:[#allocation11 + $0x814] sm:$0xf0]  ;;  %2805 = vmatpush.bf16.msra.mxu0 %v5317_v46  ;;  %v6358_v49 = vld [vmem:[#allocation11 + $0x804] sm:$0xf]  ;;  %v6397_v46 = vld [vmem:[#allocation14 + $0x34] sm:$0xf0] }
 0x50a   :  { %v5313_v43 = vor.u32 %v6361_v42, %v5312_v40  ;;  %v2354_v40 = vperm.slane %v7032_v27, 1  ;;  %v5465_v42 = vor.u32 %v6399_v33, %v5464_v30  ;;  %v6452_v30 = vld [vmem:[#allocation17 + $0xf4] sm:$0xf]  ;;  %v5440_v33 = vld [vmem:[#allocation14 + $0x10] sm:$0xf] }
 0x50b   :  { %v2314_v53 = vmax.f32 %v2310_v51, 0.0  ;;  %v5306_v51 = vld [vmem:[#allocation11 + $0x808] sm:$0xf0] }
 0x50c   :  { %v2270_v54 = vpop.f32.mrf.mxu2  ;;  %2779 = vmatpush.bf16.msrb.mxu2 %v5313_v43  ;;  %v5469_v43 = vor.u32 %v6398_v34, %v5466_v35  ;;  %v6393_v34 = vld [vmem:[#allocation14 + $0x14] sm:$0xf0] }
 0x50d   :  { %v2316_v55 = vpack.c.bf16 %v2314_v53, %v2314_v53  ;;  %v2271_v56 = vadd.f32 %v2270_v54, %v2097_v52  ;;  %v5309_v52 = vor.u32 %v6358_v49, %v5306_v51  ;;  %v5552_v53 = vld [vmem:[#allocation14 + $0xf0] sm:$0xf]  ;;  %v6421_v54 = vld [vmem:[#allocation14 + $0xf4] sm:$0xf0]  ;;  %v5525_v49 = vor.u32 %v6412_v14, %v5522_v16  ;;  %v6411_v51 = vld [vmem:[#allocation14 + $0xa4] sm:$0xf0] }
 0x50e   :  { %v2285_v57 = vpop.f32.mrf.mxu3  ;;  %v2298_v58 = vpop.f32.mrf.mxu0  ;;  %v5445_v14 = vor.u32 %v6392_v37, %v5442_v39  ;;  %v5672_v16 = vld [vmem:[#allocation17 + $0xe0] sm:$0xf]  ;;  %v6429_v37 = vld [vmem:[#allocation17 + $0x34] sm:$0xf0]  ;;  %v6428_v39 = vld [vmem:[#allocation17 + $0x34] sm:$0xf] }
 0x50f   :  { %v2284_v59 = vadd.f32 %v2283_v47, %v2271_v56  ;;  %2538 = vmatmul.bf16.vlgmr.msra.gmra.mxu3 %v2316_v55  ;;  %2564 = vmatmul.bf16.vlgmr.msrb.gmra.mxu1 %v2316_v55  ;;  %v5304_v47 = vld [vmem:[#allocation11 + $0x800] sm:$0xf]  ;;  %v6420_v55 = vld [vmem:[#allocation14 + $0xf4] sm:$0xf]  ;;  %v5553_v56 = vor.u32 %v6421_v54, %v5552_v53  ;;  %v5554_v57 = vld [vmem:[#allocation14 + $0xf8] sm:$0xf0] }
 0x510   :  { %v5305_v50 = vor.u32 %v6359_v48, %v5304_v47  ;;  %2806 = vmatpush.bf16.msra.mxu0 %v5309_v52  ;;  %v5544_v58 = vld [vmem:[#allocation14 + $0xe0] sm:$0xf]  ;;  %v6396_v47 = vld [vmem:[#allocation14 + $0x34] sm:$0xf]  ;;  %v5458_v48 = vld [vmem:[#allocation14 + $0x38] sm:$0xf0] }
 0x511   :  { %v2313_v60 = vmax.f32 %v2284_v59, 0.0  ;;  %v6419_v59 = vld [vmem:[#allocation14 + $0xe4] sm:$0xf0]  ;;  %3040 = vmatpush.bf16.msra.mxu3 %v5553_v56  ;;  %v6410_v54 = vld [vmem:[#allocation14 + $0xa4] sm:$0xf] }
 0x512   :  { %2780 = vmatpush.bf16.msrb.mxu2 %v5305_v50  ;;  %v5545_v63 = vor.u32 %v6419_v59, %v5544_v58  ;;  %v5512_v50 = vld [vmem:[#allocation14 + $0xa0] sm:$0xf]  ;;  %v5461_v58 = vor.u32 %v6396_v47, %v5458_v48 }
 0x513   :  { %v2315_v38 = vpack.c.bf16 %v2313_v60, %v2313_v60  ;;  %v5557_v60 = vor.u32 %v6420_v55, %v5554_v57  ;;  %v5514_v55 = vld [vmem:[#allocation14 + $0xa8] sm:$0xf0]  ;;  %v5457_v57 = vor.u32 %v6397_v46, %v5456_v44  ;;  %v6391_v46 = vld [vmem:[#allocation14 + $0x4] sm:$0xf0] }
 0x514   :  { %v2272_v61 = vpop.f32.mrf.mxu2  ;;  %v5517_v0 = vor.u32 %v6410_v54, %v5514_v55  ;;  %v5674_v44 = vld [vmem:[#allocation17 + $0xe8] sm:$0xf0]  ;;  %v6436_v54 = vld [vmem:[#allocation17 + $0x74] sm:$0xf] }
 0x515   :  { %2525 = vmatmul.bf16.vlgmr.msra.gmra.mxu2 %v2315_v38  ;;  %2551 = vmatmul.bf16.vlgmr.msrb.gmra.mxu0 %v2315_v38  ;;  %v6418_v38 = vld [vmem:[#allocation14 + $0xe4] sm:$0xf]  ;;  %v5546_v61 = vld [vmem:[#allocation14 + $0xe8] sm:$0xf0] }
 0x516   :  { %3066 = vmatpush.bf16.msrb.mxu1 %v5557_v60  ;;  %v5549_v2 = vor.u32 %v6418_v38, %v5546_v61  ;;  %3027 = vmatpush.bf16.msra.mxu2 %v5489_v3  ;;  %v2353_v60 = vperm.slane %v7032_v27, 0  ;;  %v5513_v38 = vor.u32 %v6411_v51, %v5512_v50  ;;  %v5504_v61 = vld [vmem:[#allocation14 + $0x90] sm:$0xf]  ;;  %v5506_v3 = vld [vmem:[#allocation14 + $0x98] sm:$0xf0] }
 0x517   :  { %3053 = vmatpush.bf16.msrb.mxu0 %v5493_v4  ;;  %3041 = vmatpush.bf16.msra.mxu3 %v5545_v63  ;;  %v6394_v4 = vld [vmem:[#allocation14 + $0x24] sm:$0xf]  ;;  %v5505_v8 = vor.u32 %v6409_v62, %v5504_v61  ;;  %v5509_v12 = vor.u32 %v6408_v41, %v5506_v3  ;;  %v5434_v50 = vld [vmem:[#allocation14 + $0x8] sm:$0xf0]  ;;  %v5666_v61 = vld [vmem:[#allocation17 + $0xd8] sm:$0xf0] }
 0x518   :  { %v5453_v13 = vor.u32 %v6394_v4, %v5450_v5  ;;  %v6434_v41 = vld [vmem:[#allocation17 + $0x64] sm:$0xf]  ;;  %v5656_v4 = vld [vmem:[#allocation17 + $0xc0] sm:$0xf]  ;;  %v6447_v5 = vld [vmem:[#allocation17 + $0xc4] sm:$0xf0] }
 0x51a   :  { %3067 = vmatpush.bf16.msrb.mxu1 %v5549_v2  ;;  %3028 = vmatpush.bf16.msra.mxu2 %v5481_v11  ;;  %v6395_v2 = vld [vmem:[#allocation14 + $0x24] sm:$0xf0] }
 0x51b   :  { %3054 = vmatpush.bf16.msrb.mxu0 %v5485_v17  ;;  %3042 = vmatpush.bf16.msra.mxu3 %v5537_v15  ;;  %v5449_v9 = vor.u32 %v6395_v2, %v5448_v1  ;;  %v5496_v15 = vld [vmem:[#allocation14 + $0x80] sm:$0xf]  ;;  %v6407_v17 = vld [vmem:[#allocation14 + $0x84] sm:$0xf0]  ;;  %v5610_v2 = vld [vmem:[#allocation17 + $0x68] sm:$0xf0] }
 0x51c   :  { %v5497_v23 = vor.u32 %v6407_v17, %v5496_v15  ;;  %v5613_v3 = vor.u32 %v6434_v41, %v5610_v2  ;;  %v5602_v15 = vld [vmem:[#allocation17 + $0x58] sm:$0xf0]  ;;  %v5560_v41 = vld [vmem:[#allocation17] sm:$0xf]  ;;  %v6422_v2 = vld [vmem:[#allocation17 + $0x4] sm:$0xf] }
 0x51e   :  { %3068 = vmatpush.bf16.msrb.mxu1 %v5541_v20  ;;  %3029 = vmatpush.bf16.msra.mxu2 %v5473_v28  ;;  %v5680_v28 = vld [vmem:[#allocation17 + $0xf0] sm:$0xf] }
 0x51f   :  { %3055 = vmatpush.bf16.msrb.mxu0 %v5477_v29  ;;  %3043 = vmatpush.bf16.msra.mxu3 %v5529_v32  ;;  %v6453_v29 = vld [vmem:[#allocation17 + $0xf4] sm:$0xf0]  ;;  %v5682_v32 = vld [vmem:[#allocation17 + $0xf8] sm:$0xf0] }
 0x520   :  { %v5685_v35 = vor.u32 %v6452_v30, %v5682_v32  ;;  %v5640_v30 = vld [vmem:[#allocation17 + $0xa0] sm:$0xf]  ;;  %v6442_v32 = vld [vmem:[#allocation17 + $0xa4] sm:$0xf] }
 0x522   :  { %3069 = vmatpush.bf16.msrb.mxu1 %v5533_v36  ;;  %3030 = vmatpush.bf16.msra.mxu2 %v5465_v42  ;;  %v5441_v36 = vor.u32 %v6393_v34, %v5440_v33  ;;  %v6450_v42 = vld [vmem:[#allocation17 + $0xe4] sm:$0xf]  ;;  %v5642_v34 = vld [vmem:[#allocation17 + $0xa8] sm:$0xf0] }
 0x523   :  { %3056 = vmatpush.bf16.msrb.mxu0 %v5469_v43  ;;  %3044 = vmatpush.bf16.msra.mxu3 %v5521_v45  ;;  %v5432_v45 = vld [vmem:[#allocation14] sm:$0xf]  ;;  %v5677_v47 = vor.u32 %v6450_v42, %v5674_v44  ;;  %v5632_v42 = vld [vmem:[#allocation17 + $0x90] sm:$0xf]  ;;  %v6440_v44 = vld [vmem:[#allocation17 + $0x94] sm:$0xf] }
 0x524   :  { %v5433_v48 = vor.u32 %v6391_v46, %v5432_v45  ;;  %v5634_v46 = vld [vmem:[#allocation17 + $0x98] sm:$0xf0] }
 0x526   :  { %3070 = vmatpush.bf16.msrb.mxu1 %v5525_v49  ;;  %3031 = vmatpush.bf16.msra.mxu2 %v5457_v57  ;;  %v6390_v49 = vld [vmem:[#allocation14 + $0x4] sm:$0xf] }
 0x527   :  { %3057 = vmatpush.bf16.msrb.mxu0 %v5461_v58  ;;  %3045 = vmatpush.bf16.msra.mxu3 %v5513_v38  ;;  %v5437_v51 = vor.u32 %v6390_v49, %v5434_v50  ;;  %v5664_v58 = vld [vmem:[#allocation17 + $0xd0] sm:$0xf]  ;;  %v6448_v38 = vld [vmem:[#allocation17 + $0xd4] sm:$0xf]  ;;  %v5637_v49 = vor.u32 %v6440_v44, %v5634_v46  ;;  %v6481_v46 = vld [vmem:[#allocation17 + $0x1d4] sm:$0xf0] }
 0x528   :  { %v5669_v62 = vor.u32 %v6448_v38, %v5666_v61  ;;  %v6425_v38 = vld [vmem:[#allocation17 + $0x14] sm:$0xf0]  ;;  %v6424_v61 = vld [vmem:[#allocation17 + $0x14] sm:$0xf] }
 0x52a   :  { %3071 = vmatpush.bf16.msrb.mxu1 %v5517_v0  ;;  %3032 = vmatpush.bf16.msra.mxu2 %v5449_v9  ;;  %v6435_v0 = vld [vmem:[#allocation17 + $0x64] sm:$0xf0] }
 0x52b   :  { %3046 = vmatpush.bf16.msra.mxu3 %v5505_v8  ;;  %3058 = vmatpush.bf16.msrb.mxu0 %v5453_v13  ;;  %v5658_v8 = vld [vmem:[#allocation17 + $0xc8] sm:$0xf0]  ;;  %v6432_v13 = vld [vmem:[#allocation17 + $0x54] sm:$0xf] }
 0x52c   :  { %v5605_v17 = vor.u32 %v6432_v13, %v5602_v15 }
 0x52e   :  { %3072 = vmatpush.bf16.msrb.mxu1 %v5509_v12  ;;  %3033 = vmatpush.bf16.msra.mxu2 %v5441_v36  ;;  %v5584_v36 = vld [vmem:[#allocation17 + $0x30] sm:$0xf] }
 0x52f   :  { %3047 = vmatpush.bf16.msra.mxu3 %v5497_v23  ;;  %3059 = vmatpush.bf16.msrb.mxu0 %v5445_v14  ;;  %v5585_v14 = vor.u32 %v6429_v37, %v5584_v36  ;;  %v5802_v37 = vld [vmem:[#allocation17 + $0x1e8] sm:$0xf0] }
 0x532   :  { %3073 = vmatpush.bf16.msrb.mxu1 %v5501_v25  ;;  %3034 = vmatpush.bf16.msra.mxu2 %v5433_v48  ;;  %v6431_v25 = vld [vmem:[#allocation17 + $0x44] sm:$0xf0] }
 0x533   :  { %3060 = vmatpush.bf16.msrb.mxu0 %v5437_v51  ;;  %v6427_v48 = vld [vmem:[#allocation17 + $0x24] sm:$0xf0]  ;;  %v6426_v51 = vld [vmem:[#allocation17 + $0x24] sm:$0xf] }
 0x58c   :  { %v2565_v31 = vpop.f32.mrf.mxu1 }
 0x592   :  { %v2539_v52 = vpop.f32.mrf.mxu3  ;;  %v2552_v53 = vpop.f32.mrf.mxu0 }
 0x593   :  { %v2553_v56 = vadd.f32 %v2552_v53, %v2354_v40  ;;  %v6451_v40 = vld [vmem:[#allocation17 + $0xe4] sm:$0xf0]  ;;  %v6437_v53 = vld [vmem:[#allocation17 + $0x74] sm:$0xf0] }
 0x594   :  { %v2567_v59 = vpop.f32.mrf.mxu1  ;;  %v5673_v43 = vor.u32 %v6451_v40, %v5672_v16  ;;  %v5586_v16 = vld [vmem:[#allocation17 + $0x38] sm:$0xf0] }
 0x595   :  { %v2566_v63 = vadd.f32 %v2565_v31, %v2553_v56  ;;  %v5681_v31 = vor.u32 %v6453_v29, %v5680_v28  ;;  %v5618_v56 = vld [vmem:[#allocation17 + $0x78] sm:$0xf0]  ;;  %v6449_v59 = vld [vmem:[#allocation17 + $0xd4] sm:$0xf0]  ;;  %v5594_v28 = vld [vmem:[#allocation17 + $0x48] sm:$0xf0]  ;;  %v5589_v40 = vor.u32 %v6428_v39, %v5586_v16 }
 0x596   :  { %v5621_v57 = vor.u32 %v6436_v54, %v5618_v56  ;;  %v6438_v56 = vld [vmem:[#allocation17 + $0x84] sm:$0xf]  ;;  %v6469_v16 = vld [vmem:[#allocation17 + $0x174] sm:$0xf0] }
 0x597   :  { %v2570_v6 = vmax.f32 %v2566_v63, 0.0  ;;  %v5608_v63 = vld [vmem:[#allocation17 + $0x60] sm:$0xf] }
 0x598   :  { %v2526_v7 = vpop.f32.mrf.mxu2  ;;  %v5609_v1 = vor.u32 %v6435_v0, %v5608_v63  ;;  %v5570_v63 = vld [vmem:[#allocation17 + $0x18] sm:$0xf0] }
 0x599   :  { %v2572_v10 = vpack.c.bf16 %v2570_v6, %v2570_v6  ;;  %v2527_v11 = vadd.f32 %v2526_v7, %v2353_v60  ;;  %v5665_v60 = vor.u32 %v6449_v59, %v5664_v58  ;;  %v6446_v6 = vld [vmem:[#allocation17 + $0xc4] sm:$0xf]  ;;  %v5657_v7 = vor.u32 %v6447_v5, %v5656_v4  ;;  %v2607_v4 = vld [vmem:[#allocation12 + $0x10] sm:$0x3] }
 0x59a   :  { %v2541_v18 = vpop.f32.mrf.mxu3  ;;  %v2554_v19 = vpop.f32.mrf.mxu0  ;;  %v5661_v9 = vor.u32 %v6446_v6, %v5658_v8  ;;  %v5573_v0 = vor.u32 %v6424_v61, %v5570_v63  ;;  %v5562_v6 = vld [vmem:[#allocation17 + $0x8] sm:$0xf0]  ;;  %v2610_v8 = vperm.slane %v2607_v4, 1  ;;  %v2609_v15 = vperm.slane %v2607_v4, 0  ;;  %v6465_v63 = vld [vmem:[#allocation17 + $0x154] sm:$0xf0] }
 0x59b   :  { %v2540_v20 = vadd.f32 %v2539_v52, %v2527_v11  ;;  %2794 = vmatmul.bf16.vlgmr.msrb.gmra.mxu3 %v2572_v10  ;;  %2820 = vmatmul.bf16.vlgmr.msra.gmra.mxu1 %v2572_v10  ;;  %v5616_v52 = vld [vmem:[#allocation17 + $0x70] sm:$0xf]  ;;  %v6433_v11 = vld [vmem:[#allocation17 + $0x54] sm:$0xf0] }
 0x59c   :  { %3292 = vmatpush.bf16.msrb.mxu3 %v5681_v31  ;;  %3318 = vmatpush.bf16.msra.mxu1 %v5685_v35  ;;  %v5617_v55 = vor.u32 %v6437_v53, %v5616_v52  ;;  %v5600_v10 = vld [vmem:[#allocation17 + $0x50] sm:$0xf]  ;;  %v6445_v19 = vld [vmem:[#allocation17 + $0xb4] sm:$0xf0]  ;;  %v6443_v31 = vld [vmem:[#allocation17 + $0xa4] sm:$0xf0]  ;;  %v5645_v35 = vor.u32 %v6442_v32, %v5642_v34 }
 0x59d   :  { %v2569_v24 = vmax.f32 %v2540_v20, 0.0  ;;  %v5601_v12 = vor.u32 %v6433_v11, %v5600_v10  ;;  %v5648_v18 = vld [vmem:[#allocation17 + $0xb0] sm:$0xf]  ;;  %v6444_v20 = vld [vmem:[#allocation17 + $0xb4] sm:$0xf]  ;;  %v5641_v33 = vor.u32 %v6443_v31, %v5640_v30 }
 0x59e   :  { %v5649_v21 = vor.u32 %v6445_v19, %v5648_v18  ;;  %v5653_v23 = vor.u32 %v6444_v20, %v5650_v22  ;;  %v5578_v52 = vld [vmem:[#allocation17 + $0x28] sm:$0xf0]  ;;  %v5624_v53 = vld [vmem:[#allocation17 + $0x80] sm:$0xf]  ;;  %v5810_v31 = vld [vmem:[#allocation17 + $0x1f8] sm:$0xf0] }
 0x59f   :  { %v2571_v26 = vpack.c.bf16 %v2569_v24, %v2569_v24  ;;  %v5592_v24 = vld [vmem:[#allocation17 + $0x40] sm:$0xf]  ;;  %v5581_v54 = vor.u32 %v6426_v51, %v5578_v52  ;;  %v6483_v34 = vld [vmem:[#allocation17 + $0x1e4] sm:$0xf0]  ;;  %v6477_v4 = vld [vmem:[#allocation17 + $0x1b4] sm:$0xf0] }
 0x5a0   :  { %v2528_v27 = vpop.f32.mrf.mxu2  ;;  %3293 = vmatpush.bf16.msrb.mxu3 %v5673_v43  ;;  %3319 = vmatpush.bf16.msra.mxu1 %v5677_v47  ;;  %v6441_v43 = vld [vmem:[#allocation17 + $0x94] sm:$0xf0]  ;;  %v5576_v47 = vld [vmem:[#allocation17 + $0x20] sm:$0xf]  ;;  %v6467_v52 = vld [vmem:[#allocation17 + $0x164] sm:$0xf0] }
 0x5a1   :  { %2781 = vmatmul.bf16.vlgmr.msrb.gmra.mxu2 %v2571_v26  ;;  %2807 = vmatmul.bf16.vlgmr.msra.gmra.mxu0 %v2571_v26  ;;  %v6430_v26 = vld [vmem:[#allocation17 + $0x44] sm:$0xf]  ;;  %v5593_v27 = vor.u32 %v6431_v25, %v5592_v24  ;;  %v5633_v45 = vor.u32 %v6441_v43, %v5632_v42  ;;  %v5577_v50 = vor.u32 %v6427_v48, %v5576_v47  ;;  %v5746_v43 = vld [vmem:[#allocation17 + $0x178] sm:$0xf0]  ;;  %v6480_v48 = vld [vmem:[#allocation17 + $0x1d4] sm:$0xf] }
 0x5a2   :  { %3279 = vmatpush.bf16.msrb.mxu2 %v5617_v55  ;;  %3305 = vmatpush.bf16.msra.mxu0 %v5621_v57  ;;  %v5597_v29 = vor.u32 %v6430_v26, %v5594_v28  ;;  %v6439_v55 = vld [vmem:[#allocation17 + $0x84] sm:$0xf0]  ;;  %v5626_v57 = vld [vmem:[#allocation17 + $0x88] sm:$0xf0]  ;;  %v6485_v28 = vld [vmem:[#allocation17 + $0x1f4] sm:$0xf0] }
 0x5a3   :  { %v5625_v58 = vor.u32 %v6439_v55, %v5624_v53  ;;  %v5629_v59 = vor.u32 %v6438_v56, %v5626_v57  ;;  %v5736_v51 = vld [vmem:[#allocation17 + $0x160] sm:$0xf]  ;;  %v6466_v53 = vld [vmem:[#allocation17 + $0x164] sm:$0xf]  ;;  %v5738_v55 = vld [vmem:[#allocation17 + $0x168] sm:$0xf0] }
 0x5a4   :  { %3294 = vmatpush.bf16.msrb.mxu3 %v5665_v60  ;;  %3320 = vmatpush.bf16.msra.mxu1 %v5669_v62  ;;  %v5568_v60 = vld [vmem:[#allocation17 + $0x10] sm:$0xf]  ;;  %v5741_v56 = vor.u32 %v6466_v53, %v5738_v55  ;;  %v5784_v57 = vld [vmem:[#allocation17 + $0x1c0] sm:$0xf]  ;;  %v6454_v55 = vld [vmem:[#allocation17 + $0x104] sm:$0xf] }
 0x5a5   :  { %v5569_v62 = vor.u32 %v6425_v38, %v5568_v60  ;;  %v5786_v38 = vld [vmem:[#allocation17 + $0x1c8] sm:$0xf0]  ;;  %v5688_v53 = vld [vmem:[#allocation17 + $0x100] sm:$0xf] }
 0x5a6   :  { %3280 = vmatpush.bf16.msrb.mxu2 %v5609_v1  ;;  %3306 = vmatpush.bf16.msra.mxu0 %v5613_v3  ;;  %v6423_v1 = vld [vmem:[#allocation17 + $0x4] sm:$0xf0] }
 0x5a7   :  { %v5561_v5 = vor.u32 %v6423_v1, %v5560_v41  ;;  %v6464_v41 = vld [vmem:[#allocation17 + $0x154] sm:$0xf]  ;;  %v5730_v1 = vld [vmem:[#allocation17 + $0x158] sm:$0xf0] }
 0x5a8   :  { %3295 = vmatpush.bf16.msrb.mxu3 %v5657_v7  ;;  %3321 = vmatpush.bf16.msra.mxu1 %v5661_v9  ;;  %v5565_v7 = vor.u32 %v6422_v2, %v5562_v6  ;;  %v5733_v2 = vor.u32 %v6464_v41, %v5730_v1 }
 0x5aa   :  { %3281 = vmatpush.bf16.msrb.mxu2 %v5601_v12  ;;  %3307 = vmatpush.bf16.msra.mxu0 %v5605_v17 }
 0x5ac   :  { %3296 = vmatpush.bf16.msrb.mxu3 %v5649_v21  ;;  %3322 = vmatpush.bf16.msra.mxu1 %v5653_v23 }
 0x5ae   :  { %3282 = vmatpush.bf16.msrb.mxu2 %v5593_v27  ;;  %3308 = vmatpush.bf16.msra.mxu0 %v5597_v29  ;;  %v5808_v27 = vld [vmem:[#allocation17 + $0x1f0] sm:$0xf]  ;;  %v6484_v29 = vld [vmem:[#allocation17 + $0x1f4] sm:$0xf] }
 0x5af   :  { %v5809_v30 = vor.u32 %v6485_v28, %v5808_v27  ;;  %v5813_v32 = vor.u32 %v6484_v29, %v5810_v31  ;;  %v5714_v27 = vld [vmem:[#allocation17 + $0x138] sm:$0xf0]  ;;  %v5760_v29 = vld [vmem:[#allocation17 + $0x190] sm:$0xf] }
 0x5b0   :  { %3297 = vmatpush.bf16.msrb.mxu3 %v5641_v33  ;;  %3323 = vmatpush.bf16.msra.mxu1 %v5645_v35  ;;  %v5800_v33 = vld [vmem:[#allocation17 + $0x1e0] sm:$0xf]  ;;  %v6482_v35 = vld [vmem:[#allocation17 + $0x1e4] sm:$0xf] }
 0x5b1   :  { %v5801_v36 = vor.u32 %v6483_v34, %v5800_v33  ;;  %v5805_v39 = vor.u32 %v6482_v35, %v5802_v37  ;;  %v5762_v33 = vld [vmem:[#allocation17 + $0x198] sm:$0xf0]  ;;  %v5704_v35 = vld [vmem:[#allocation17 + $0x120] sm:$0xf]  ;;  %v6458_v37 = vld [vmem:[#allocation17 + $0x124] sm:$0xf] }
 0x5b2   :  { %3283 = vmatpush.bf16.msrb.mxu2 %v5585_v14  ;;  %3309 = vmatpush.bf16.msra.mxu0 %v5589_v40  ;;  %v5744_v14 = vld [vmem:[#allocation17 + $0x170] sm:$0xf]  ;;  %v6468_v40 = vld [vmem:[#allocation17 + $0x174] sm:$0xf] }
 0x5b3   :  { %v5745_v42 = vor.u32 %v6469_v16, %v5744_v14  ;;  %v5749_v44 = vor.u32 %v6468_v40, %v5746_v43  ;;  %v5706_v14 = vld [vmem:[#allocation17 + $0x128] sm:$0xf0]  ;;  %v5752_v40 = vld [vmem:[#allocation17 + $0x180] sm:$0xf]  ;;  %v6470_v43 = vld [vmem:[#allocation17 + $0x184] sm:$0xf] }
 0x5b4   :  { %3298 = vmatpush.bf16.msrb.mxu3 %v5633_v45  ;;  %3324 = vmatpush.bf16.msra.mxu1 %v5637_v49  ;;  %v5792_v45 = vld [vmem:[#allocation17 + $0x1d0] sm:$0xf]  ;;  %v5794_v49 = vld [vmem:[#allocation17 + $0x1d8] sm:$0xf0]  ;;  %v5709_v16 = vor.u32 %v6458_v37, %v5706_v14 }
 0x5b5   :  { %v5793_v47 = vor.u32 %v6481_v46, %v5792_v45  ;;  %v5754_v45 = vld [vmem:[#allocation17 + $0x188] sm:$0xf0]  ;;  %v5856_v14 = vld [vmem:[#allocation17 + $0x250] sm:$0xf] }
 0x5b6   :  { %3284 = vmatpush.bf16.msrb.mxu2 %v5577_v50  ;;  %3310 = vmatpush.bf16.msra.mxu0 %v5581_v54  ;;  %v5797_v50 = vor.u32 %v6480_v48, %v5794_v49  ;;  %v5737_v54 = vor.u32 %v6467_v52, %v5736_v51  ;;  %v5757_v46 = vor.u32 %v6470_v43, %v5754_v45  ;;  %v6457_v48 = vld [vmem:[#allocation17 + $0x114] sm:$0xf0]  ;;  %v5698_v51 = vld [vmem:[#allocation17 + $0x118] sm:$0xf0]  ;;  %v5914_v43 = vld [vmem:[#allocation17 + $0x2c8] sm:$0xf0] }
 0x5b7   :  { %v5858_v45 = vld [vmem:[#allocation17 + $0x258] sm:$0xf0] }
 0x5b8   :  { %3299 = vmatpush.bf16.msrb.mxu3 %v5625_v58  ;;  %3325 = vmatpush.bf16.msra.mxu1 %v5629_v59  ;;  %v6479_v58 = vld [vmem:[#allocation17 + $0x1c4] sm:$0xf0]  ;;  %v6478_v59 = vld [vmem:[#allocation17 + $0x1c4] sm:$0xf] }
 0x5b9   :  { %v5785_v60 = vor.u32 %v6479_v58, %v5784_v57  ;;  %v5789_v61 = vor.u32 %v6478_v59, %v5786_v38  ;;  %v2861_v57 = vld [vmem:[#allocation15] sm:$0x3]  ;;  %v5690_v59 = vld [vmem:[#allocation17 + $0x108] sm:$0xf0] }
 0x5ba   :  { %3285 = vmatpush.bf16.msrb.mxu2 %v5569_v62  ;;  %3311 = vmatpush.bf16.msra.mxu0 %v5573_v0  ;;  %v5728_v62 = vld [vmem:[#allocation17 + $0x150] sm:$0xf]  ;;  %v2864_v38 = vperm.slane %v2861_v57, 1 }
 0x5bb   :  { %v5729_v0 = vor.u32 %v6465_v63, %v5728_v62  ;;  %v5936_v62 = vld [vmem:[#allocation17 + $0x2f0] sm:$0xf]  ;;  %v6517_v63 = vld [vmem:[#allocation17 + $0x2f4] sm:$0xf0] }
 0x5be   :  { %3286 = vmatpush.bf16.msrb.mxu2 %v5561_v5  ;;  %3312 = vmatpush.bf16.msra.mxu0 %v5565_v7  ;;  %v6476_v5 = vld [vmem:[#allocation17 + $0x1b4] sm:$0xf]  ;;  %v5778_v7 = vld [vmem:[#allocation17 + $0x1b8] sm:$0xf0] }
 0x618   :  { %v2821_v3 = vpop.f32.mrf.mxu1 }
 0x61e   :  { %v2795_v9 = vpop.f32.mrf.mxu3  ;;  %v2808_v10 = vpop.f32.mrf.mxu0 }
 0x61f   :  { %v2809_v11 = vadd.f32 %v2808_v10, %v2610_v8  ;;  %v5781_v8 = vor.u32 %v6476_v5, %v5778_v7  ;;  %v6463_v10 = vld [vmem:[#allocation17 + $0x144] sm:$0xf0] }
 0x620   :  { %v2823_v12 = vpop.f32.mrf.mxu1  ;;  %v6515_v5 = vld [vmem:[#allocation17 + $0x2e4] sm:$0xf0] }
 0x621   :  { %v2822_v13 = vadd.f32 %v2821_v3, %v2809_v11  ;;  %v5776_v3 = vld [vmem:[#allocation17 + $0x1b0] sm:$0xf]  ;;  %v6462_v11 = vld [vmem:[#allocation17 + $0x144] sm:$0xf] }
 0x622   :  { %v5777_v6 = vor.u32 %v6477_v4, %v5776_v3  ;;  %v5938_v3 = vld [vmem:[#allocation17 + $0x2f8] sm:$0xf0]  ;;  %v5928_v4 = vld [vmem:[#allocation17 + $0x2e0] sm:$0xf] }
 0x623   :  { %v2826_v17 = vmax.f32 %v2822_v13, 0.0  ;;  %v5722_v13 = vld [vmem:[#allocation17 + $0x148] sm:$0xf0] }
 0x624   :  { %v2782_v18 = vpop.f32.mrf.mxu2 }
 0x625   :  { %v2828_v19 = vpack.c.bf16 %v2826_v17, %v2826_v17  ;;  %v2783_v20 = vadd.f32 %v2782_v18, %v2609_v15  ;;  %v5725_v15 = vor.u32 %v6462_v11, %v5722_v13  ;;  %v5768_v17 = vld [vmem:[#allocation17 + $0x1a0] sm:$0xf]  ;;  %v6475_v18 = vld [vmem:[#allocation17 + $0x1a4] sm:$0xf0]  ;;  %v6501_v13 = vld [vmem:[#allocation17 + $0x274] sm:$0xf0] }
 0x626   :  { %v2797_v21 = vpop.f32.mrf.mxu3  ;;  %v2810_v22 = vpop.f32.mrf.mxu0 }
 0x627   :  { %v2796_v23 = vadd.f32 %v2795_v9, %v2783_v20  ;;  %3048 = vmatmul.bf16.vlgmr.msra.gmra.mxu3 %v2828_v19  ;;  %3074 = vmatmul.bf16.vlgmr.msrb.gmra.mxu1 %v2828_v19  ;;  %v5720_v9 = vld [vmem:[#allocation17 + $0x140] sm:$0xf]  ;;  %v5769_v20 = vor.u32 %v6475_v18, %v5768_v17  ;;  %v5770_v21 = vld [vmem:[#allocation17 + $0x1a8] sm:$0xf0]  ;;  %v5874_v17 = vld [vmem:[#allocation17 + $0x278] sm:$0xf0] }
 0x628   :  { %3548 = vmatpush.bf16.msra.mxu3 %v5809_v30  ;;  %3574 = vmatpush.bf16.msrb.mxu1 %v5813_v32  ;;  %v5721_v12 = vor.u32 %v6463_v10, %v5720_v9  ;;  %v6473_v30 = vld [vmem:[#allocation17 + $0x194] sm:$0xf0]  ;;  %v6472_v32 = vld [vmem:[#allocation17 + $0x194] sm:$0xf]  ;;  %v5930_v9 = vld [vmem:[#allocation17 + $0x2e8] sm:$0xf0] }
 0x629   :  { %v2825_v24 = vmax.f32 %v2796_v23, 0.0  ;;  %v5712_v23 = vld [vmem:[#allocation17 + $0x130] sm:$0xf]  ;;  %v5761_v31 = vor.u32 %v6473_v30, %v5760_v29  ;;  %v5765_v34 = vor.u32 %v6472_v32, %v5762_v33  ;;  %v6498_v29 = vld [vmem:[#allocation17 + $0x264] sm:$0xf] }
 0x62a   :  { %v5872_v10 = vld [vmem:[#allocation17 + $0x270] sm:$0xf]  ;;  %v5866_v30 = vld [vmem:[#allocation17 + $0x268] sm:$0xf0] }
 0x62b   :  { %v2827_v25 = vpack.c.bf16 %v2825_v24, %v2825_v24  ;;  %v6461_v24 = vld [vmem:[#allocation17 + $0x134] sm:$0xf0]  ;;  %v5869_v33 = vor.u32 %v6498_v29, %v5866_v30  ;;  %v5842_v29 = vld [vmem:[#allocation17 + $0x238] sm:$0xf0] }
 0x62c   :  { %v2784_v26 = vpop.f32.mrf.mxu2  ;;  %3549 = vmatpush.bf16.msra.mxu3 %v5801_v36  ;;  %3575 = vmatpush.bf16.msrb.mxu1 %v5805_v39  ;;  %v6459_v36 = vld [vmem:[#allocation17 + $0x124] sm:$0xf0] }
 0x62d   :  { %3035 = vmatmul.bf16.vlgmr.msra.gmra.mxu2 %v2827_v25  ;;  %3061 = vmatmul.bf16.vlgmr.msrb.gmra.mxu0 %v2827_v25  ;;  %v5713_v26 = vor.u32 %v6461_v24, %v5712_v23  ;;  %v5705_v39 = vor.u32 %v6459_v36, %v5704_v35  ;;  %v6513_v23 = vld [vmem:[#allocation17 + $0x2d4] sm:$0xf0]  ;;  %v6512_v24 = vld [vmem:[#allocation17 + $0x2d4] sm:$0xf]  ;;  %v6511_v35 = vld [vmem:[#allocation17 + $0x2c4] sm:$0xf0] }
 0x62e   :  { %3535 = vmatpush.bf16.msra.mxu2 %v5745_v42  ;;  %3561 = vmatpush.bf16.msrb.mxu0 %v5749_v44  ;;  %v6471_v42 = vld [vmem:[#allocation17 + $0x184] sm:$0xf0] }
 0x62f   :  { %v5753_v44 = vor.u32 %v6471_v42, %v5752_v40 }
 0x630   :  { %3550 = vmatpush.bf16.msra.mxu3 %v5793_v47  ;;  %3576 = vmatpush.bf16.msrb.mxu1 %v5797_v50  ;;  %v5696_v47 = vld [vmem:[#allocation17 + $0x110] sm:$0xf]  ;;  %v6456_v50 = vld [vmem:[#allocation17 + $0x114] sm:$0xf] }
 0x631   :  { %v5697_v49 = vor.u32 %v6457_v48, %v5696_v47  ;;  %v5701_v52 = vor.u32 %v6456_v50, %v5698_v51  ;;  %v3113_v50 = vld [vmem:[#allocation18] sm:$0x3] }
 0x632   :  { %3536 = vmatpush.bf16.msra.mxu2 %v5737_v54  ;;  %3562 = vmatpush.bf16.msrb.mxu0 %v5741_v56  ;;  %v6455_v54 = vld [vmem:[#allocation17 + $0x104] sm:$0xf0] }
 0x633   :  { %v5689_v58 = vor.u32 %v6455_v54, %v5688_v53  ;;  %v3116_v53 = vperm.slane %v3113_v50, 1 }
 0x634   :  { %3551 = vmatpush.bf16.msra.mxu3 %v5785_v60  ;;  %3577 = vmatpush.bf16.msrb.mxu1 %v5789_v61  ;;  %v5693_v60 = vor.u32 %v6454_v55, %v5690_v59  ;;  %v2863_v61 = vperm.slane %v2861_v57, 0 }
 0x636   :  { %3537 = vmatpush.bf16.msra.mxu2 %v5729_v0  ;;  %3563 = vmatpush.bf16.msrb.mxu0 %v5733_v2  ;;  %v6516_v0 = vld [vmem:[#allocation17 + $0x2f4] sm:$0xf]  ;;  %v5937_v2 = vor.u32 %v6517_v63, %v5936_v62 }
 0x637   :  { %3300 = vmatmul.bf16.vlgmr.msrb.gmra.mxu3 %v2828_v19  ;;  %3326 = vmatmul.bf16.vlgmr.msra.gmra.mxu1 %v2828_v19  ;;  %v6474_v19 = vld [vmem:[#allocation17 + $0x1a4] sm:$0xf]  ;;  %v5941_v7 = vor.u32 %v6516_v0, %v5938_v3 }
 0x638   :  { %3552 = vmatpush.bf16.msra.mxu3 %v5777_v6  ;;  %3578 = vmatpush.bf16.msrb.mxu1 %v5781_v8  ;;  %v5773_v22 = vor.u32 %v6474_v19, %v5770_v21  ;;  %v6514_v8 = vld [vmem:[#allocation17 + $0x2e4] sm:$0xf] }
 0x639   :  { %v5933_v19 = vor.u32 %v6514_v8, %v5930_v9  ;;  %v5906_v9 = vld [vmem:[#allocation17 + $0x2b8] sm:$0xf0] }
 0x63a   :  { %3538 = vmatpush.bf16.msra.mxu2 %v5721_v12  ;;  %3564 = vmatpush.bf16.msrb.mxu0 %v5725_v15  ;;  %v5929_v12 = vor.u32 %v6515_v5, %v5928_v4  ;;  %v6500_v15 = vld [vmem:[#allocation17 + $0x274] sm:$0xf]  ;;  %v5904_v5 = vld [vmem:[#allocation17 + $0x2b0] sm:$0xf] }
 0x63b   :  { %v5877_v21 = vor.u32 %v6500_v15, %v5874_v17  ;;  %v5850_v17 = vld [vmem:[#allocation17 + $0x248] sm:$0xf0] }
 0x63c   :  { %3553 = vmatpush.bf16.msra.mxu3 %v5769_v20  ;;  %3579 = vmatpush.bf16.msrb.mxu1 %v5773_v22  ;;  %v5873_v20 = vor.u32 %v6501_v13, %v5872_v10  ;;  %v5920_v22 = vld [vmem:[#allocation17 + $0x2d0] sm:$0xf]  ;;  %v6494_v13 = vld [vmem:[#allocation17 + $0x244] sm:$0xf] }
 0x63d   :  { %3287 = vmatmul.bf16.vlgmr.msrb.gmra.mxu2 %v2827_v25  ;;  %3313 = vmatmul.bf16.vlgmr.msra.gmra.mxu0 %v2827_v25  ;;  %v6460_v25 = vld [vmem:[#allocation17 + $0x134] sm:$0xf]  ;;  %v5921_v32 = vor.u32 %v6513_v23, %v5920_v22  ;;  %v6506_v22 = vld [vmem:[#allocation17 + $0x2a4] sm:$0xf]  ;;  %v5898_v23 = vld [vmem:[#allocation17 + $0x2a8] sm:$0xf0] }
 0x63e   :  { %v5717_v28 = vor.u32 %v6460_v25, %v5714_v27  ;;  %3539 = vmatpush.bf16.msra.mxu2 %v5713_v26  ;;  %v5922_v25 = vld [vmem:[#allocation17 + $0x2d8] sm:$0xf0]  ;;  %v5864_v26 = vld [vmem:[#allocation17 + $0x260] sm:$0xf]  ;;  %v6499_v27 = vld [vmem:[#allocation17 + $0x264] sm:$0xf0] }
 0x63f   :  { %v5925_v37 = vor.u32 %v6512_v24, %v5922_v25  ;;  %v5901_v24 = vor.u32 %v6506_v22, %v5898_v23  ;;  %v5840_v25 = vld [vmem:[#allocation17 + $0x230] sm:$0xf]  ;;  %v6530_v22 = vld [vmem:[#allocation17 + $0x364] sm:$0xf]  ;;  %v5994_v23 = vld [vmem:[#allocation17 + $0x368] sm:$0xf0] }
 0x640   :  { %3565 = vmatpush.bf16.msrb.mxu0 %v5717_v28  ;;  %3554 = vmatpush.bf16.msra.mxu3 %v5761_v31  ;;  %v5865_v28 = vor.u32 %v6499_v27, %v5864_v26  ;;  %v6493_v26 = vld [vmem:[#allocation17 + $0x234] sm:$0xf0]  ;;  %v6492_v27 = vld [vmem:[#allocation17 + $0x234] sm:$0xf] }
 0x641   :  { %3580 = vmatpush.bf16.msrb.mxu1 %v5765_v34  ;;  %v5912_v34 = vld [vmem:[#allocation17 + $0x2c0] sm:$0xf]  ;;  %v5845_v30 = vor.u32 %v6492_v27, %v5842_v29  ;;  %v6543_v27 = vld [vmem:[#allocation17 + $0x3c4] sm:$0xf0]  ;;  %v5984_v29 = vld [vmem:[#allocation17 + $0x350] sm:$0xf] }
 0x642   :  { %3540 = vmatpush.bf16.msra.mxu2 %v5705_v39  ;;  %v6510_v39 = vld [vmem:[#allocation17 + $0x2c4] sm:$0xf]  ;;  %v5913_v51 = vor.u32 %v6511_v35, %v5912_v34  ;;  %v6504_v34 = vld [vmem:[#allocation17 + $0x294] sm:$0xf]  ;;  %v5890_v35 = vld [vmem:[#allocation17 + $0x298] sm:$0xf0] }
 0x644   :  { %3566 = vmatpush.bf16.msrb.mxu0 %v5709_v16  ;;  %3555 = vmatpush.bf16.msra.mxu3 %v5753_v44  ;;  %v6497_v16 = vld [vmem:[#allocation17 + $0x254] sm:$0xf0]  ;;  %v6496_v44 = vld [vmem:[#allocation17 + $0x254] sm:$0xf] }
 0x645   :  { %3581 = vmatpush.bf16.msrb.mxu1 %v5757_v46  ;;  %v5857_v47 = vor.u32 %v6497_v16, %v5856_v14  ;;  %v5861_v48 = vor.u32 %v6496_v44, %v5858_v45  ;;  %v6490_v14 = vld [vmem:[#allocation17 + $0x224] sm:$0xf]  ;;  %v6503_v44 = vld [vmem:[#allocation17 + $0x284] sm:$0xf0] }
 0x646   :  { %3541 = vmatpush.bf16.msra.mxu2 %v5697_v49  ;;  %v6502_v45 = vld [vmem:[#allocation17 + $0x284] sm:$0xf] }
 0x648   :  { %3567 = vmatpush.bf16.msrb.mxu0 %v5701_v52  ;;  %3804 = vmatpush.bf16.msrb.mxu3 %v5937_v2  ;;  %v5917_v52 = vor.u32 %v6510_v39, %v5914_v43  ;;  %v6491_v39 = vld [vmem:[#allocation17 + $0x224] sm:$0xf0]  ;;  %v5880_v43 = vld [vmem:[#allocation17 + $0x280] sm:$0xf] }
 0x649   :  { %3830 = vmatpush.bf16.msra.mxu1 %v5941_v7  ;;  %v6508_v7 = vld [vmem:[#allocation17 + $0x2b4] sm:$0xf] }
 0x64a   :  { %3542 = vmatpush.bf16.msra.mxu2 %v5689_v58  ;;  %v5909_v10 = vor.u32 %v6508_v7, %v5906_v9  ;;  %v6533_v7 = vld [vmem:[#allocation17 + $0x374] sm:$0xf0]  ;;  %v6002_v9 = vld [vmem:[#allocation17 + $0x378] sm:$0xf0] }
 0x64c   :  { %3568 = vmatpush.bf16.msrb.mxu0 %v5693_v60  ;;  %3805 = vmatpush.bf16.msrb.mxu3 %v5929_v12  ;;  %v3115_v60 = vperm.slane %v3113_v50, 0  ;;  %v6495_v12 = vld [vmem:[#allocation17 + $0x244] sm:$0xf0]  ;;  %v6489_v50 = vld [vmem:[#allocation17 + $0x214] sm:$0xf0] }
 0x64d   :  { %3831 = vmatpush.bf16.msra.mxu1 %v5933_v19  ;;  %v6507_v19 = vld [vmem:[#allocation17 + $0x2a4] sm:$0xf0] }
 0x64e   :  { %3791 = vmatpush.bf16.msrb.mxu2 %v5873_v20  ;;  %v5853_v20 = vor.u32 %v6494_v13, %v5850_v17  ;;  %v6048_v13 = vld [vmem:[#allocation17 + $0x3d0] sm:$0xf]  ;;  %v6544_v17 = vld [vmem:[#allocation17 + $0x3d4] sm:$0xf] }
 0x650   :  { %3817 = vmatpush.bf16.msra.mxu0 %v5877_v21  ;;  %3806 = vmatpush.bf16.msrb.mxu3 %v5921_v32  ;;  %v6505_v32 = vld [vmem:[#allocation17 + $0x294] sm:$0xf0] }
 0x651   :  { %3832 = vmatpush.bf16.msra.mxu1 %v5925_v37  ;;  %v5832_v37 = vld [vmem:[#allocation17 + $0x220] sm:$0xf] }
 0x652   :  { %3792 = vmatpush.bf16.msrb.mxu2 %v5865_v28  ;;  %v5841_v28 = vor.u32 %v6493_v26, %v5840_v25  ;;  %v5833_v16 = vor.u32 %v6491_v39, %v5832_v37  ;;  %v5997_v25 = vor.u32 %v6530_v22, %v5994_v23  ;;  %v6040_v26 = vld [vmem:[#allocation17 + $0x3c0] sm:$0xf]  ;;  %v6018_v22 = vld [vmem:[#allocation17 + $0x398] sm:$0xf0] }
 0x653   :  { %v3369_v39 = vld [vmem:[#allocation18 + $0x2] sm:$0x3] }
 0x654   :  { %3818 = vmatpush.bf16.msra.mxu0 %v5869_v33  ;;  %3807 = vmatpush.bf16.msrb.mxu3 %v5913_v51 }
 0x655   :  { %3833 = vmatpush.bf16.msra.mxu1 %v5917_v52  ;;  %v6488_v52 = vld [vmem:[#allocation17 + $0x214] sm:$0xf] }
 0x656   :  { %3793 = vmatpush.bf16.msrb.mxu2 %v5857_v47  ;;  %v5882_v47 = vld [vmem:[#allocation17 + $0x288] sm:$0xf0] }
 0x658   :  { %3819 = vmatpush.bf16.msra.mxu0 %v5861_v48  ;;  %v5885_v48 = vor.u32 %v6502_v45, %v5882_v47  ;;  %v3371_v47 = vperm.slane %v3369_v39, 0 }
 0x659   :  { %3834 = vmatpush.bf16.msra.mxu1 %v5909_v10 }
 0x65c   :  { %3820 = vmatpush.bf16.msra.mxu0 %v5853_v20  ;;  %v6531_v20 = vld [vmem:[#allocation17 + $0x364] sm:$0xf0] }
 0x65d   :  { %3835 = vmatpush.bf16.msra.mxu1 %v5901_v24 }
 0x660   :  { %3821 = vmatpush.bf16.msra.mxu0 %v5845_v30  ;;  %v6529_v30 = vld [vmem:[#allocation17 + $0x354] sm:$0xf0] }
 0x6a4   :  { %v3075_v56 = vpop.f32.mrf.mxu1 }
 0x6aa   :  { %v3049_v41 = vpop.f32.mrf.mxu3  ;;  %v3062_v1 = vpop.f32.mrf.mxu0 }
 0x6ab   :  { %v3063_v6 = vadd.f32 %v3062_v1, %v2864_v38 }
 0x6ac   :  { %v3077_v11 = vpop.f32.mrf.mxu1 }
 0x6ad   :  { %v3076_v18 = vadd.f32 %v3075_v56, %v3063_v6  ;;  %v6509_v6 = vld [vmem:[#allocation17 + $0x2b4] sm:$0xf0]  ;;  %v5848_v11 = vld [vmem:[#allocation17 + $0x240] sm:$0xf] }
 0x6ae   :  { %v5905_v8 = vor.u32 %v6509_v6, %v5904_v5  ;;  %v5849_v15 = vor.u32 %v6495_v12, %v5848_v11  ;;  %v6000_v5 = vld [vmem:[#allocation17 + $0x370] sm:$0xf] }
 0x6af   :  { %3080 = vst [vmem:[#allocation21 + $0x8] sm:$0xff] %v3076_v18  ;;  %v5896_v18 = vld [vmem:[#allocation17 + $0x2a0] sm:$0xf]  ;;  %v6001_v11 = vor.u32 %v6533_v7, %v6000_v5  ;;  %v6538_v7 = vld [vmem:[#allocation17 + $0x3a4] sm:$0xf] }
 0x6b0   :  { %v3036_v31 = vpop.f32.mrf.mxu2  ;;  %3808 = vmatpush.bf16.msrb.mxu3 %v5905_v8  ;;  %v5897_v21 = vor.u32 %v6507_v19, %v5896_v18  ;;  %3794 = vmatpush.bf16.msrb.mxu2 %v5849_v15  ;;  %v6532_v8 = vld [vmem:[#allocation17 + $0x374] sm:$0xf]  ;;  %v6545_v15 = vld [vmem:[#allocation17 + $0x3d4] sm:$0xf0]  ;;  %v6050_v18 = vld [vmem:[#allocation17 + $0x3d8] sm:$0xf0] }
 0x6b1   :  { %v3037_v36 = vadd.f32 %v3036_v31, %v2863_v61  ;;  %v5888_v31 = vld [vmem:[#allocation17 + $0x290] sm:$0xf]  ;;  %v6005_v12 = vor.u32 %v6532_v8, %v6002_v9  ;;  %v5992_v19 = vld [vmem:[#allocation17 + $0x360] sm:$0xf]  ;;  %v6049_v24 = vor.u32 %v6545_v15, %v6048_v13  ;;  %v6026_v8 = vld [vmem:[#allocation17 + $0x3a8] sm:$0xf0] }
 0x6b2   :  { %v3051_v40 = vpop.f32.mrf.mxu3  ;;  %v3064_v42 = vpop.f32.mrf.mxu0  ;;  %v5889_v33 = vor.u32 %v6505_v32, %v5888_v31  ;;  %v6528_v31 = vld [vmem:[#allocation17 + $0x354] sm:$0xf]  ;;  %v6542_v32 = vld [vmem:[#allocation17 + $0x3c4] sm:$0xf]  ;;  %v6029_v9 = vor.u32 %v6538_v7, %v6026_v8  ;;  %v5970_v15 = vld [vmem:[#allocation17 + $0x338] sm:$0xf0] }
 0x6b3   :  { %v3050_v46 = vadd.f32 %v3049_v41, %v3037_v36  ;;  %v5893_v36 = vor.u32 %v6504_v34, %v5890_v35  ;;  %v5834_v40 = vld [vmem:[#allocation17 + $0x228] sm:$0xf0]  ;;  %v5986_v34 = vld [vmem:[#allocation17 + $0x358] sm:$0xf0]  ;;  %v5985_v35 = vor.u32 %v6529_v30, %v5984_v29  ;;  %v6008_v30 = vld [vmem:[#allocation17 + $0x380] sm:$0xf] }
 0x6b4   :  { %v3327_v49 = vpop.f32.mrf.mxu1  ;;  %3809 = vmatpush.bf16.msrb.mxu3 %v5897_v21  ;;  %3795 = vmatpush.bf16.msrb.mxu2 %v5841_v28  ;;  %v5837_v42 = vor.u32 %v6490_v14, %v5834_v40  ;;  %v5993_v21 = vor.u32 %v6531_v20, %v5992_v19  ;;  %v6053_v28 = vor.u32 %v6544_v17, %v6050_v18  ;;  %v3372_v40 = vperm.slane %v3369_v39, 1  ;;  %v6016_v18 = vld [vmem:[#allocation17 + $0x390] sm:$0xf]  ;;  %v6537_v19 = vld [vmem:[#allocation17 + $0x394] sm:$0xf0] }
 0x6b5   :  { %3079 = vst [vmem:[#allocation21] sm:$0xff] %v3050_v46  ;;  %3836 = vmatpush.bf16.msra.mxu1 %v5893_v36  ;;  %v5881_v46 = vor.u32 %v6503_v44, %v5880_v43  ;;  %v5989_v36 = vor.u32 %v6528_v31, %v5986_v34  ;;  %v6041_v14 = vor.u32 %v6543_v27, %v6040_v26  ;;  %v6522_v26 = vld [vmem:[#allocation17 + $0x324] sm:$0xf]  ;;  %v6535_v31 = vld [vmem:[#allocation17 + $0x384] sm:$0xf0] }
 0x6b6   :  { %3822 = vmatpush.bf16.msra.mxu0 %v5837_v42  ;;  %v6017_v20 = vor.u32 %v6537_v19, %v6016_v18  ;;  %v6010_v34 = vld [vmem:[#allocation17 + $0x388] sm:$0xf0]  ;;  %4134 = dma.vmem_to_hbm [thread:$0]  %s4130_s23, 256, %s4132_s4, [#allocation5]  }
 0x6b8   :  { %v3038_v54 = vpop.f32.mrf.mxu2  ;;  %3810 = vmatpush.bf16.msrb.mxu3 %v5889_v33  ;;  %3796 = vmatpush.bf16.msrb.mxu2 %v5833_v16  ;;  %v6042_v33 = vld [vmem:[#allocation17 + $0x3c8] sm:$0xf0] }
 0x6b9   :  { %3837 = vmatpush.bf16.msra.mxu1 %v5885_v48  ;;  %v6045_v16 = vor.u32 %v6542_v32, %v6042_v33  ;;  %v6534_v32 = vld [vmem:[#allocation17 + $0x384] sm:$0xf]  ;;  %v6009_v33 = vor.u32 %v6535_v31, %v6008_v30 }
 0x6ba   :  { %v3301_v55 = vpop.f32.mrf.mxu3  ;;  %v3314_v56 = vpop.f32.mrf.mxu0 }
 0x6bb   :  { %v3315_v57 = vadd.f32 %v3314_v56, %v3116_v53  ;;  %v5826_v53 = vld [vmem:[#allocation17 + $0x218] sm:$0xf0]  ;;  %v6487_v56 = vld [vmem:[#allocation17 + $0x204] sm:$0xf0] }
 0x6bc   :  { %v3329_v58 = vpop.f32.mrf.mxu1  ;;  %3811 = vmatpush.bf16.msrb.mxu3 %v5881_v46  ;;  %v5829_v54 = vor.u32 %v6488_v52, %v5826_v53 }
 0x6bd   :  { %v3328_v59 = vadd.f32 %v3327_v49, %v3315_v57  ;;  %v5824_v49 = vld [vmem:[#allocation17 + $0x210] sm:$0xf]  ;;  %v6486_v57 = vld [vmem:[#allocation17 + $0x204] sm:$0xf] }
 0x6be   :  { %v5825_v51 = vor.u32 %v6489_v50, %v5824_v49  ;;  %3823 = vmatpush.bf16.msra.mxu0 %v5829_v54 }
 0x6bf   :  { %v3332_v38 = vmax.f32 %v3328_v59, 0.0  ;;  %v5818_v59 = vld [vmem:[#allocation17 + $0x208] sm:$0xf0] }
 0x6c0   :  { %v3288_v61 = vpop.f32.mrf.mxu2  ;;  %3797 = vmatpush.bf16.msrb.mxu2 %v5825_v51 }
 0x6c1   :  { %v3334_v62 = vpack.c.bf16 %v3332_v38, %v3332_v38  ;;  %v3289_v63 = vadd.f32 %v3288_v61, %v3115_v60  ;;  %v5821_v60 = vor.u32 %v6486_v57, %v5818_v59  ;;  %v6064_v38 = vld [vmem:[#allocation17 + $0x3f0] sm:$0xf]  ;;  %v6549_v61 = vld [vmem:[#allocation17 + $0x3f4] sm:$0xf0] }
 0x6c2   :  { %v3303_v0 = vpop.f32.mrf.mxu3  ;;  %v3316_v41 = vpop.f32.mrf.mxu0  ;;  %v6541_v59 = vld [vmem:[#allocation17 + $0x3b4] sm:$0xf0] }
 0x6c3   :  { %v3302_v1 = vadd.f32 %v3301_v55, %v3289_v63  ;;  %3556 = vmatmul.bf16.vlgmr.msra.gmra.mxu3 %v3334_v62  ;;  %3582 = vmatmul.bf16.vlgmr.msrb.gmra.mxu1 %v3334_v62  ;;  %v5816_v55 = vld [vmem:[#allocation17 + $0x200] sm:$0xf]  ;;  %v6548_v62 = vld [vmem:[#allocation17 + $0x3f4] sm:$0xf]  ;;  %v6065_v63 = vor.u32 %v6549_v61, %v6064_v38  ;;  %v6066_v0 = vld [vmem:[#allocation17 + $0x3f8] sm:$0xf0] }
 0x6c4   :  { %v5817_v58 = vor.u32 %v6487_v56, %v5816_v55  ;;  %3824 = vmatpush.bf16.msra.mxu0 %v5821_v60  ;;  %v6056_v41 = vld [vmem:[#allocation17 + $0x3e0] sm:$0xf]  ;;  %v6540_v60 = vld [vmem:[#allocation17 + $0x3b4] sm:$0xf]  ;;  %v6034_v61 = vld [vmem:[#allocation17 + $0x3b8] sm:$0xf0] }
 0x6c5   :  { %v3331_v2 = vmax.f32 %v3302_v1, 0.0  ;;  %v6547_v1 = vld [vmem:[#allocation17 + $0x3e4] sm:$0xf0]  ;;  %4060 = vmatpush.bf16.msra.mxu3 %v6065_v63  ;;  %v5976_v63 = vld [vmem:[#allocation17 + $0x340] sm:$0xf] }
 0x6c6   :  { %3798 = vmatpush.bf16.msrb.mxu2 %v5817_v58  ;;  %v6057_v6 = vor.u32 %v6547_v1, %v6056_v41  ;;  %v6032_v58 = vld [vmem:[#allocation17 + $0x3b0] sm:$0xf]  ;;  %v6526_v41 = vld [vmem:[#allocation17 + $0x344] sm:$0xf] }
 0x6c7   :  { %v3333_v3 = vpack.c.bf16 %v3331_v2, %v3331_v2  ;;  %v6069_v2 = vor.u32 %v6548_v62, %v6066_v0  ;;  %v6033_v38 = vor.u32 %v6541_v59, %v6032_v58  ;;  %v6037_v62 = vor.u32 %v6540_v60, %v6034_v61  ;;  %v6527_v0 = vld [vmem:[#allocation17 + $0x344] sm:$0xf0] }
 0x6c8   :  { %v3290_v4 = vpop.f32.mrf.mxu2  ;;  %v5977_v1 = vor.u32 %v6527_v0, %v5976_v63 }
 0x6c9   :  { %3543 = vmatmul.bf16.vlgmr.msra.gmra.mxu2 %v3333_v3  ;;  %3569 = vmatmul.bf16.vlgmr.msrb.gmra.mxu0 %v3333_v3  ;;  %v6546_v3 = vld [vmem:[#allocation17 + $0x3e4] sm:$0xf]  ;;  %v6058_v4 = vld [vmem:[#allocation17 + $0x3e8] sm:$0xf0] }
 0x6ca   :  { %4086 = vmatpush.bf16.msrb.mxu1 %v6069_v2  ;;  %v6061_v10 = vor.u32 %v6546_v3, %v6058_v4  ;;  %4047 = vmatpush.bf16.msra.mxu2 %v6001_v11  ;;  %v5978_v2 = vld [vmem:[#allocation17 + $0x348] sm:$0xf0]  ;;  %v6024_v3 = vld [vmem:[#allocation17 + $0x3a0] sm:$0xf]  ;;  %v6539_v4 = vld [vmem:[#allocation17 + $0x3a4] sm:$0xf0] }
 0x6cb   :  { %4073 = vmatpush.bf16.msrb.mxu0 %v6005_v12  ;;  %4061 = vmatpush.bf16.msra.mxu3 %v6057_v6  ;;  %v5981_v5 = vor.u32 %v6526_v41, %v5978_v2  ;;  %v6025_v6 = vor.u32 %v6539_v4, %v6024_v3  ;;  %v6525_v11 = vld [vmem:[#allocation17 + $0x334] sm:$0xf0]  ;;  %v6524_v12 = vld [vmem:[#allocation17 + $0x334] sm:$0xf]  ;;  %v3881_v2 = vld [vmem:[#allocation18 + $0x6] sm:$0x3] }
 0x6cc   :  { %v5973_v17 = vor.u32 %v6524_v12, %v5970_v15  ;;  %v3884_v3 = vperm.slane %v3881_v2, 1  ;;  %v3883_v8 = vperm.slane %v3881_v2, 0 }
 0x6ce   :  { %4087 = vmatpush.bf16.msrb.mxu1 %v6061_v10  ;;  %4048 = vmatpush.bf16.msra.mxu2 %v5993_v21  ;;  %v5968_v10 = vld [vmem:[#allocation17 + $0x330] sm:$0xf]  ;;  %v6536_v21 = vld [vmem:[#allocation17 + $0x394] sm:$0xf] }
 0x6cf   :  { %4074 = vmatpush.bf16.msrb.mxu0 %v5997_v25  ;;  %4062 = vmatpush.bf16.msra.mxu3 %v6049_v24  ;;  %v5969_v13 = vor.u32 %v6525_v11, %v5968_v10  ;;  %v6021_v23 = vor.u32 %v6536_v21, %v6018_v22  ;;  %v5960_v24 = vld [vmem:[#allocation17 + $0x320] sm:$0xf]  ;;  %v6523_v25 = vld [vmem:[#allocation17 + $0x324] sm:$0xf0] }
 0x6d0   :  { %v5961_v27 = vor.u32 %v6523_v25, %v5960_v24 }
 0x6d2   :  { %4088 = vmatpush.bf16.msrb.mxu1 %v6053_v28  ;;  %4049 = vmatpush.bf16.msra.mxu2 %v5985_v35  ;;  %v5962_v28 = vld [vmem:[#allocation17 + $0x328] sm:$0xf0]  ;;  %v6013_v35 = vor.u32 %v6534_v32, %v6010_v34 }
 0x6d3   :  { %4075 = vmatpush.bf16.msrb.mxu0 %v5989_v36  ;;  %4063 = vmatpush.bf16.msra.mxu3 %v6041_v14  ;;  %v5965_v29 = vor.u32 %v6522_v26, %v5962_v28  ;;  %v5952_v36 = vld [vmem:[#allocation17 + $0x310] sm:$0xf]  ;;  %v6520_v14 = vld [vmem:[#allocation17 + $0x314] sm:$0xf] }
 0x6d6   :  { %4089 = vmatpush.bf16.msrb.mxu1 %v6045_v16  ;;  %4050 = vmatpush.bf16.msra.mxu2 %v5977_v1  ;;  %v5954_v16 = vld [vmem:[#allocation17 + $0x318] sm:$0xf0] }
 0x6d7   :  { %4064 = vmatpush.bf16.msra.mxu3 %v6033_v38  ;;  %4076 = vmatpush.bf16.msrb.mxu0 %v5981_v5 }
 0x6da   :  { %4090 = vmatpush.bf16.msrb.mxu1 %v6037_v62  ;;  %4051 = vmatpush.bf16.msra.mxu2 %v5969_v13 }
 0x6db   :  { %4065 = vmatpush.bf16.msra.mxu3 %v6025_v6  ;;  %4077 = vmatpush.bf16.msrb.mxu0 %v5973_v17  ;;  %v4104_v17 = vld [vmem:[#allocation20] sm:$0x3] }
 0x6dc   :  { %v4106_v21 = vperm.slane %v4104_v17, 0  ;;  %v4107_v22 = vperm.slane %v4104_v17, 1 }
 0x6de   :  { %4091 = vmatpush.bf16.msrb.mxu1 %v6029_v9  ;;  %4052 = vmatpush.bf16.msra.mxu2 %v5961_v27 }
 0x6df   :  { %4066 = vmatpush.bf16.msra.mxu3 %v6017_v20  ;;  %4078 = vmatpush.bf16.msrb.mxu0 %v5965_v29  ;;  %v6569_v29 = vld [vmem:[#allocation2] ss:$0 sm:$0xff] }
 0x6e2   :  { %4092 = vmatpush.bf16.msrb.mxu1 %v6021_v23 }
 0x6e3   :  { %4067 = vmatpush.bf16.msra.mxu3 %v6009_v33 }
 0x6e6   :  { %4093 = vmatpush.bf16.msrb.mxu1 %v6013_v35 }
 0x740   :  { %v3583_v37 = vpop.f32.mrf.mxu1 }
 0x746   :  { %v3557_v42 = vpop.f32.mrf.mxu3  ;;  %v3570_v43 = vpop.f32.mrf.mxu0 }
 0x747   :  { %v3571_v44 = vadd.f32 %v3570_v43, %v3372_v40  ;;  %v5957_v40 = vor.u32 %v6520_v14, %v5954_v16  ;;  %v6519_v43 = vld [vmem:[#allocation17 + $0x304] sm:$0xf0] }
 0x748   :  { %v3585_v45 = vpop.f32.mrf.mxu1 }
 0x749   :  { %v3584_v46 = vadd.f32 %v3583_v37, %v3571_v44  ;;  %v6521_v37 = vld [vmem:[#allocation17 + $0x314] sm:$0xf0]  ;;  %4079 = vmatpush.bf16.msrb.mxu0 %v5957_v40  ;;  %v6518_v44 = vld [vmem:[#allocation17 + $0x304] sm:$0xf] }
 0x74a   :  { %v5953_v39 = vor.u32 %v6521_v37, %v5952_v36 }
 0x74b   :  { %v3588_v48 = vmax.f32 %v3584_v46, 0.0  ;;  %v5946_v46 = vld [vmem:[#allocation17 + $0x308] sm:$0xf0] }
 0x74c   :  { %v3544_v49 = vpop.f32.mrf.mxu2  ;;  %4053 = vmatpush.bf16.msra.mxu2 %v5953_v39 }
 0x74d   :  { %v3590_v50 = vpack.c.bf16 %v3588_v48, %v3588_v48  ;;  %v3545_v51 = vadd.f32 %v3544_v49, %v3371_v47  ;;  %v5949_v47 = vor.u32 %v6518_v44, %v5946_v46  ;;  %v3625_v49 = vld [vmem:[#allocation18 + $0x4] sm:$0x3] }
 0x74e   :  { %v3559_v52 = vpop.f32.mrf.mxu3  ;;  %v3572_v53 = vpop.f32.mrf.mxu0 }
 0x74f   :  { %v3558_v54 = vadd.f32 %v3557_v42, %v3545_v51  ;;  %3812 = vmatmul.bf16.vlgmr.msrb.gmra.mxu3 %v3590_v50  ;;  %3838 = vmatmul.bf16.vlgmr.msra.gmra.mxu1 %v3590_v50  ;;  %v5944_v42 = vld [vmem:[#allocation17 + $0x300] sm:$0xf]  ;;  %v3628_v50 = vperm.slane %v3625_v49, 1 }
 0x750   :  { %v5945_v45 = vor.u32 %v6519_v43, %v5944_v42  ;;  %4080 = vmatpush.bf16.msrb.mxu0 %v5949_v47 }
 0x751   :  { %v3587_v55 = vmax.f32 %v3558_v54, 0.0 }
 0x752   :  { %4054 = vmatpush.bf16.msra.mxu2 %v5945_v45 }
 0x753   :  { %v3589_v56 = vpack.c.bf16 %v3587_v55, %v3587_v55 }
 0x754   :  { %v3546_v57 = vpop.f32.mrf.mxu2 }
 0x755   :  { %3799 = vmatmul.bf16.vlgmr.msrb.gmra.mxu2 %v3589_v56  ;;  %3825 = vmatmul.bf16.vlgmr.msra.gmra.mxu0 %v3589_v56  ;;  %v3627_v56 = vperm.slane %v3625_v49, 0 }
 0x7cc   :  { %v3839_v48 = vpop.f32.mrf.mxu1 }
 0x7d2   :  { %v3813_v51 = vpop.f32.mrf.mxu3  ;;  %v3826_v52 = vpop.f32.mrf.mxu0 }
 0x7d3   :  { %v3827_v53 = vadd.f32 %v3826_v52, %v3628_v50 }
 0x7d4   :  { %v3841_v54 = vpop.f32.mrf.mxu1 }
 0x7d5   :  { %v3840_v55 = vadd.f32 %v3839_v48, %v3827_v53 }
 0x7d7   :  { %v3844_v57 = vmax.f32 %v3840_v55, 0.0 }
 0x7d8   :  { %v3800_v58 = vpop.f32.mrf.mxu2 }
 0x7d9   :  { %v3846_v59 = vpack.c.bf16 %v3844_v57, %v3844_v57  ;;  %v3801_v60 = vadd.f32 %v3800_v58, %v3627_v56 }
 0x7da   :  { %v3815_v38 = vpop.f32.mrf.mxu3  ;;  %v3828_v61 = vpop.f32.mrf.mxu0 }
 0x7db   :  { %v3814_v62 = vadd.f32 %v3813_v51, %v3801_v60  ;;  %4068 = vmatmul.bf16.vlgmr.msra.gmra.mxu3 %v3846_v59  ;;  %4094 = vmatmul.bf16.vlgmr.msrb.gmra.mxu1 %v3846_v59 }
 0x7dd   :  { %v3843_v63 = vmax.f32 %v3814_v62, 0.0 }
 0x7df   :  { %v3845_v0 = vpack.c.bf16 %v3843_v63, %v3843_v63 }
 0x7e0   :  { %v3802_v41 = vpop.f32.mrf.mxu2 }
 0x7e1   :  { %4055 = vmatmul.bf16.vlgmr.msra.gmra.mxu2 %v3845_v0  ;;  %4081 = vmatmul.bf16.vlgmr.msrb.gmra.mxu0 %v3845_v0 }
 0x858   :  { %v4095_v1 = vpop.f32.mrf.mxu1 }
 0x85e   :  { %v4069_v4 = vpop.f32.mrf.mxu3  ;;  %v4082_v5 = vpop.f32.mrf.mxu0 }
 0x85f   :  { %v4083_v7 = vadd.f32 %v4082_v5, %v3884_v3 }
 0x860   :  { %v4097_v6 = vpop.f32.mrf.mxu1 }
 0x861   :  { %v4096_v10 = vadd.f32 %v4095_v1, %v4083_v7 }
 0x863   :  { %v4100_v18 = vmax.f32 %v4096_v10, 0.0 }
 0x864   :  { %v4056_v9 = vpop.f32.mrf.mxu2 }
 0x865   :  { %v4057_v11 = vadd.f32 %v4056_v9, %v3883_v8 }
 0x866   :  { %v4071_v12 = vpop.f32.mrf.mxu3  ;;  %v4084_v13 = vpop.f32.mrf.mxu0 }
 0x867   :  { %v4070_v15 = vadd.f32 %v4069_v4, %v4057_v11 }
 0x869   :  { %v4099_v19 = vmax.f32 %v4070_v15, 0.0 }
 0x86b   :  { %v4101_v20 = vpack.c.bf16 %v4100_v18, %v4099_v19 }
 0x86c   :  { %v4058_v23 = vpop.f32.mrf.mxu2 }
 0x86d   :  { %v4102_v24 = vunpack.c.l.bf16 %v4101_v20  ;;  %v4103_v25 = vunpack.c.h.bf16 %v4101_v20 }
 0x86f   :  { %v4110_v26 = vmul.f32 %v4106_v21, %v4102_v24  ;;  %v4111_v27 = vmul.f32 %v4107_v22, %v4103_v25 }
 0x871   :  { %v4112_v28 = vadd.f32 %v4111_v27, %v4110_v26 }
 0x873   :  { %4113 = vadd.xlane.f32.xlu0 %v4112_v28 }
 0x8e6   :  { %v4114_v30 = vpop.xlane.xlu0 %4113 }
 0x8e7   :  { %v4119_v31 = vadd.f32 %v6569_v29, %v4114_v30 }
 0x8e9   :  { %4121 = vst.msk [vmem:[%s7055_s13] sm:$0xff] %vm4120_vm3, %v4119_v31 }
 0x8ea   :  { %6870 = dma.done.wait [#allocation5], 256  }
 0x8eb   :  { %6871 = vsyncadd [#allocation5], 4294967040 }
 0x8ec   :  { %4141 = vsyncpa [#allocation4], 1 }
 0x8ed   :  { %4142 = vsyncpa [#allocation7], 1 }
 0x8ee   :  { %4143 = vsyncpa [#allocation10], 1 }
 0x8ef   :  { %4144 = vsyncpa [#allocation13], 1 }
 0x8f0   :  { %4145 = vsyncpa [#allocation16], 1 }
 0x8f1   :  { %4146 = vsyncpa [#allocation19], 1 }
 0x8f2   :  { %4147 = vsyncpa [#allocation5], 1 }

</bundles_post_ra>
